<compile_context>
chip_gen: v7x
topology: tpu7x:2x2x1
jax: 0.10.0
libtpu: 0.0.40
codegen_flags: <defaults>
</compile_context>

<pallas_src>
import functools
import math

import jax
import jax.numpy as jnp
from jax import lax
from jax.experimental import pallas as pl
from jax.experimental.pallas import tpu as pltpu

D_MODEL = 64
N_HEADS = 4
D_HEAD = D_MODEL // N_HEADS
D_FF = 4 * D_MODEL          # TODO(synk): FFN width of the custom layers unknown; using 4*d_model.
EPS = 1e-5
NEG_INF = -1e9


def _round_up(x, m):
    return ((x + m - 1) // m) * m


# ----------------------------- packed layouts --------------------------------

def make_layouts(vocab_size_en):
    """Static row/col layout of the two packed parameter slabs."""
    proj_cols = _round_up(vocab_size_en, 128)            # lane-dense projection
    lanes = max(D_FF, 3 * D_MODEL, proj_cols)             # 256

    w_entries = [
        ("enc_qkv",       D_MODEL, 3 * D_MODEL),
        ("enc_wo",        D_MODEL, D_MODEL),
        ("enc_w1",        D_MODEL, D_FF),
        ("enc_w2",        D_FF,    D_MODEL),
        ("dec_self_qkv",  D_MODEL, 3 * D_MODEL),
        ("dec_self_wo",   D_MODEL, D_MODEL),
        ("dec_cross_wq",  D_MODEL, D_MODEL),
        ("dec_cross_wkv", D_MODEL, 2 * D_MODEL),
        ("dec_cross_wo",  D_MODEL, D_MODEL),
        ("dec_w1",        D_MODEL, D_FF),
        ("dec_w2",        D_FF,    D_MODEL),
        ("proj",          D_MODEL, proj_cols),
    ]
    w_layout, r = {}, 0
    for name, rows, cols in w_entries:
        w_layout[name] = (r, rows, cols)   # 8-aligned row offsets (64/256 rows each)
        r += rows
    w_rows = _round_up(r, 8)

    v_entries = [
        ("enc_ln1_g", D_MODEL), ("enc_ln1_b", D_MODEL),
        ("enc_qkv_b", 3 * D_MODEL), ("enc_wo_b", D_MODEL),
        ("enc_ln2_g", D_MODEL), ("enc_ln2_b", D_MODEL),
        ("enc_b1", D_FF), ("enc_b2", D_MODEL),
        ("dec_ln1_g", D_MODEL), ("dec_ln1_b", D_MODEL),
        ("dec_self_qkv_b", 3 * D_MODEL), ("dec_self_wo_b", D_MODEL),
        ("dec_ln2_g", D_MODEL), ("dec_ln2_b", D_MODEL),
        ("dec_cross_q_b", D_MODEL), ("dec_cross_kv_b", 2 * D_MODEL),
        ("dec_cross_wo_b", D_MODEL),
        ("dec_ln3_g", D_MODEL), ("dec_ln3_b", D_MODEL),
        ("dec_b1", D_FF), ("dec_b2", D_MODEL),
        ("proj_b", proj_cols),
    ]
    v_layout = {name: (i, cols) for i, (name, cols) in enumerate(v_entries)}
    v_rows = _round_up(len(v_entries), 8)
    return w_layout, w_rows, v_layout, v_rows, lanes, proj_cols


# --------------------------- fused Pallas kernel ------------------------------

def _fused_kernel(*refs, B, S_src, S_tgt, has_tgt_mask, has_mem_mask, WL, VL):
    it = iter(refs)
    src_ids_ref = next(it)                     # (B*S_src, 1) int32
    tgt_ids_ref = next(it)                     # (B*S_tgt, 1) int32
    tgt_mask_ref = next(it) if has_tgt_mask else None   # (B*S_tgt, B*S_tgt) f32
    mem_mask_ref = next(it) if has_mem_mask else None   # (B*S_tgt, B*S_src) f32
    emb_ref = next(it)                         # (V_pad, D) f32
    pos_ref = next(it)                         # (max_len, D) f32
    w_ref = next(it)                           # (W_ROWS, 256) bf16  packed weights
    v_ref = next(it)                           # (V_ROWS, 256) f32   packed biases/LN
    out_ref = next(it)                         # (B*S_tgt, proj_cols) f32

    f32, bf16 = jnp.float32, jnp.bfloat16

    def wslice(name):
        off, rows, cols = WL[name]
        return w_ref[off:off + rows, 0:cols]            # static 8-aligned view, bf16

    def vrow(name):
        row, cols = VL[name]
        return v_ref[row:row + 1, 0:cols]               # (1, cols) f32

    # ---- in-kernel embedding gather (one-hot matmul) + positional add ----
    def embed(ids_ref, S):
        M = B * S
        V = emb_ref.shape[0]
        ids = ids_ref[...]                                           # (M, 1) int32
        onehot = (lax.broadcasted_iota(jnp.int32, (M, V), 1) == ids).astype(f32)
        x = jnp.dot(onehot, emb_ref[...], preferred_element_type=f32)  # (M, D)
        pe = pos_ref[0:S, :]                                         # (S, D)
        return x + jnp.concatenate([pe] * B, axis=0)

    # ---- additive block-diagonal mask: rows/cols of different batches -> -1e9 ----
    def block_mask(Sq, Sk):
        rb = lax.div(lax.broadcasted_iota(jnp.int32, (B * Sq, B * Sk), 0),
                     jnp.int32(Sq))
        cb = lax.div(lax.broadcasted_iota(jnp.int32, (B * Sq, B * Sk), 1),
                     jnp.int32(Sk))
        return jnp.where(rb == cb, 0.0, NEG_INF).astype(f32)

    def layer_norm(x, gname, bname):
        g, b = vrow(gname), vrow(bname)
        mu = jnp.mean(x, axis=-1, keepdims=True)
        xc = x - mu
        var = jnp.mean(xc * xc, axis=-1, keepdims=True)
        return xc * lax.rsqrt(var + EPS) * g + b

    def dense(x, wname, bname):
        # bf16 MXU inputs, f32 accumulation, f32 bias add.
        y = jnp.dot(x.astype(bf16), wslice(wname), preferred_element_type=f32)
        return y + vrow(bname)

    def attention(q, k, v, wo_name, bo_name, mask):
        # q: (Mq, D), k/v: (Mk, D), mask: (Mq, Mk) additive f32 (batch-isolating).
        wo_off, _, _ = WL[wo_name]
        Mq = q.shape[0]
        scale = 1.0 / math.sqrt(D_HEAD)
        qb = (q * scale).astype(bf16)
        kb = k.astype(bf16)
        vb = v.astype(bf16)
        acc = jnp.zeros((Mq, D_MODEL), f32)
        for h in range(N_HEADS):
            sl = slice(h * D_HEAD, (h + 1) * D_HEAD)
            # Q.K^T without materializing a transpose (contract last dims).
            s = lax.dot_general(qb[:, sl], kb[:, sl],
                                (((1,), (1,)), ((), ())),
                                preferred_element_type=f32)
            s = s + mask
            s = s - jnp.max(s, axis=-1, keepdims=True)
            e = jnp.exp(s)
            p = e / jnp.sum(e, axis=-1, keepdims=True)            # exact softmax
            oh = jnp.dot(p.astype(bf16), vb[:, sl], preferred_element_type=f32)
            # Per-head accumulation through Wo row-slice: no head concat.
            wo_h = w_ref[wo_off + h * D_HEAD: wo_off + (h + 1) * D_HEAD, 0:D_MODEL]
            acc = acc + jnp.dot(oh.astype(bf16), wo_h, preferred_element_type=f32)
        return acc + vrow(bo_name)

    # -------------------------- encoder layer (pre-norm) ----------------------
    x = embed(src_ids_ref, S_src)                                   # (B*S_src, D)
    enc_mask = block_mask(S_src, S_src)

    h = layer_norm(x, "enc_ln1_g", "enc_ln1_b")
    qkv = dense(h, "enc_qkv", "enc_qkv_b")                          # fused QKV
    q, k, v = (qkv[:, 0:D_MODEL], qkv[:, D_MODEL:2 * D_MODEL],
               qkv[:, 2 * D_MODEL:3 * D_MODEL])
    x = x + attention(q, k, v, "enc_wo", "enc_wo_b", enc_mask)

    h = layer_norm(x, "enc_ln2_g", "enc_ln2_b")
    ff = jnp.maximum(dense(h, "enc_w1", "enc_b1"), 0.0)
    memory = x + dense(ff, "enc_w2", "enc_b2")                      # (B*S_src, D)

    # -------------------------- decoder layer (pre-norm) ----------------------
    y = embed(tgt_ids_ref, S_tgt)                                   # (B*S_tgt, D)
    self_mask = block_mask(S_tgt, S_tgt)
    if has_tgt_mask:
        self_mask = self_mask + tgt_mask_ref[...]
    cross_mask = block_mask(S_tgt, S_src)
    if has_mem_mask:
        cross_mask = cross_mask + mem_mask_ref[...]

    h = layer_norm(y, "dec_ln1_g", "dec_ln1_b")
    qkv = dense(h, "dec_self_qkv", "dec_self_qkv_b")
    q, k, v = (qkv[:, 0:D_MODEL], qkv[:, D_MODEL:2 * D_MODEL],
               qkv[:, 2 * D_MODEL:3 * D_MODEL])
    y = y + attention(q, k, v, "dec_self_wo", "dec_self_wo_b", self_mask)

    h = layer_norm(y, "dec_ln2_g", "dec_ln2_b")
    q = dense(h, "dec_cross_wq", "dec_cross_q_b")
    kv = dense(memory, "dec_cross_wkv", "dec_cross_kv_b")           # fused K|V
    k, v = kv[:, 0:D_MODEL], kv[:, D_MODEL:2 * D_MODEL]
    y = y + attention(q, k, v, "dec_cross_wo", "dec_cross_wo_b", cross_mask)

    h = layer_norm(y, "dec_ln3_g", "dec_ln3_b")
    ff = jnp.maximum(dense(h, "dec_w1", "dec_b1"), 0.0)
    y = y + dense(ff, "dec_w2", "dec_b2")

    # ---- final projection: lane-dense 128-wide output ----
    out_ref[...] = dense(y, "proj", "proj_b")


# ---------------------------------- wrapper -----------------------------------

def transformer_forward(params, src_ids, tgt_ids, tgt_mask=None,
                        memory_mask=None, *, vocab_size_en):
    B, S_src = src_ids.shape
    _, S_tgt = tgt_ids.shape
    WL, _, VL, _, _, proj_cols = make_layouts(vocab_size_en)

    src_flat = src_ids.reshape(B * S_src, 1).astype(jnp.int32)
    tgt_flat = tgt_ids.reshape(B * S_tgt, 1).astype(jnp.int32)

    has_tgt_mask = tgt_mask is not None
    has_mem_mask = memory_mask is not None

    inputs = [src_flat, tgt_flat]
    if has_tgt_mask:     # tile (S,S) additive mask onto the batch-block diagonal layout
        inputs.append(jnp.tile(tgt_mask.astype(jnp.float32), (B, B)))
    if has_mem_mask:
        inputs.append(jnp.tile(memory_mask.astype(jnp.float32), (B, B)))
    inputs += [params["embed"], params["pos_enc"], params["w_slab"], params["vec_slab"]]

    in_specs = [pl.BlockSpec(x.shape, lambda i: (0, 0)) for x in inputs]
    out_specs = pl.BlockSpec((B * S_tgt, proj_cols), lambda i: (0, 0))

    kernel = functools.partial(
        _fused_kernel, B=B, S_src=S_src, S_tgt=S_tgt,
        has_tgt_mask=has_tgt_mask, has_mem_mask=has_mem_mask, WL=WL, VL=VL)

    logits = pl.pallas_call(
        kernel,
        out_shape=jax.ShapeDtypeStruct((B * S_tgt, proj_cols), jnp.float32),
        grid=(1,),
        in_specs=in_specs,
        out_specs=out_specs,
        compiler_params=pltpu.CompilerParams(dimension_semantics=("arbitrary",)),
    )(*inputs)

    return logits.reshape(B, S_tgt, proj_cols)[:, :, :vocab_size_en]


# ------------------------------- parameter init --------------------------------

def sinusoidal_positional_encoding(max_len, d):
    pos = jnp.arange(max_len, dtype=jnp.float32)[:, None]
    i = jnp.arange(d // 2, dtype=jnp.float32)[None, :]
    angle = pos / jnp.power(10000.0, 2.0 * i / d)
    pe = jnp.zeros((max_len, d), jnp.float32)
    pe = pe.at[:, 0::2].set(jnp.sin(angle))
    pe = pe.at[:, 1::2].set(jnp.cos(angle))
    return pe


def init_params(key, vocab_size_fr, vocab_size_en, max_len):
    WL, w_rows, VL, v_rows, lanes, proj_cols = make_layouts(vocab_size_en)

    # TODO(synk): the module's custom `Embedding(embedding_dim)` is shared between
    # src and tgt; single table sized to the larger vocab, rows padded to 8.
    shared_vocab = max(vocab_size_fr, vocab_size_en)
    v_emb = _round_up(shared_vocab, 8)

    names = list(WL.keys())
    keys = jax.random.split(key, len(names) + 1)

    w_slab = jnp.zeros((w_rows, lanes), jnp.float32)
    for i, name in enumerate(names):
        off, rows, cols = WL[name]
        true_cols = vocab_size_en if name == "proj" else cols
        w = 0.02 * jax.random.normal(keys[i], (rows, true_cols), jnp.float32)
        w_slab = w_slab.at[off:off + rows, 0:true_cols].set(w)
    w_slab = w_slab.astype(jnp.bfloat16)        # bf16 MXU inputs (f32 accumulation)

    vec_slab = jnp.zeros((v_rows, lanes), jnp.float32)
    for name, (row, cols) in VL.items():
        if name.endswith("_g"):                 # LayerNorm gammas = 1, everything else 0
            vec_slab = vec_slab.at[row, 0:cols].set(jnp.ones((cols,), jnp.float32))

    embed = jax.random.normal(keys[-1], (v_emb, D_MODEL), jnp.float32)
    pos_enc = sinusoidal_positional_encoding(max_len, D_MODEL)

    return {"embed": embed, "pos_enc": pos_enc,
            "w_slab": w_slab, "vec_slab": vec_slab}


# ------------------------------------ main --------------------------------------

if __name__ == "__main__":
    B = 2
    S_SRC = 8
    S_TGT = 8
    VOCAB_FR = 50
    VOCAB_EN = 48
    MAX_LEN = 16

    key = jax.random.PRNGKey(0)
    k_param, k_src, k_tgt = jax.random.split(key, 3)

    params = init_params(k_param, VOCAB_FR, VOCAB_EN, MAX_LEN)
    src_ids = jax.random.randint(k_src, (B, S_SRC), 0, VOCAB_FR, dtype=jnp.int32)
    tgt_ids = jax.random.randint(k_tgt, (B, S_TGT), 0, VOCAB_EN, dtype=jnp.int32)

    # PyTorch-style additive causal mask for decoder self-attention.
    causal = jnp.triu(jnp.full((S_TGT, S_TGT), NEG_INF, jnp.float32), k=1)

    fwd = jax.jit(functools.partial(transformer_forward, vocab_size_en=VOCAB_EN))
    logits = fwd(params, src_ids, tgt_ids, tgt_mask=causal, memory_mask=None)
    jax.block_until_ready(logits)

    assert logits.shape == (B, S_TGT, VOCAB_EN)
    assert bool(jnp.all(jnp.isfinite(logits)))
    print("KERNEL_OK")
</pallas_src>

<mosaic_0001>
module attributes {stable_mosaic.version = 11 : i64} {
  func.func @_fused_kernel(%arg0: i32, %arg1: memref<16x1xi32, #tpu.memory_space<vmem>>, %arg2: memref<16x1xi32, #tpu.memory_space<vmem>>, %arg3: memref<16x16xf32, #tpu.memory_space<vmem>>, %arg4: memref<56x64xf32, #tpu.memory_space<vmem>>, %arg5: memref<16x64xf32, #tpu.memory_space<vmem>>, %arg6: memref<1152x256xbf16, #tpu.memory_space<vmem>>, %arg7: memref<24x256xf32, #tpu.memory_space<vmem>>, %arg8: memref<16x128xf32, #tpu.memory_space<vmem>>) attributes {dimension_semantics = [#tpu.dimension_semantics<arbitrary>], iteration_bounds = array<i64: 1>, scalar_prefetch = 0 : i64, scratch_operands = 0 : i64, tpu.core_type = #tpu.core_type<tc>, window_params = [{pipeline_mode = #tpu.pipeline_mode<synchronous>, transform_indices = @transform_0, window_bounds = array<i64: 16, 1>}, {pipeline_mode = #tpu.pipeline_mode<synchronous>, transform_indices = @transform_1, window_bounds = array<i64: 16, 1>}, {pipeline_mode = #tpu.pipeline_mode<synchronous>, transform_indices = @transform_2, window_bounds = array<i64: 16, 16>}, {pipeline_mode = #tpu.pipeline_mode<synchronous>, transform_indices = @transform_3, window_bounds = array<i64: 56, 64>}, {pipeline_mode = #tpu.pipeline_mode<synchronous>, transform_indices = @transform_4, window_bounds = array<i64: 16, 64>}, {pipeline_mode = #tpu.pipeline_mode<synchronous>, transform_indices = @transform_5, window_bounds = array<i64: 1152, 256>}, {pipeline_mode = #tpu.pipeline_mode<synchronous>, transform_indices = @transform_6, window_bounds = array<i64: 24, 256>}, {pipeline_mode = #tpu.pipeline_mode<synchronous>, transform_indices = @transform_7, window_bounds = array<i64: 16, 128>}]} {
    %c0 = arith.constant 0 : index
    %c0_0 = arith.constant 0 : index
    %0 = vector.load %arg1[%c0, %c0_0] : memref<16x1xi32, #tpu.memory_space<vmem>>, vector<16x1xi32>
    %1 = tpu.iota {dimensions = array<i32: 1>} : vector<16x56xi32>
    %2 = vector.broadcast %0 : vector<16x1xi32> to vector<16x56xi32>
    %3 = arith.cmpi eq, %1, %2 : vector<16x56xi32>
    %4 = arith.extui %3 : vector<16x56xi1> to vector<16x56xi32>
    %5 = arith.sitofp %4 : vector<16x56xi32> to vector<16x56xf32>
    %c0_1 = arith.constant 0 : index
    %c0_2 = arith.constant 0 : index
    %6 = vector.load %arg4[%c0_1, %c0_2] : memref<56x64xf32, #tpu.memory_space<vmem>>, vector<56x64xf32>
    %cst = arith.constant dense<0.000000e+00> : vector<16x64xf32>
    %7 = tpu.matmul %5, %6, %cst {dimension_numbers = #tpu.dot_dimension_numbers<[1], [0], [0], [1], [0, 0, 1, 1], [], []>} : vector<16x56xf32>, vector<56x64xf32>, vector<16x64xf32> -> vector<16x64xf32>
    %c0_3 = arith.constant 0 : index
    %c0_4 = arith.constant 0 : index
    %8 = vector.load %arg5[%c0_3, %c0_4] : memref<16x64xf32, #tpu.memory_space<vmem>>, vector<8x64xf32>
    %9 = tpu.concatenate %8, %8 in 0 : vector<8x64xf32>, vector<8x64xf32> -> vector<16x64xf32>
    %10 = arith.addf %7, %9 : vector<16x64xf32>
    %11 = tpu.iota {dimensions = array<i32: 0>} : vector<16x16xi32>
    %c8_i32 = arith.constant 8 : i32
    %12 = vector.broadcast %c8_i32 : i32 to vector<16x16xi32>
    %13 = arith.divsi %11, %12 : vector<16x16xi32>
    %14 = tpu.iota {dimensions = array<i32: 1>} : vector<16x16xi32>
    %c8_i32_5 = arith.constant 8 : i32
    %15 = vector.broadcast %c8_i32_5 : i32 to vector<16x16xi32>
    %16 = arith.divsi %14, %15 : vector<16x16xi32>
    %17 = arith.cmpi eq, %13, %16 : vector<16x16xi32>
    %cst_6 = arith.constant 0.000000e+00 : f32
    %cst_7 = arith.constant -1.000000e+09 : f32
    %18 = vector.broadcast %cst_6 : f32 to vector<16x16xf32>
    %19 = vector.broadcast %cst_7 : f32 to vector<16x16xf32>
    %20 = arith.select %17, %18, %19 : vector<16x16xi1>, vector<16x16xf32>
    %c0_8 = arith.constant 0 : index
    %c0_9 = arith.constant 0 : index
    %21 = vector.load %arg7[%c0_8, %c0_9] : memref<24x256xf32, #tpu.memory_space<vmem>>, vector<1x64xf32>
    %c1 = arith.constant 1 : index
    %c0_10 = arith.constant 0 : index
    %22 = vector.load %arg7[%c1, %c0_10] : memref<24x256xf32, #tpu.memory_space<vmem>>, vector<1x64xf32>
    %cst_11 = arith.constant dense<0.000000e+00> : vector<16xf32>
    %23 = vector.multi_reduction <add>, %10, %cst_11 [1] : vector<16x64xf32> to vector<16xf32>
    %24 = vector.shape_cast %23 : vector<16xf32> to vector<16x1xf32>
    %cst_12 = arith.constant 6.400000e+01 : f32
    %25 = vector.broadcast %cst_12 : f32 to vector<16x1xf32>
    %26 = arith.divf %24, %25 : vector<16x1xf32>
    %27 = vector.broadcast %26 : vector<16x1xf32> to vector<16x64xf32>
    %28 = arith.subf %10, %27 : vector<16x64xf32>
    %29 = arith.mulf %28, %28 : vector<16x64xf32>
    %cst_13 = arith.constant dense<0.000000e+00> : vector<16xf32>
    %30 = vector.multi_reduction <add>, %29, %cst_13 [1] : vector<16x64xf32> to vector<16xf32>
    %31 = vector.shape_cast %30 : vector<16xf32> to vector<16x1xf32>
    %cst_14 = arith.constant 6.400000e+01 : f32
    %32 = vector.broadcast %cst_14 : f32 to vector<16x1xf32>
    %33 = arith.divf %31, %32 : vector<16x1xf32>
    %cst_15 = arith.constant 9.99999974E-6 : f32
    %34 = vector.broadcast %cst_15 : f32 to vector<16x1xf32>
    %35 = arith.addf %33, %34 : vector<16x1xf32>
    %36 = math.rsqrt %35 : vector<16x1xf32>
    %37 = vector.broadcast %36 : vector<16x1xf32> to vector<16x64xf32>
    %38 = arith.mulf %28, %37 : vector<16x64xf32>
    %39 = vector.broadcast %21 : vector<1x64xf32> to vector<16x64xf32>
    %40 = arith.mulf %38, %39 : vector<16x64xf32>
    %41 = vector.broadcast %22 : vector<1x64xf32> to vector<16x64xf32>
    %42 = arith.addf %40, %41 : vector<16x64xf32>
    %43 = arith.truncf %42 : vector<16x64xf32> to vector<16x64xbf16>
    %c0_16 = arith.constant 0 : index
    %c0_17 = arith.constant 0 : index
    %44 = vector.load %arg6[%c0_16, %c0_17] : memref<1152x256xbf16, #tpu.memory_space<vmem>>, vector<64x192xbf16>
    %cst_18 = arith.constant dense<0.000000e+00> : vector<16x192xf32>
    %45 = tpu.matmul %43, %44, %cst_18 {dimension_numbers = #tpu.dot_dimension_numbers<[1], [0], [0], [1], [0, 0, 1, 1], [], []>} : vector<16x64xbf16>, vector<64x192xbf16>, vector<16x192xf32> -> vector<16x192xf32>
    %c2 = arith.constant 2 : index
    %c0_19 = arith.constant 0 : index
    %46 = vector.load %arg7[%c2, %c0_19] : memref<24x256xf32, #tpu.memory_space<vmem>>, vector<1x192xf32>
    %47 = vector.broadcast %46 : vector<1x192xf32> to vector<16x192xf32>
    %48 = arith.addf %45, %47 : vector<16x192xf32>
    %49 = vector.extract_strided_slice %48 {offsets = [0, 0], sizes = [16, 64], strides = [1, 1]} : vector<16x192xf32> to vector<16x64xf32>
    %50 = vector.extract_strided_slice %48 {offsets = [0, 64], sizes = [16, 64], strides = [1, 1]} : vector<16x192xf32> to vector<16x64xf32>
    %51 = vector.extract_strided_slice %48 {offsets = [0, 128], sizes = [16, 64], strides = [1, 1]} : vector<16x192xf32> to vector<16x64xf32>
    %cst_20 = arith.constant 2.500000e-01 : f32
    %52 = vector.broadcast %cst_20 : f32 to vector<16x64xf32>
    %53 = arith.mulf %49, %52 : vector<16x64xf32>
    %54 = arith.truncf %53 : vector<16x64xf32> to vector<16x64xbf16>
    %55 = arith.truncf %50 : vector<16x64xf32> to vector<16x64xbf16>
    %56 = arith.truncf %51 : vector<16x64xf32> to vector<16x64xbf16>
    %cst_21 = arith.constant 0.000000e+00 : f32
    %57 = vector.broadcast %cst_21 : f32 to vector<16x64xf32>
    %58 = vector.extract_strided_slice %54 {offsets = [0, 0], sizes = [16, 16], strides = [1, 1]} : vector<16x64xbf16> to vector<16x16xbf16>
    %59 = vector.extract_strided_slice %55 {offsets = [0, 0], sizes = [16, 16], strides = [1, 1]} : vector<16x64xbf16> to vector<16x16xbf16>
    %cst_22 = arith.constant dense<0.000000e+00> : vector<16x16xf32>
    %60 = tpu.matmul %58, %59, %cst_22 {dimension_numbers = #tpu.dot_dimension_numbers<[1], [1], [0], [0], [0, 0, 1, 0], [], []>} : vector<16x16xbf16>, vector<16x16xbf16>, vector<16x16xf32> -> vector<16x16xf32>
    %61 = arith.addf %60, %20 : vector<16x16xf32>
    %cst_23 = arith.constant dense<0xFF800000> : vector<16xf32>
    %62 = vector.multi_reduction <maximumf>, %61, %cst_23 [1] : vector<16x16xf32> to vector<16xf32>
    %63 = vector.shape_cast %62 : vector<16xf32> to vector<16x1xf32>
    %64 = vector.broadcast %63 : vector<16x1xf32> to vector<16x16xf32>
    %65 = arith.subf %61, %64 : vector<16x16xf32>
    %66 = math.exp %65 : vector<16x16xf32>
    %cst_24 = arith.constant dense<0.000000e+00> : vector<16xf32>
    %67 = vector.multi_reduction <add>, %66, %cst_24 [1] : vector<16x16xf32> to vector<16xf32>
    %68 = vector.shape_cast %67 : vector<16xf32> to vector<16x1xf32>
    %69 = vector.broadcast %68 : vector<16x1xf32> to vector<16x16xf32>
    %70 = arith.divf %66, %69 : vector<16x16xf32>
    %71 = arith.truncf %70 : vector<16x16xf32> to vector<16x16xbf16>
    %72 = vector.extract_strided_slice %56 {offsets = [0, 0], sizes = [16, 16], strides = [1, 1]} : vector<16x64xbf16> to vector<16x16xbf16>
    %cst_25 = arith.constant dense<0.000000e+00> : vector<16x16xf32>
    %73 = tpu.matmul %71, %72, %cst_25 {dimension_numbers = #tpu.dot_dimension_numbers<[1], [0], [0], [1], [0, 0, 1, 1], [], []>} : vector<16x16xbf16>, vector<16x16xbf16>, vector<16x16xf32> -> vector<16x16xf32>
    %c64 = arith.constant 64 : index
    %c0_26 = arith.constant 0 : index
    %74 = vector.load %arg6[%c64, %c0_26] : memref<1152x256xbf16, #tpu.memory_space<vmem>>, vector<16x64xbf16>
    %75 = arith.truncf %73 : vector<16x16xf32> to vector<16x16xbf16>
    %cst_27 = arith.constant dense<0.000000e+00> : vector<16x64xf32>
    %76 = tpu.matmul %75, %74, %cst_27 {dimension_numbers = #tpu.dot_dimension_numbers<[1], [0], [0], [1], [0, 0, 1, 1], [], []>} : vector<16x16xbf16>, vector<16x64xbf16>, vector<16x64xf32> -> vector<16x64xf32>
    %77 = arith.addf %57, %76 : vector<16x64xf32>
    %78 = vector.extract_strided_slice %54 {offsets = [0, 16], sizes = [16, 16], strides = [1, 1]} : vector<16x64xbf16> to vector<16x16xbf16>
    %79 = vector.extract_strided_slice %55 {offsets = [0, 16], sizes = [16, 16], strides = [1, 1]} : vector<16x64xbf16> to vector<16x16xbf16>
    %cst_28 = arith.constant dense<0.000000e+00> : vector<16x16xf32>
    %80 = tpu.matmul %78, %79, %cst_28 {dimension_numbers = #tpu.dot_dimension_numbers<[1], [1], [0], [0], [0, 0, 1, 0], [], []>} : vector<16x16xbf16>, vector<16x16xbf16>, vector<16x16xf32> -> vector<16x16xf32>
    %81 = arith.addf %80, %20 : vector<16x16xf32>
    %cst_29 = arith.constant dense<0xFF800000> : vector<16xf32>
    %82 = vector.multi_reduction <maximumf>, %81, %cst_29 [1] : vector<16x16xf32> to vector<16xf32>
    %83 = vector.shape_cast %82 : vector<16xf32> to vector<16x1xf32>
    %84 = vector.broadcast %83 : vector<16x1xf32> to vector<16x16xf32>
    %85 = arith.subf %81, %84 : vector<16x16xf32>
    %86 = math.exp %85 : vector<16x16xf32>
    %cst_30 = arith.constant dense<0.000000e+00> : vector<16xf32>
    %87 = vector.multi_reduction <add>, %86, %cst_30 [1] : vector<16x16xf32> to vector<16xf32>
    %88 = vector.shape_cast %87 : vector<16xf32> to vector<16x1xf32>
    %89 = vector.broadcast %88 : vector<16x1xf32> to vector<16x16xf32>
    %90 = arith.divf %86, %89 : vector<16x16xf32>
    %91 = arith.truncf %90 : vector<16x16xf32> to vector<16x16xbf16>
    %92 = vector.extract_strided_slice %56 {offsets = [0, 16], sizes = [16, 16], strides = [1, 1]} : vector<16x64xbf16> to vector<16x16xbf16>
    %cst_31 = arith.constant dense<0.000000e+00> : vector<16x16xf32>
    %93 = tpu.matmul %91, %92, %cst_31 {dimension_numbers = #tpu.dot_dimension_numbers<[1], [0], [0], [1], [0, 0, 1, 1], [], []>} : vector<16x16xbf16>, vector<16x16xbf16>, vector<16x16xf32> -> vector<16x16xf32>
    %c80 = arith.constant 80 : index
    %c0_32 = arith.constant 0 : index
    %94 = vector.load %arg6[%c80, %c0_32] : memref<1152x256xbf16, #tpu.memory_space<vmem>>, vector<16x64xbf16>
    %95 = arith.truncf %93 : vector<16x16xf32> to vector<16x16xbf16>
    %cst_33 = arith.constant dense<0.000000e+00> : vector<16x64xf32>
    %96 = tpu.matmul %95, %94, %cst_33 {dimension_numbers = #tpu.dot_dimension_numbers<[1], [0], [0], [1], [0, 0, 1, 1], [], []>} : vector<16x16xbf16>, vector<16x64xbf16>, vector<16x64xf32> -> vector<16x64xf32>
    %97 = arith.addf %77, %96 : vector<16x64xf32>
    %98 = vector.extract_strided_slice %54 {offsets = [0, 32], sizes = [16, 16], strides = [1, 1]} : vector<16x64xbf16> to vector<16x16xbf16>
    %99 = vector.extract_strided_slice %55 {offsets = [0, 32], sizes = [16, 16], strides = [1, 1]} : vector<16x64xbf16> to vector<16x16xbf16>
    %cst_34 = arith.constant dense<0.000000e+00> : vector<16x16xf32>
    %100 = tpu.matmul %98, %99, %cst_34 {dimension_numbers = #tpu.dot_dimension_numbers<[1], [1], [0], [0], [0, 0, 1, 0], [], []>} : vector<16x16xbf16>, vector<16x16xbf16>, vector<16x16xf32> -> vector<16x16xf32>
    %101 = arith.addf %100, %20 : vector<16x16xf32>
    %cst_35 = arith.constant dense<0xFF800000> : vector<16xf32>
    %102 = vector.multi_reduction <maximumf>, %101, %cst_35 [1] : vector<16x16xf32> to vector<16xf32>
    %103 = vector.shape_cast %102 : vector<16xf32> to vector<16x1xf32>
    %104 = vector.broadcast %103 : vector<16x1xf32> to vector<16x16xf32>
    %105 = arith.subf %101, %104 : vector<16x16xf32>
    %106 = math.exp %105 : vector<16x16xf32>
    %cst_36 = arith.constant dense<0.000000e+00> : vector<16xf32>
    %107 = vector.multi_reduction <add>, %106, %cst_36 [1] : vector<16x16xf32> to vector<16xf32>
    %108 = vector.shape_cast %107 : vector<16xf32> to vector<16x1xf32>
    %109 = vector.broadcast %108 : vector<16x1xf32> to vector<16x16xf32>
    %110 = arith.divf %106, %109 : vector<16x16xf32>
    %111 = arith.truncf %110 : vector<16x16xf32> to vector<16x16xbf16>
    %112 = vector.extract_strided_slice %56 {offsets = [0, 32], sizes = [16, 16], strides = [1, 1]} : vector<16x64xbf16> to vector<16x16xbf16>
    %cst_37 = arith.constant dense<0.000000e+00> : vector<16x16xf32>
    %113 = tpu.matmul %111, %112, %cst_37 {dimension_numbers = #tpu.dot_dimension_numbers<[1], [0], [0], [1], [0, 0, 1, 1], [], []>} : vector<16x16xbf16>, vector<16x16xbf16>, vector<16x16xf32> -> vector<16x16xf32>
    %c96 = arith.constant 96 : index
    %c0_38 = arith.constant 0 : index
    %114 = vector.load %arg6[%c96, %c0_38] : memref<1152x256xbf16, #tpu.memory_space<vmem>>, vector<16x64xbf16>
    %115 = arith.truncf %113 : vector<16x16xf32> to vector<16x16xbf16>
    %cst_39 = arith.constant dense<0.000000e+00> : vector<16x64xf32>
    %116 = tpu.matmul %115, %114, %cst_39 {dimension_numbers = #tpu.dot_dimension_numbers<[1], [0], [0], [1], [0, 0, 1, 1], [], []>} : vector<16x16xbf16>, vector<16x64xbf16>, vector<16x64xf32> -> vector<16x64xf32>
    %117 = arith.addf %97, %116 : vector<16x64xf32>
    %118 = vector.extract_strided_slice %54 {offsets = [0, 48], sizes = [16, 16], strides = [1, 1]} : vector<16x64xbf16> to vector<16x16xbf16>
    %119 = vector.extract_strided_slice %55 {offsets = [0, 48], sizes = [16, 16], strides = [1, 1]} : vector<16x64xbf16> to vector<16x16xbf16>
    %cst_40 = arith.constant dense<0.000000e+00> : vector<16x16xf32>
    %120 = tpu.matmul %118, %119, %cst_40 {dimension_numbers = #tpu.dot_dimension_numbers<[1], [1], [0], [0], [0, 0, 1, 0], [], []>} : vector<16x16xbf16>, vector<16x16xbf16>, vector<16x16xf32> -> vector<16x16xf32>
    %121 = arith.addf %120, %20 : vector<16x16xf32>
    %cst_41 = arith.constant dense<0xFF800000> : vector<16xf32>
    %122 = vector.multi_reduction <maximumf>, %121, %cst_41 [1] : vector<16x16xf32> to vector<16xf32>
    %123 = vector.shape_cast %122 : vector<16xf32> to vector<16x1xf32>
    %124 = vector.broadcast %123 : vector<16x1xf32> to vector<16x16xf32>
    %125 = arith.subf %121, %124 : vector<16x16xf32>
    %126 = math.exp %125 : vector<16x16xf32>
    %cst_42 = arith.constant dense<0.000000e+00> : vector<16xf32>
    %127 = vector.multi_reduction <add>, %126, %cst_42 [1] : vector<16x16xf32> to vector<16xf32>
    %128 = vector.shape_cast %127 : vector<16xf32> to vector<16x1xf32>
    %129 = vector.broadcast %128 : vector<16x1xf32> to vector<16x16xf32>
    %130 = arith.divf %126, %129 : vector<16x16xf32>
    %131 = arith.truncf %130 : vector<16x16xf32> to vector<16x16xbf16>
    %132 = vector.extract_strided_slice %56 {offsets = [0, 48], sizes = [16, 16], strides = [1, 1]} : vector<16x64xbf16> to vector<16x16xbf16>
    %cst_43 = arith.constant dense<0.000000e+00> : vector<16x16xf32>
    %133 = tpu.matmul %131, %132, %cst_43 {dimension_numbers = #tpu.dot_dimension_numbers<[1], [0], [0], [1], [0, 0, 1, 1], [], []>} : vector<16x16xbf16>, vector<16x16xbf16>, vector<16x16xf32> -> vector<16x16xf32>
    %c112 = arith.constant 112 : index
    %c0_44 = arith.constant 0 : index
    %134 = vector.load %arg6[%c112, %c0_44] : memref<1152x256xbf16, #tpu.memory_space<vmem>>, vector<16x64xbf16>
    %135 = arith.truncf %133 : vector<16x16xf32> to vector<16x16xbf16>
    %cst_45 = arith.constant dense<0.000000e+00> : vector<16x64xf32>
    %136 = tpu.matmul %135, %134, %cst_45 {dimension_numbers = #tpu.dot_dimension_numbers<[1], [0], [0], [1], [0, 0, 1, 1], [], []>} : vector<16x16xbf16>, vector<16x64xbf16>, vector<16x64xf32> -> vector<16x64xf32>
    %137 = arith.addf %117, %136 : vector<16x64xf32>
    %c3 = arith.constant 3 : index
    %c0_46 = arith.constant 0 : index
    %138 = vector.load %arg7[%c3, %c0_46] : memref<24x256xf32, #tpu.memory_space<vmem>>, vector<1x64xf32>
    %139 = vector.broadcast %138 : vector<1x64xf32> to vector<16x64xf32>
    %140 = arith.addf %137, %139 : vector<16x64xf32>
    %141 = arith.addf %10, %140 : vector<16x64xf32>
    %c4 = arith.constant 4 : index
    %c0_47 = arith.constant 0 : index
    %142 = vector.load %arg7[%c4, %c0_47] : memref<24x256xf32, #tpu.memory_space<vmem>>, vector<1x64xf32>
    %c5 = arith.constant 5 : index
    %c0_48 = arith.constant 0 : index
    %143 = vector.load %arg7[%c5, %c0_48] : memref<24x256xf32, #tpu.memory_space<vmem>>, vector<1x64xf32>
    %cst_49 = arith.constant dense<0.000000e+00> : vector<16xf32>
    %144 = vector.multi_reduction <add>, %141, %cst_49 [1] : vector<16x64xf32> to vector<16xf32>
    %145 = vector.shape_cast %144 : vector<16xf32> to vector<16x1xf32>
    %cst_50 = arith.constant 6.400000e+01 : f32
    %146 = vector.broadcast %cst_50 : f32 to vector<16x1xf32>
    %147 = arith.divf %145, %146 : vector<16x1xf32>
    %148 = vector.broadcast %147 : vector<16x1xf32> to vector<16x64xf32>
    %149 = arith.subf %141, %148 : vector<16x64xf32>
    %150 = arith.mulf %149, %149 : vector<16x64xf32>
    %cst_51 = arith.constant dense<0.000000e+00> : vector<16xf32>
    %151 = vector.multi_reduction <add>, %150, %cst_51 [1] : vector<16x64xf32> to vector<16xf32>
    %152 = vector.shape_cast %151 : vector<16xf32> to vector<16x1xf32>
    %cst_52 = arith.constant 6.400000e+01 : f32
    %153 = vector.broadcast %cst_52 : f32 to vector<16x1xf32>
    %154 = arith.divf %152, %153 : vector<16x1xf32>
    %cst_53 = arith.constant 9.99999974E-6 : f32
    %155 = vector.broadcast %cst_53 : f32 to vector<16x1xf32>
    %156 = arith.addf %154, %155 : vector<16x1xf32>
    %157 = math.rsqrt %156 : vector<16x1xf32>
    %158 = vector.broadcast %157 : vector<16x1xf32> to vector<16x64xf32>
    %159 = arith.mulf %149, %158 : vector<16x64xf32>
    %160 = vector.broadcast %142 : vector<1x64xf32> to vector<16x64xf32>
    %161 = arith.mulf %159, %160 : vector<16x64xf32>
    %162 = vector.broadcast %143 : vector<1x64xf32> to vector<16x64xf32>
    %163 = arith.addf %161, %162 : vector<16x64xf32>
    %164 = arith.truncf %163 : vector<16x64xf32> to vector<16x64xbf16>
    %c128 = arith.constant 128 : index
    %c0_54 = arith.constant 0 : index
    %165 = vector.load %arg6[%c128, %c0_54] : memref<1152x256xbf16, #tpu.memory_space<vmem>>, vector<64x256xbf16>
    %cst_55 = arith.constant dense<0.000000e+00> : vector<16x256xf32>
    %166 = tpu.matmul %164, %165, %cst_55 {dimension_numbers = #tpu.dot_dimension_numbers<[1], [0], [0], [1], [0, 0, 1, 1], [], []>} : vector<16x64xbf16>, vector<64x256xbf16>, vector<16x256xf32> -> vector<16x256xf32>
    %c6 = arith.constant 6 : index
    %c0_56 = arith.constant 0 : index
    %167 = vector.load %arg7[%c6, %c0_56] : memref<24x256xf32, #tpu.memory_space<vmem>>, vector<1x256xf32>
    %168 = vector.broadcast %167 : vector<1x256xf32> to vector<16x256xf32>
    %169 = arith.addf %166, %168 : vector<16x256xf32>
    %cst_57 = arith.constant 0.000000e+00 : f32
    %170 = vector.broadcast %cst_57 : f32 to vector<16x256xf32>
    %171 = arith.maximumf %169, %170 : vector<16x256xf32>
    %172 = arith.truncf %171 : vector<16x256xf32> to vector<16x256xbf16>
    %c192 = arith.constant 192 : index
    %c0_58 = arith.constant 0 : index
    %173 = vector.load %arg6[%c192, %c0_58] : memref<1152x256xbf16, #tpu.memory_space<vmem>>, vector<256x64xbf16>
    %cst_59 = arith.constant dense<0.000000e+00> : vector<16x64xf32>
    %174 = tpu.matmul %172, %173, %cst_59 {dimension_numbers = #tpu.dot_dimension_numbers<[1], [0], [0], [1], [0, 0, 1, 1], [], []>} : vector<16x256xbf16>, vector<256x64xbf16>, vector<16x64xf32> -> vector<16x64xf32>
    %c7 = arith.constant 7 : index
    %c0_60 = arith.constant 0 : index
    %175 = vector.load %arg7[%c7, %c0_60] : memref<24x256xf32, #tpu.memory_space<vmem>>, vector<1x64xf32>
    %176 = vector.broadcast %175 : vector<1x64xf32> to vector<16x64xf32>
    %177 = arith.addf %174, %176 : vector<16x64xf32>
    %178 = arith.addf %141, %177 : vector<16x64xf32>
    %c0_61 = arith.constant 0 : index
    %c0_62 = arith.constant 0 : index
    %179 = vector.load %arg2[%c0_61, %c0_62] : memref<16x1xi32, #tpu.memory_space<vmem>>, vector<16x1xi32>
    %180 = tpu.iota {dimensions = array<i32: 1>} : vector<16x56xi32>
    %181 = vector.broadcast %179 : vector<16x1xi32> to vector<16x56xi32>
    %182 = arith.cmpi eq, %180, %181 : vector<16x56xi32>
    %183 = arith.extui %182 : vector<16x56xi1> to vector<16x56xi32>
    %184 = arith.sitofp %183 : vector<16x56xi32> to vector<16x56xf32>
    %c0_63 = arith.constant 0 : index
    %c0_64 = arith.constant 0 : index
    %185 = vector.load %arg4[%c0_63, %c0_64] : memref<56x64xf32, #tpu.memory_space<vmem>>, vector<56x64xf32>
    %cst_65 = arith.constant dense<0.000000e+00> : vector<16x64xf32>
    %186 = tpu.matmul %184, %185, %cst_65 {dimension_numbers = #tpu.dot_dimension_numbers<[1], [0], [0], [1], [0, 0, 1, 1], [], []>} : vector<16x56xf32>, vector<56x64xf32>, vector<16x64xf32> -> vector<16x64xf32>
    %c0_66 = arith.constant 0 : index
    %c0_67 = arith.constant 0 : index
    %187 = vector.load %arg5[%c0_66, %c0_67] : memref<16x64xf32, #tpu.memory_space<vmem>>, vector<8x64xf32>
    %188 = tpu.concatenate %187, %187 in 0 : vector<8x64xf32>, vector<8x64xf32> -> vector<16x64xf32>
    %189 = arith.addf %186, %188 : vector<16x64xf32>
    %190 = tpu.iota {dimensions = array<i32: 0>} : vector<16x16xi32>
    %c8_i32_68 = arith.constant 8 : i32
    %191 = vector.broadcast %c8_i32_68 : i32 to vector<16x16xi32>
    %192 = arith.divsi %190, %191 : vector<16x16xi32>
    %193 = tpu.iota {dimensions = array<i32: 1>} : vector<16x16xi32>
    %c8_i32_69 = arith.constant 8 : i32
    %194 = vector.broadcast %c8_i32_69 : i32 to vector<16x16xi32>
    %195 = arith.divsi %193, %194 : vector<16x16xi32>
    %196 = arith.cmpi eq, %192, %195 : vector<16x16xi32>
    %cst_70 = arith.constant 0.000000e+00 : f32
    %cst_71 = arith.constant -1.000000e+09 : f32
    %197 = vector.broadcast %cst_70 : f32 to vector<16x16xf32>
    %198 = vector.broadcast %cst_71 : f32 to vector<16x16xf32>
    %199 = arith.select %196, %197, %198 : vector<16x16xi1>, vector<16x16xf32>
    %c0_72 = arith.constant 0 : index
    %c0_73 = arith.constant 0 : index
    %200 = vector.load %arg3[%c0_72, %c0_73] : memref<16x16xf32, #tpu.memory_space<vmem>>, vector<16x16xf32>
    %201 = arith.addf %199, %200 : vector<16x16xf32>
    %202 = tpu.iota {dimensions = array<i32: 0>} : vector<16x16xi32>
    %c8_i32_74 = arith.constant 8 : i32
    %203 = vector.broadcast %c8_i32_74 : i32 to vector<16x16xi32>
    %204 = arith.divsi %202, %203 : vector<16x16xi32>
    %205 = tpu.iota {dimensions = array<i32: 1>} : vector<16x16xi32>
    %c8_i32_75 = arith.constant 8 : i32
    %206 = vector.broadcast %c8_i32_75 : i32 to vector<16x16xi32>
    %207 = arith.divsi %205, %206 : vector<16x16xi32>
    %208 = arith.cmpi eq, %204, %207 : vector<16x16xi32>
    %cst_76 = arith.constant 0.000000e+00 : f32
    %cst_77 = arith.constant -1.000000e+09 : f32
    %209 = vector.broadcast %cst_76 : f32 to vector<16x16xf32>
    %210 = vector.broadcast %cst_77 : f32 to vector<16x16xf32>
    %211 = arith.select %208, %209, %210 : vector<16x16xi1>, vector<16x16xf32>
    %c8 = arith.constant 8 : index
    %c0_78 = arith.constant 0 : index
    %212 = vector.load %arg7[%c8, %c0_78] : memref<24x256xf32, #tpu.memory_space<vmem>>, vector<1x64xf32>
    %c9 = arith.constant 9 : index
    %c0_79 = arith.constant 0 : index
    %213 = vector.load %arg7[%c9, %c0_79] : memref<24x256xf32, #tpu.memory_space<vmem>>, vector<1x64xf32>
    %cst_80 = arith.constant dense<0.000000e+00> : vector<16xf32>
    %214 = vector.multi_reduction <add>, %189, %cst_80 [1] : vector<16x64xf32> to vector<16xf32>
    %215 = vector.shape_cast %214 : vector<16xf32> to vector<16x1xf32>
    %cst_81 = arith.constant 6.400000e+01 : f32
    %216 = vector.broadcast %cst_81 : f32 to vector<16x1xf32>
    %217 = arith.divf %215, %216 : vector<16x1xf32>
    %218 = vector.broadcast %217 : vector<16x1xf32> to vector<16x64xf32>
    %219 = arith.subf %189, %218 : vector<16x64xf32>
    %220 = arith.mulf %219, %219 : vector<16x64xf32>
    %cst_82 = arith.constant dense<0.000000e+00> : vector<16xf32>
    %221 = vector.multi_reduction <add>, %220, %cst_82 [1] : vector<16x64xf32> to vector<16xf32>
    %222 = vector.shape_cast %221 : vector<16xf32> to vector<16x1xf32>
    %cst_83 = arith.constant 6.400000e+01 : f32
    %223 = vector.broadcast %cst_83 : f32 to vector<16x1xf32>
    %224 = arith.divf %222, %223 : vector<16x1xf32>
    %cst_84 = arith.constant 9.99999974E-6 : f32
    %225 = vector.broadcast %cst_84 : f32 to vector<16x1xf32>
    %226 = arith.addf %224, %225 : vector<16x1xf32>
    %227 = math.rsqrt %226 : vector<16x1xf32>
    %228 = vector.broadcast %227 : vector<16x1xf32> to vector<16x64xf32>
    %229 = arith.mulf %219, %228 : vector<16x64xf32>
    %230 = vector.broadcast %212 : vector<1x64xf32> to vector<16x64xf32>
    %231 = arith.mulf %229, %230 : vector<16x64xf32>
    %232 = vector.broadcast %213 : vector<1x64xf32> to vector<16x64xf32>
    %233 = arith.addf %231, %232 : vector<16x64xf32>
    %234 = arith.truncf %233 : vector<16x64xf32> to vector<16x64xbf16>
    %c448 = arith.constant 448 : index
    %c0_85 = arith.constant 0 : index
    %235 = vector.load %arg6[%c448, %c0_85] : memref<1152x256xbf16, #tpu.memory_space<vmem>>, vector<64x192xbf16>
    %cst_86 = arith.constant dense<0.000000e+00> : vector<16x192xf32>
    %236 = tpu.matmul %234, %235, %cst_86 {dimension_numbers = #tpu.dot_dimension_numbers<[1], [0], [0], [1], [0, 0, 1, 1], [], []>} : vector<16x64xbf16>, vector<64x192xbf16>, vector<16x192xf32> -> vector<16x192xf32>
    %c10 = arith.constant 10 : index
    %c0_87 = arith.constant 0 : index
    %237 = vector.load %arg7[%c10, %c0_87] : memref<24x256xf32, #tpu.memory_space<vmem>>, vector<1x192xf32>
    %238 = vector.broadcast %237 : vector<1x192xf32> to vector<16x192xf32>
    %239 = arith.addf %236, %238 : vector<16x192xf32>
    %240 = vector.extract_strided_slice %239 {offsets = [0, 0], sizes = [16, 64], strides = [1, 1]} : vector<16x192xf32> to vector<16x64xf32>
    %241 = vector.extract_strided_slice %239 {offsets = [0, 64], sizes = [16, 64], strides = [1, 1]} : vector<16x192xf32> to vector<16x64xf32>
    %242 = vector.extract_strided_slice %239 {offsets = [0, 128], sizes = [16, 64], strides = [1, 1]} : vector<16x192xf32> to vector<16x64xf32>
    %cst_88 = arith.constant 2.500000e-01 : f32
    %243 = vector.broadcast %cst_88 : f32 to vector<16x64xf32>
    %244 = arith.mulf %240, %243 : vector<16x64xf32>
    %245 = arith.truncf %244 : vector<16x64xf32> to vector<16x64xbf16>
    %246 = arith.truncf %241 : vector<16x64xf32> to vector<16x64xbf16>
    %247 = arith.truncf %242 : vector<16x64xf32> to vector<16x64xbf16>
    %cst_89 = arith.constant 0.000000e+00 : f32
    %248 = vector.broadcast %cst_89 : f32 to vector<16x64xf32>
    %249 = vector.extract_strided_slice %245 {offsets = [0, 0], sizes = [16, 16], strides = [1, 1]} : vector<16x64xbf16> to vector<16x16xbf16>
    %250 = vector.extract_strided_slice %246 {offsets = [0, 0], sizes = [16, 16], strides = [1, 1]} : vector<16x64xbf16> to vector<16x16xbf16>
    %cst_90 = arith.constant dense<0.000000e+00> : vector<16x16xf32>
    %251 = tpu.matmul %249, %250, %cst_90 {dimension_numbers = #tpu.dot_dimension_numbers<[1], [1], [0], [0], [0, 0, 1, 0], [], []>} : vector<16x16xbf16>, vector<16x16xbf16>, vector<16x16xf32> -> vector<16x16xf32>
    %252 = arith.addf %251, %201 : vector<16x16xf32>
    %cst_91 = arith.constant dense<0xFF800000> : vector<16xf32>
    %253 = vector.multi_reduction <maximumf>, %252, %cst_91 [1] : vector<16x16xf32> to vector<16xf32>
    %254 = vector.shape_cast %253 : vector<16xf32> to vector<16x1xf32>
    %255 = vector.broadcast %254 : vector<16x1xf32> to vector<16x16xf32>
    %256 = arith.subf %252, %255 : vector<16x16xf32>
    %257 = math.exp %256 : vector<16x16xf32>
    %cst_92 = arith.constant dense<0.000000e+00> : vector<16xf32>
    %258 = vector.multi_reduction <add>, %257, %cst_92 [1] : vector<16x16xf32> to vector<16xf32>
    %259 = vector.shape_cast %258 : vector<16xf32> to vector<16x1xf32>
    %260 = vector.broadcast %259 : vector<16x1xf32> to vector<16x16xf32>
    %261 = arith.divf %257, %260 : vector<16x16xf32>
    %262 = arith.truncf %261 : vector<16x16xf32> to vector<16x16xbf16>
    %263 = vector.extract_strided_slice %247 {offsets = [0, 0], sizes = [16, 16], strides = [1, 1]} : vector<16x64xbf16> to vector<16x16xbf16>
    %cst_93 = arith.constant dense<0.000000e+00> : vector<16x16xf32>
    %264 = tpu.matmul %262, %263, %cst_93 {dimension_numbers = #tpu.dot_dimension_numbers<[1], [0], [0], [1], [0, 0, 1, 1], [], []>} : vector<16x16xbf16>, vector<16x16xbf16>, vector<16x16xf32> -> vector<16x16xf32>
    %c512 = arith.constant 512 : index
    %c0_94 = arith.constant 0 : index
    %265 = vector.load %arg6[%c512, %c0_94] : memref<1152x256xbf16, #tpu.memory_space<vmem>>, vector<16x64xbf16>
    %266 = arith.truncf %264 : vector<16x16xf32> to vector<16x16xbf16>
    %cst_95 = arith.constant dense<0.000000e+00> : vector<16x64xf32>
    %267 = tpu.matmul %266, %265, %cst_95 {dimension_numbers = #tpu.dot_dimension_numbers<[1], [0], [0], [1], [0, 0, 1, 1], [], []>} : vector<16x16xbf16>, vector<16x64xbf16>, vector<16x64xf32> -> vector<16x64xf32>
    %268 = arith.addf %248, %267 : vector<16x64xf32>
    %269 = vector.extract_strided_slice %245 {offsets = [0, 16], sizes = [16, 16], strides = [1, 1]} : vector<16x64xbf16> to vector<16x16xbf16>
    %270 = vector.extract_strided_slice %246 {offsets = [0, 16], sizes = [16, 16], strides = [1, 1]} : vector<16x64xbf16> to vector<16x16xbf16>
    %cst_96 = arith.constant dense<0.000000e+00> : vector<16x16xf32>
    %271 = tpu.matmul %269, %270, %cst_96 {dimension_numbers = #tpu.dot_dimension_numbers<[1], [1], [0], [0], [0, 0, 1, 0], [], []>} : vector<16x16xbf16>, vector<16x16xbf16>, vector<16x16xf32> -> vector<16x16xf32>
    %272 = arith.addf %271, %201 : vector<16x16xf32>
    %cst_97 = arith.constant dense<0xFF800000> : vector<16xf32>
    %273 = vector.multi_reduction <maximumf>, %272, %cst_97 [1] : vector<16x16xf32> to vector<16xf32>
    %274 = vector.shape_cast %273 : vector<16xf32> to vector<16x1xf32>
    %275 = vector.broadcast %274 : vector<16x1xf32> to vector<16x16xf32>
    %276 = arith.subf %272, %275 : vector<16x16xf32>
    %277 = math.exp %276 : vector<16x16xf32>
    %cst_98 = arith.constant dense<0.000000e+00> : vector<16xf32>
    %278 = vector.multi_reduction <add>, %277, %cst_98 [1] : vector<16x16xf32> to vector<16xf32>
    %279 = vector.shape_cast %278 : vector<16xf32> to vector<16x1xf32>
    %280 = vector.broadcast %279 : vector<16x1xf32> to vector<16x16xf32>
    %281 = arith.divf %277, %280 : vector<16x16xf32>
    %282 = arith.truncf %281 : vector<16x16xf32> to vector<16x16xbf16>
    %283 = vector.extract_strided_slice %247 {offsets = [0, 16], sizes = [16, 16], strides = [1, 1]} : vector<16x64xbf16> to vector<16x16xbf16>
    %cst_99 = arith.constant dense<0.000000e+00> : vector<16x16xf32>
    %284 = tpu.matmul %282, %283, %cst_99 {dimension_numbers = #tpu.dot_dimension_numbers<[1], [0], [0], [1], [0, 0, 1, 1], [], []>} : vector<16x16xbf16>, vector<16x16xbf16>, vector<16x16xf32> -> vector<16x16xf32>
    %c528 = arith.constant 528 : index
    %c0_100 = arith.constant 0 : index
    %285 = vector.load %arg6[%c528, %c0_100] : memref<1152x256xbf16, #tpu.memory_space<vmem>>, vector<16x64xbf16>
    %286 = arith.truncf %284 : vector<16x16xf32> to vector<16x16xbf16>
    %cst_101 = arith.constant dense<0.000000e+00> : vector<16x64xf32>
    %287 = tpu.matmul %286, %285, %cst_101 {dimension_numbers = #tpu.dot_dimension_numbers<[1], [0], [0], [1], [0, 0, 1, 1], [], []>} : vector<16x16xbf16>, vector<16x64xbf16>, vector<16x64xf32> -> vector<16x64xf32>
    %288 = arith.addf %268, %287 : vector<16x64xf32>
    %289 = vector.extract_strided_slice %245 {offsets = [0, 32], sizes = [16, 16], strides = [1, 1]} : vector<16x64xbf16> to vector<16x16xbf16>
    %290 = vector.extract_strided_slice %246 {offsets = [0, 32], sizes = [16, 16], strides = [1, 1]} : vector<16x64xbf16> to vector<16x16xbf16>
    %cst_102 = arith.constant dense<0.000000e+00> : vector<16x16xf32>
    %291 = tpu.matmul %289, %290, %cst_102 {dimension_numbers = #tpu.dot_dimension_numbers<[1], [1], [0], [0], [0, 0, 1, 0], [], []>} : vector<16x16xbf16>, vector<16x16xbf16>, vector<16x16xf32> -> vector<16x16xf32>
    %292 = arith.addf %291, %201 : vector<16x16xf32>
    %cst_103 = arith.constant dense<0xFF800000> : vector<16xf32>
    %293 = vector.multi_reduction <maximumf>, %292, %cst_103 [1] : vector<16x16xf32> to vector<16xf32>
    %294 = vector.shape_cast %293 : vector<16xf32> to vector<16x1xf32>
    %295 = vector.broadcast %294 : vector<16x1xf32> to vector<16x16xf32>
    %296 = arith.subf %292, %295 : vector<16x16xf32>
    %297 = math.exp %296 : vector<16x16xf32>
    %cst_104 = arith.constant dense<0.000000e+00> : vector<16xf32>
    %298 = vector.multi_reduction <add>, %297, %cst_104 [1] : vector<16x16xf32> to vector<16xf32>
    %299 = vector.shape_cast %298 : vector<16xf32> to vector<16x1xf32>
    %300 = vector.broadcast %299 : vector<16x1xf32> to vector<16x16xf32>
    %301 = arith.divf %297, %300 : vector<16x16xf32>
    %302 = arith.truncf %301 : vector<16x16xf32> to vector<16x16xbf16>
    %303 = vector.extract_strided_slice %247 {offsets = [0, 32], sizes = [16, 16], strides = [1, 1]} : vector<16x64xbf16> to vector<16x16xbf16>
    %cst_105 = arith.constant dense<0.000000e+00> : vector<16x16xf32>
    %304 = tpu.matmul %302, %303, %cst_105 {dimension_numbers = #tpu.dot_dimension_numbers<[1], [0], [0], [1], [0, 0, 1, 1], [], []>} : vector<16x16xbf16>, vector<16x16xbf16>, vector<16x16xf32> -> vector<16x16xf32>
    %c544 = arith.constant 544 : index
    %c0_106 = arith.constant 0 : index
    %305 = vector.load %arg6[%c544, %c0_106] : memref<1152x256xbf16, #tpu.memory_space<vmem>>, vector<16x64xbf16>
    %306 = arith.truncf %304 : vector<16x16xf32> to vector<16x16xbf16>
    %cst_107 = arith.constant dense<0.000000e+00> : vector<16x64xf32>
    %307 = tpu.matmul %306, %305, %cst_107 {dimension_numbers = #tpu.dot_dimension_numbers<[1], [0], [0], [1], [0, 0, 1, 1], [], []>} : vector<16x16xbf16>, vector<16x64xbf16>, vector<16x64xf32> -> vector<16x64xf32>
    %308 = arith.addf %288, %307 : vector<16x64xf32>
    %309 = vector.extract_strided_slice %245 {offsets = [0, 48], sizes = [16, 16], strides = [1, 1]} : vector<16x64xbf16> to vector<16x16xbf16>
    %310 = vector.extract_strided_slice %246 {offsets = [0, 48], sizes = [16, 16], strides = [1, 1]} : vector<16x64xbf16> to vector<16x16xbf16>
    %cst_108 = arith.constant dense<0.000000e+00> : vector<16x16xf32>
    %311 = tpu.matmul %309, %310, %cst_108 {dimension_numbers = #tpu.dot_dimension_numbers<[1], [1], [0], [0], [0, 0, 1, 0], [], []>} : vector<16x16xbf16>, vector<16x16xbf16>, vector<16x16xf32> -> vector<16x16xf32>
    %312 = arith.addf %311, %201 : vector<16x16xf32>
    %cst_109 = arith.constant dense<0xFF800000> : vector<16xf32>
    %313 = vector.multi_reduction <maximumf>, %312, %cst_109 [1] : vector<16x16xf32> to vector<16xf32>
    %314 = vector.shape_cast %313 : vector<16xf32> to vector<16x1xf32>
    %315 = vector.broadcast %314 : vector<16x1xf32> to vector<16x16xf32>
    %316 = arith.subf %312, %315 : vector<16x16xf32>
    %317 = math.exp %316 : vector<16x16xf32>
    %cst_110 = arith.constant dense<0.000000e+00> : vector<16xf32>
    %318 = vector.multi_reduction <add>, %317, %cst_110 [1] : vector<16x16xf32> to vector<16xf32>
    %319 = vector.shape_cast %318 : vector<16xf32> to vector<16x1xf32>
    %320 = vector.broadcast %319 : vector<16x1xf32> to vector<16x16xf32>
    %321 = arith.divf %317, %320 : vector<16x16xf32>
    %322 = arith.truncf %321 : vector<16x16xf32> to vector<16x16xbf16>
    %323 = vector.extract_strided_slice %247 {offsets = [0, 48], sizes = [16, 16], strides = [1, 1]} : vector<16x64xbf16> to vector<16x16xbf16>
    %cst_111 = arith.constant dense<0.000000e+00> : vector<16x16xf32>
    %324 = tpu.matmul %322, %323, %cst_111 {dimension_numbers = #tpu.dot_dimension_numbers<[1], [0], [0], [1], [0, 0, 1, 1], [], []>} : vector<16x16xbf16>, vector<16x16xbf16>, vector<16x16xf32> -> vector<16x16xf32>
    %c560 = arith.constant 560 : index
    %c0_112 = arith.constant 0 : index
    %325 = vector.load %arg6[%c560, %c0_112] : memref<1152x256xbf16, #tpu.memory_space<vmem>>, vector<16x64xbf16>
    %326 = arith.truncf %324 : vector<16x16xf32> to vector<16x16xbf16>
    %cst_113 = arith.constant dense<0.000000e+00> : vector<16x64xf32>
    %327 = tpu.matmul %326, %325, %cst_113 {dimension_numbers = #tpu.dot_dimension_numbers<[1], [0], [0], [1], [0, 0, 1, 1], [], []>} : vector<16x16xbf16>, vector<16x64xbf16>, vector<16x64xf32> -> vector<16x64xf32>
    %328 = arith.addf %308, %327 : vector<16x64xf32>
    %c11 = arith.constant 11 : index
    %c0_114 = arith.constant 0 : index
    %329 = vector.load %arg7[%c11, %c0_114] : memref<24x256xf32, #tpu.memory_space<vmem>>, vector<1x64xf32>
    %330 = vector.broadcast %329 : vector<1x64xf32> to vector<16x64xf32>
    %331 = arith.addf %328, %330 : vector<16x64xf32>
    %332 = arith.addf %189, %331 : vector<16x64xf32>
    %c12 = arith.constant 12 : index
    %c0_115 = arith.constant 0 : index
    %333 = vector.load %arg7[%c12, %c0_115] : memref<24x256xf32, #tpu.memory_space<vmem>>, vector<1x64xf32>
    %c13 = arith.constant 13 : index
    %c0_116 = arith.constant 0 : index
    %334 = vector.load %arg7[%c13, %c0_116] : memref<24x256xf32, #tpu.memory_space<vmem>>, vector<1x64xf32>
    %cst_117 = arith.constant dense<0.000000e+00> : vector<16xf32>
    %335 = vector.multi_reduction <add>, %332, %cst_117 [1] : vector<16x64xf32> to vector<16xf32>
    %336 = vector.shape_cast %335 : vector<16xf32> to vector<16x1xf32>
    %cst_118 = arith.constant 6.400000e+01 : f32
    %337 = vector.broadcast %cst_118 : f32 to vector<16x1xf32>
    %338 = arith.divf %336, %337 : vector<16x1xf32>
    %339 = vector.broadcast %338 : vector<16x1xf32> to vector<16x64xf32>
    %340 = arith.subf %332, %339 : vector<16x64xf32>
    %341 = arith.mulf %340, %340 : vector<16x64xf32>
    %cst_119 = arith.constant dense<0.000000e+00> : vector<16xf32>
    %342 = vector.multi_reduction <add>, %341, %cst_119 [1] : vector<16x64xf32> to vector<16xf32>
    %343 = vector.shape_cast %342 : vector<16xf32> to vector<16x1xf32>
    %cst_120 = arith.constant 6.400000e+01 : f32
    %344 = vector.broadcast %cst_120 : f32 to vector<16x1xf32>
    %345 = arith.divf %343, %344 : vector<16x1xf32>
    %cst_121 = arith.constant 9.99999974E-6 : f32
    %346 = vector.broadcast %cst_121 : f32 to vector<16x1xf32>
    %347 = arith.addf %345, %346 : vector<16x1xf32>
    %348 = math.rsqrt %347 : vector<16x1xf32>
    %349 = vector.broadcast %348 : vector<16x1xf32> to vector<16x64xf32>
    %350 = arith.mulf %340, %349 : vector<16x64xf32>
    %351 = vector.broadcast %333 : vector<1x64xf32> to vector<16x64xf32>
    %352 = arith.mulf %350, %351 : vector<16x64xf32>
    %353 = vector.broadcast %334 : vector<1x64xf32> to vector<16x64xf32>
    %354 = arith.addf %352, %353 : vector<16x64xf32>
    %355 = arith.truncf %354 : vector<16x64xf32> to vector<16x64xbf16>
    %c576 = arith.constant 576 : index
    %c0_122 = arith.constant 0 : index
    %356 = vector.load %arg6[%c576, %c0_122] : memref<1152x256xbf16, #tpu.memory_space<vmem>>, vector<64x64xbf16>
    %cst_123 = arith.constant dense<0.000000e+00> : vector<16x64xf32>
    %357 = tpu.matmul %355, %356, %cst_123 {dimension_numbers = #tpu.dot_dimension_numbers<[1], [0], [0], [1], [0, 0, 1, 1], [], []>} : vector<16x64xbf16>, vector<64x64xbf16>, vector<16x64xf32> -> vector<16x64xf32>
    %c14 = arith.constant 14 : index
    %c0_124 = arith.constant 0 : index
    %358 = vector.load %arg7[%c14, %c0_124] : memref<24x256xf32, #tpu.memory_space<vmem>>, vector<1x64xf32>
    %359 = vector.broadcast %358 : vector<1x64xf32> to vector<16x64xf32>
    %360 = arith.addf %357, %359 : vector<16x64xf32>
    %361 = arith.truncf %178 : vector<16x64xf32> to vector<16x64xbf16>
    %c640 = arith.constant 640 : index
    %c0_125 = arith.constant 0 : index
    %362 = vector.load %arg6[%c640, %c0_125] : memref<1152x256xbf16, #tpu.memory_space<vmem>>, vector<64x128xbf16>
    %cst_126 = arith.constant dense<0.000000e+00> : vector<16x128xf32>
    %363 = tpu.matmul %361, %362, %cst_126 {dimension_numbers = #tpu.dot_dimension_numbers<[1], [0], [0], [1], [0, 0, 1, 1], [], []>} : vector<16x64xbf16>, vector<64x128xbf16>, vector<16x128xf32> -> vector<16x128xf32>
    %c15 = arith.constant 15 : index
    %c0_127 = arith.constant 0 : index
    %364 = vector.load %arg7[%c15, %c0_127] : memref<24x256xf32, #tpu.memory_space<vmem>>, vector<1x128xf32>
    %365 = vector.broadcast %364 : vector<1x128xf32> to vector<16x128xf32>
    %366 = arith.addf %363, %365 : vector<16x128xf32>
    %367 = vector.extract_strided_slice %366 {offsets = [0, 0], sizes = [16, 64], strides = [1, 1]} : vector<16x128xf32> to vector<16x64xf32>
    %368 = vector.extract_strided_slice %366 {offsets = [0, 64], sizes = [16, 64], strides = [1, 1]} : vector<16x128xf32> to vector<16x64xf32>
    %cst_128 = arith.constant 2.500000e-01 : f32
    %369 = vector.broadcast %cst_128 : f32 to vector<16x64xf32>
    %370 = arith.mulf %360, %369 : vector<16x64xf32>
    %371 = arith.truncf %370 : vector<16x64xf32> to vector<16x64xbf16>
    %372 = arith.truncf %367 : vector<16x64xf32> to vector<16x64xbf16>
    %373 = arith.truncf %368 : vector<16x64xf32> to vector<16x64xbf16>
    %cst_129 = arith.constant 0.000000e+00 : f32
    %374 = vector.broadcast %cst_129 : f32 to vector<16x64xf32>
    %375 = vector.extract_strided_slice %371 {offsets = [0, 0], sizes = [16, 16], strides = [1, 1]} : vector<16x64xbf16> to vector<16x16xbf16>
    %376 = vector.extract_strided_slice %372 {offsets = [0, 0], sizes = [16, 16], strides = [1, 1]} : vector<16x64xbf16> to vector<16x16xbf16>
    %cst_130 = arith.constant dense<0.000000e+00> : vector<16x16xf32>
    %377 = tpu.matmul %375, %376, %cst_130 {dimension_numbers = #tpu.dot_dimension_numbers<[1], [1], [0], [0], [0, 0, 1, 0], [], []>} : vector<16x16xbf16>, vector<16x16xbf16>, vector<16x16xf32> -> vector<16x16xf32>
    %378 = arith.addf %377, %211 : vector<16x16xf32>
    %cst_131 = arith.constant dense<0xFF800000> : vector<16xf32>
    %379 = vector.multi_reduction <maximumf>, %378, %cst_131 [1] : vector<16x16xf32> to vector<16xf32>
    %380 = vector.shape_cast %379 : vector<16xf32> to vector<16x1xf32>
    %381 = vector.broadcast %380 : vector<16x1xf32> to vector<16x16xf32>
    %382 = arith.subf %378, %381 : vector<16x16xf32>
    %383 = math.exp %382 : vector<16x16xf32>
    %cst_132 = arith.constant dense<0.000000e+00> : vector<16xf32>
    %384 = vector.multi_reduction <add>, %383, %cst_132 [1] : vector<16x16xf32> to vector<16xf32>
    %385 = vector.shape_cast %384 : vector<16xf32> to vector<16x1xf32>
    %386 = vector.broadcast %385 : vector<16x1xf32> to vector<16x16xf32>
    %387 = arith.divf %383, %386 : vector<16x16xf32>
    %388 = arith.truncf %387 : vector<16x16xf32> to vector<16x16xbf16>
    %389 = vector.extract_strided_slice %373 {offsets = [0, 0], sizes = [16, 16], strides = [1, 1]} : vector<16x64xbf16> to vector<16x16xbf16>
    %cst_133 = arith.constant dense<0.000000e+00> : vector<16x16xf32>
    %390 = tpu.matmul %388, %389, %cst_133 {dimension_numbers = #tpu.dot_dimension_numbers<[1], [0], [0], [1], [0, 0, 1, 1], [], []>} : vector<16x16xbf16>, vector<16x16xbf16>, vector<16x16xf32> -> vector<16x16xf32>
    %c704 = arith.constant 704 : index
    %c0_134 = arith.constant 0 : index
    %391 = vector.load %arg6[%c704, %c0_134] : memref<1152x256xbf16, #tpu.memory_space<vmem>>, vector<16x64xbf16>
    %392 = arith.truncf %390 : vector<16x16xf32> to vector<16x16xbf16>
    %cst_135 = arith.constant dense<0.000000e+00> : vector<16x64xf32>
    %393 = tpu.matmul %392, %391, %cst_135 {dimension_numbers = #tpu.dot_dimension_numbers<[1], [0], [0], [1], [0, 0, 1, 1], [], []>} : vector<16x16xbf16>, vector<16x64xbf16>, vector<16x64xf32> -> vector<16x64xf32>
    %394 = arith.addf %374, %393 : vector<16x64xf32>
    %395 = vector.extract_strided_slice %371 {offsets = [0, 16], sizes = [16, 16], strides = [1, 1]} : vector<16x64xbf16> to vector<16x16xbf16>
    %396 = vector.extract_strided_slice %372 {offsets = [0, 16], sizes = [16, 16], strides = [1, 1]} : vector<16x64xbf16> to vector<16x16xbf16>
    %cst_136 = arith.constant dense<0.000000e+00> : vector<16x16xf32>
    %397 = tpu.matmul %395, %396, %cst_136 {dimension_numbers = #tpu.dot_dimension_numbers<[1], [1], [0], [0], [0, 0, 1, 0], [], []>} : vector<16x16xbf16>, vector<16x16xbf16>, vector<16x16xf32> -> vector<16x16xf32>
    %398 = arith.addf %397, %211 : vector<16x16xf32>
    %cst_137 = arith.constant dense<0xFF800000> : vector<16xf32>
    %399 = vector.multi_reduction <maximumf>, %398, %cst_137 [1] : vector<16x16xf32> to vector<16xf32>
    %400 = vector.shape_cast %399 : vector<16xf32> to vector<16x1xf32>
    %401 = vector.broadcast %400 : vector<16x1xf32> to vector<16x16xf32>
    %402 = arith.subf %398, %401 : vector<16x16xf32>
    %403 = math.exp %402 : vector<16x16xf32>
    %cst_138 = arith.constant dense<0.000000e+00> : vector<16xf32>
    %404 = vector.multi_reduction <add>, %403, %cst_138 [1] : vector<16x16xf32> to vector<16xf32>
    %405 = vector.shape_cast %404 : vector<16xf32> to vector<16x1xf32>
    %406 = vector.broadcast %405 : vector<16x1xf32> to vector<16x16xf32>
    %407 = arith.divf %403, %406 : vector<16x16xf32>
    %408 = arith.truncf %407 : vector<16x16xf32> to vector<16x16xbf16>
    %409 = vector.extract_strided_slice %373 {offsets = [0, 16], sizes = [16, 16], strides = [1, 1]} : vector<16x64xbf16> to vector<16x16xbf16>
    %cst_139 = arith.constant dense<0.000000e+00> : vector<16x16xf32>
    %410 = tpu.matmul %408, %409, %cst_139 {dimension_numbers = #tpu.dot_dimension_numbers<[1], [0], [0], [1], [0, 0, 1, 1], [], []>} : vector<16x16xbf16>, vector<16x16xbf16>, vector<16x16xf32> -> vector<16x16xf32>
    %c720 = arith.constant 720 : index
    %c0_140 = arith.constant 0 : index
    %411 = vector.load %arg6[%c720, %c0_140] : memref<1152x256xbf16, #tpu.memory_space<vmem>>, vector<16x64xbf16>
    %412 = arith.truncf %410 : vector<16x16xf32> to vector<16x16xbf16>
    %cst_141 = arith.constant dense<0.000000e+00> : vector<16x64xf32>
    %413 = tpu.matmul %412, %411, %cst_141 {dimension_numbers = #tpu.dot_dimension_numbers<[1], [0], [0], [1], [0, 0, 1, 1], [], []>} : vector<16x16xbf16>, vector<16x64xbf16>, vector<16x64xf32> -> vector<16x64xf32>
    %414 = arith.addf %394, %413 : vector<16x64xf32>
    %415 = vector.extract_strided_slice %371 {offsets = [0, 32], sizes = [16, 16], strides = [1, 1]} : vector<16x64xbf16> to vector<16x16xbf16>
    %416 = vector.extract_strided_slice %372 {offsets = [0, 32], sizes = [16, 16], strides = [1, 1]} : vector<16x64xbf16> to vector<16x16xbf16>
    %cst_142 = arith.constant dense<0.000000e+00> : vector<16x16xf32>
    %417 = tpu.matmul %415, %416, %cst_142 {dimension_numbers = #tpu.dot_dimension_numbers<[1], [1], [0], [0], [0, 0, 1, 0], [], []>} : vector<16x16xbf16>, vector<16x16xbf16>, vector<16x16xf32> -> vector<16x16xf32>
    %418 = arith.addf %417, %211 : vector<16x16xf32>
    %cst_143 = arith.constant dense<0xFF800000> : vector<16xf32>
    %419 = vector.multi_reduction <maximumf>, %418, %cst_143 [1] : vector<16x16xf32> to vector<16xf32>
    %420 = vector.shape_cast %419 : vector<16xf32> to vector<16x1xf32>
    %421 = vector.broadcast %420 : vector<16x1xf32> to vector<16x16xf32>
    %422 = arith.subf %418, %421 : vector<16x16xf32>
    %423 = math.exp %422 : vector<16x16xf32>
    %cst_144 = arith.constant dense<0.000000e+00> : vector<16xf32>
    %424 = vector.multi_reduction <add>, %423, %cst_144 [1] : vector<16x16xf32> to vector<16xf32>
    %425 = vector.shape_cast %424 : vector<16xf32> to vector<16x1xf32>
    %426 = vector.broadcast %425 : vector<16x1xf32> to vector<16x16xf32>
    %427 = arith.divf %423, %426 : vector<16x16xf32>
    %428 = arith.truncf %427 : vector<16x16xf32> to vector<16x16xbf16>
    %429 = vector.extract_strided_slice %373 {offsets = [0, 32], sizes = [16, 16], strides = [1, 1]} : vector<16x64xbf16> to vector<16x16xbf16>
    %cst_145 = arith.constant dense<0.000000e+00> : vector<16x16xf32>
    %430 = tpu.matmul %428, %429, %cst_145 {dimension_numbers = #tpu.dot_dimension_numbers<[1], [0], [0], [1], [0, 0, 1, 1], [], []>} : vector<16x16xbf16>, vector<16x16xbf16>, vector<16x16xf32> -> vector<16x16xf32>
    %c736 = arith.constant 736 : index
    %c0_146 = arith.constant 0 : index
    %431 = vector.load %arg6[%c736, %c0_146] : memref<1152x256xbf16, #tpu.memory_space<vmem>>, vector<16x64xbf16>
    %432 = arith.truncf %430 : vector<16x16xf32> to vector<16x16xbf16>
    %cst_147 = arith.constant dense<0.000000e+00> : vector<16x64xf32>
    %433 = tpu.matmul %432, %431, %cst_147 {dimension_numbers = #tpu.dot_dimension_numbers<[1], [0], [0], [1], [0, 0, 1, 1], [], []>} : vector<16x16xbf16>, vector<16x64xbf16>, vector<16x64xf32> -> vector<16x64xf32>
    %434 = arith.addf %414, %433 : vector<16x64xf32>
    %435 = vector.extract_strided_slice %371 {offsets = [0, 48], sizes = [16, 16], strides = [1, 1]} : vector<16x64xbf16> to vector<16x16xbf16>
    %436 = vector.extract_strided_slice %372 {offsets = [0, 48], sizes = [16, 16], strides = [1, 1]} : vector<16x64xbf16> to vector<16x16xbf16>
    %cst_148 = arith.constant dense<0.000000e+00> : vector<16x16xf32>
    %437 = tpu.matmul %435, %436, %cst_148 {dimension_numbers = #tpu.dot_dimension_numbers<[1], [1], [0], [0], [0, 0, 1, 0], [], []>} : vector<16x16xbf16>, vector<16x16xbf16>, vector<16x16xf32> -> vector<16x16xf32>
    %438 = arith.addf %437, %211 : vector<16x16xf32>
    %cst_149 = arith.constant dense<0xFF800000> : vector<16xf32>
    %439 = vector.multi_reduction <maximumf>, %438, %cst_149 [1] : vector<16x16xf32> to vector<16xf32>
    %440 = vector.shape_cast %439 : vector<16xf32> to vector<16x1xf32>
    %441 = vector.broadcast %440 : vector<16x1xf32> to vector<16x16xf32>
    %442 = arith.subf %438, %441 : vector<16x16xf32>
    %443 = math.exp %442 : vector<16x16xf32>
    %cst_150 = arith.constant dense<0.000000e+00> : vector<16xf32>
    %444 = vector.multi_reduction <add>, %443, %cst_150 [1] : vector<16x16xf32> to vector<16xf32>
    %445 = vector.shape_cast %444 : vector<16xf32> to vector<16x1xf32>
    %446 = vector.broadcast %445 : vector<16x1xf32> to vector<16x16xf32>
    %447 = arith.divf %443, %446 : vector<16x16xf32>
    %448 = arith.truncf %447 : vector<16x16xf32> to vector<16x16xbf16>
    %449 = vector.extract_strided_slice %373 {offsets = [0, 48], sizes = [16, 16], strides = [1, 1]} : vector<16x64xbf16> to vector<16x16xbf16>
    %cst_151 = arith.constant dense<0.000000e+00> : vector<16x16xf32>
    %450 = tpu.matmul %448, %449, %cst_151 {dimension_numbers = #tpu.dot_dimension_numbers<[1], [0], [0], [1], [0, 0, 1, 1], [], []>} : vector<16x16xbf16>, vector<16x16xbf16>, vector<16x16xf32> -> vector<16x16xf32>
    %c752 = arith.constant 752 : index
    %c0_152 = arith.constant 0 : index
    %451 = vector.load %arg6[%c752, %c0_152] : memref<1152x256xbf16, #tpu.memory_space<vmem>>, vector<16x64xbf16>
    %452 = arith.truncf %450 : vector<16x16xf32> to vector<16x16xbf16>
    %cst_153 = arith.constant dense<0.000000e+00> : vector<16x64xf32>
    %453 = tpu.matmul %452, %451, %cst_153 {dimension_numbers = #tpu.dot_dimension_numbers<[1], [0], [0], [1], [0, 0, 1, 1], [], []>} : vector<16x16xbf16>, vector<16x64xbf16>, vector<16x64xf32> -> vector<16x64xf32>
    %454 = arith.addf %434, %453 : vector<16x64xf32>
    %c16 = arith.constant 16 : index
    %c0_154 = arith.constant 0 : index
    %455 = vector.load %arg7[%c16, %c0_154] : memref<24x256xf32, #tpu.memory_space<vmem>>, vector<1x64xf32>
    %456 = vector.broadcast %455 : vector<1x64xf32> to vector<16x64xf32>
    %457 = arith.addf %454, %456 : vector<16x64xf32>
    %458 = arith.addf %332, %457 : vector<16x64xf32>
    %c17 = arith.constant 17 : index
    %c0_155 = arith.constant 0 : index
    %459 = vector.load %arg7[%c17, %c0_155] : memref<24x256xf32, #tpu.memory_space<vmem>>, vector<1x64xf32>
    %c18 = arith.constant 18 : index
    %c0_156 = arith.constant 0 : index
    %460 = vector.load %arg7[%c18, %c0_156] : memref<24x256xf32, #tpu.memory_space<vmem>>, vector<1x64xf32>
    %cst_157 = arith.constant dense<0.000000e+00> : vector<16xf32>
    %461 = vector.multi_reduction <add>, %458, %cst_157 [1] : vector<16x64xf32> to vector<16xf32>
    %462 = vector.shape_cast %461 : vector<16xf32> to vector<16x1xf32>
    %cst_158 = arith.constant 6.400000e+01 : f32
    %463 = vector.broadcast %cst_158 : f32 to vector<16x1xf32>
    %464 = arith.divf %462, %463 : vector<16x1xf32>
    %465 = vector.broadcast %464 : vector<16x1xf32> to vector<16x64xf32>
    %466 = arith.subf %458, %465 : vector<16x64xf32>
    %467 = arith.mulf %466, %466 : vector<16x64xf32>
    %cst_159 = arith.constant dense<0.000000e+00> : vector<16xf32>
    %468 = vector.multi_reduction <add>, %467, %cst_159 [1] : vector<16x64xf32> to vector<16xf32>
    %469 = vector.shape_cast %468 : vector<16xf32> to vector<16x1xf32>
    %cst_160 = arith.constant 6.400000e+01 : f32
    %470 = vector.broadcast %cst_160 : f32 to vector<16x1xf32>
    %471 = arith.divf %469, %470 : vector<16x1xf32>
    %cst_161 = arith.constant 9.99999974E-6 : f32
    %472 = vector.broadcast %cst_161 : f32 to vector<16x1xf32>
    %473 = arith.addf %471, %472 : vector<16x1xf32>
    %474 = math.rsqrt %473 : vector<16x1xf32>
    %475 = vector.broadcast %474 : vector<16x1xf32> to vector<16x64xf32>
    %476 = arith.mulf %466, %475 : vector<16x64xf32>
    %477 = vector.broadcast %459 : vector<1x64xf32> to vector<16x64xf32>
    %478 = arith.mulf %476, %477 : vector<16x64xf32>
    %479 = vector.broadcast %460 : vector<1x64xf32> to vector<16x64xf32>
    %480 = arith.addf %478, %479 : vector<16x64xf32>
    %481 = arith.truncf %480 : vector<16x64xf32> to vector<16x64xbf16>
    %c768 = arith.constant 768 : index
    %c0_162 = arith.constant 0 : index
    %482 = vector.load %arg6[%c768, %c0_162] : memref<1152x256xbf16, #tpu.memory_space<vmem>>, vector<64x256xbf16>
    %cst_163 = arith.constant dense<0.000000e+00> : vector<16x256xf32>
    %483 = tpu.matmul %481, %482, %cst_163 {dimension_numbers = #tpu.dot_dimension_numbers<[1], [0], [0], [1], [0, 0, 1, 1], [], []>} : vector<16x64xbf16>, vector<64x256xbf16>, vector<16x256xf32> -> vector<16x256xf32>
    %c19 = arith.constant 19 : index
    %c0_164 = arith.constant 0 : index
    %484 = vector.load %arg7[%c19, %c0_164] : memref<24x256xf32, #tpu.memory_space<vmem>>, vector<1x256xf32>
    %485 = vector.broadcast %484 : vector<1x256xf32> to vector<16x256xf32>
    %486 = arith.addf %483, %485 : vector<16x256xf32>
    %cst_165 = arith.constant 0.000000e+00 : f32
    %487 = vector.broadcast %cst_165 : f32 to vector<16x256xf32>
    %488 = arith.maximumf %486, %487 : vector<16x256xf32>
    %489 = arith.truncf %488 : vector<16x256xf32> to vector<16x256xbf16>
    %c832 = arith.constant 832 : index
    %c0_166 = arith.constant 0 : index
    %490 = vector.load %arg6[%c832, %c0_166] : memref<1152x256xbf16, #tpu.memory_space<vmem>>, vector<256x64xbf16>
    %cst_167 = arith.constant dense<0.000000e+00> : vector<16x64xf32>
    %491 = tpu.matmul %489, %490, %cst_167 {dimension_numbers = #tpu.dot_dimension_numbers<[1], [0], [0], [1], [0, 0, 1, 1], [], []>} : vector<16x256xbf16>, vector<256x64xbf16>, vector<16x64xf32> -> vector<16x64xf32>
    %c20 = arith.constant 20 : index
    %c0_168 = arith.constant 0 : index
    %492 = vector.load %arg7[%c20, %c0_168] : memref<24x256xf32, #tpu.memory_space<vmem>>, vector<1x64xf32>
    %493 = vector.broadcast %492 : vector<1x64xf32> to vector<16x64xf32>
    %494 = arith.addf %491, %493 : vector<16x64xf32>
    %495 = arith.addf %458, %494 : vector<16x64xf32>
    %496 = arith.truncf %495 : vector<16x64xf32> to vector<16x64xbf16>
    %c1088 = arith.constant 1088 : index
    %c0_169 = arith.constant 0 : index
    %497 = vector.load %arg6[%c1088, %c0_169] : memref<1152x256xbf16, #tpu.memory_space<vmem>>, vector<64x128xbf16>
    %cst_170 = arith.constant dense<0.000000e+00> : vector<16x128xf32>
    %498 = tpu.matmul %496, %497, %cst_170 {dimension_numbers = #tpu.dot_dimension_numbers<[1], [0], [0], [1], [0, 0, 1, 1], [], []>} : vector<16x64xbf16>, vector<64x128xbf16>, vector<16x128xf32> -> vector<16x128xf32>
    %c21 = arith.constant 21 : index
    %c0_171 = arith.constant 0 : index
    %499 = vector.load %arg7[%c21, %c0_171] : memref<24x256xf32, #tpu.memory_space<vmem>>, vector<1x128xf32>
    %500 = vector.broadcast %499 : vector<1x128xf32> to vector<16x128xf32>
    %501 = arith.addf %498, %500 : vector<16x128xf32>
    %c0_172 = arith.constant 0 : index
    %c0_173 = arith.constant 0 : index
    %502 = vector.load %arg8[%c0_172, %c0_173] : memref<16x128xf32, #tpu.memory_space<vmem>>, vector<16x128xf32>
    tpu.vector_store %arg8[%c0_172, %c0_173], %501 {strides = array<i32>} : memref<16x128xf32, #tpu.memory_space<vmem>>, vector<16x128xf32>,
    return
  }
  func.func @transform_0(%arg0: i32) -> (i32, i32) {
    %c0_i32 = arith.constant 0 : i32
    %c0_i32_0 = arith.constant 0 : i32
    %c0_i32_1 = arith.constant 0 : i32
    return %c0_i32, %c0_i32_0 : i32, i32
  }
  func.func @transform_1(%arg0: i32) -> (i32, i32) {
    %c0_i32 = arith.constant 0 : i32
    %c0_i32_0 = arith.constant 0 : i32
    %c0_i32_1 = arith.constant 0 : i32
    return %c0_i32, %c0_i32_0 : i32, i32
  }
  func.func @transform_2(%arg0: i32) -> (i32, i32) {
    %c0_i32 = arith.constant 0 : i32
    %c0_i32_0 = arith.constant 0 : i32
    %c0_i32_1 = arith.constant 0 : i32
    return %c0_i32, %c0_i32_0 : i32, i32
  }
  func.func @transform_3(%arg0: i32) -> (i32, i32) {
    %c0_i32 = arith.constant 0 : i32
    %c0_i32_0 = arith.constant 0 : i32
    %c0_i32_1 = arith.constant 0 : i32
    return %c0_i32, %c0_i32_0 : i32, i32
  }
  func.func @transform_4(%arg0: i32) -> (i32, i32) {
    %c0_i32 = arith.constant 0 : i32
    %c0_i32_0 = arith.constant 0 : i32
    %c0_i32_1 = arith.constant 0 : i32
    return %c0_i32, %c0_i32_0 : i32, i32
  }
  func.func @transform_5(%arg0: i32) -> (i32, i32) {
    %c0_i32 = arith.constant 0 : i32
    %c0_i32_0 = arith.constant 0 : i32
    %c0_i32_1 = arith.constant 0 : i32
    return %c0_i32, %c0_i32_0 : i32, i32
  }
  func.func @transform_6(%arg0: i32) -> (i32, i32) {
    %c0_i32 = arith.constant 0 : i32
    %c0_i32_0 = arith.constant 0 : i32
    %c0_i32_1 = arith.constant 0 : i32
    return %c0_i32, %c0_i32_0 : i32, i32
  }
  func.func @transform_7(%arg0: i32) -> (i32, i32) {
    %c0_i32 = arith.constant 0 : i32
    %c0_i32_0 = arith.constant 0 : i32
    %c0_i32_1 = arith.constant 0 : i32
    return %c0_i32, %c0_i32_0 : i32, i32
  }
}

</mosaic_0001>

<bundles_post_ra>
// kernel: tile.9
= control target key start
LH: loop header
LB: loop body
LE: loop exit
PB: predicated region body
PF: predicated region fallthrough
CT: control target
= control target key end

     0   :  { %vm82_vm0 = vcmask 1047556   ;;  %vm84_vm1 = vcmask 64512   ;;  %vm103_vm2 = vcmask 130112   ;;  %s225_s0 = inlined_call_operand.vmem [shape: f32[2,8,2,8], index: 0, kind: input, shape index: {}]   ;;  %s226_s1 = inlined_call_operand.vmem [shape: f32[16,16], index: 1, kind: output, shape index: {}]  }
   0x1   :  { %v138_v0 = vld [vmem:[%s225_s0 + $0xe] sm:$0x3]  ;;  %v139_v1 = vld [vmem:[%s225_s0 + $0xc] sm:$0x3]  ;;  %v140_v2 = vld [vmem:[%s225_s0 + $0xa] sm:$0x3] }
   0x2   :  { %48 = vst [vmem:[#allocation0 + $0x38] sm:$0x3] %v138_v0  ;;  %53 = vst [vmem:[#allocation0 + $0x30] sm:$0x3] %v139_v1  ;;  %v141_v3 = vld [vmem:[%s225_s0 + $0x8] sm:$0x3] }
   0x3   :  { %58 = vst [vmem:[#allocation0 + $0x28] sm:$0x3] %v140_v2  ;;  %v142_v4 = vld [vmem:[%s225_s0 + $0x6] sm:$0x3]  ;;  %v143_v5 = vld [vmem:[%s225_s0 + $0x4] sm:$0x3] }
   0x4   :  { %63 = vst [vmem:[#allocation0 + $0x20] sm:$0x3] %v141_v3  ;;  %68 = vst [vmem:[#allocation0 + $0x18] sm:$0x3] %v142_v4  ;;  %v144_v6 = vld [vmem:[%s225_s0 + $0x2] sm:$0x3] }
   0x5   :  { %73 = vst [vmem:[#allocation0 + $0x10] sm:$0x3] %v143_v5  ;;  %v78_v7 = vld [vmem:[%s225_s0] sm:$0x3]  ;;  %77 = vst [vmem:[#allocation0 + $0x8] sm:$0x3] %v144_v6 }
   0x6   :  { %79 = vst [vmem:[#allocation0] sm:$0x3] %v78_v7  ;;  %v130_v8 = vld [vmem:[%s225_s0 + $0x1e] sm:$0x3]  ;;  %v131_v9 = vld [vmem:[%s225_s0 + $0x1c] sm:$0x3] }
   0x7   :  { %v132_v10 = vld [vmem:[%s225_s0 + $0x1a] sm:$0x3]  ;;  %8 = vst [vmem:[#allocation0 + $0x78] sm:$0x3] %v130_v8  ;;  %13 = vst [vmem:[#allocation0 + $0x70] sm:$0x3] %v131_v9 }
   0x8   :  { %18 = vst [vmem:[#allocation0 + $0x68] sm:$0x3] %v132_v10  ;;  %v133_v11 = vld [vmem:[%s225_s0 + $0x18] sm:$0x3]  ;;  %v134_v12 = vld [vmem:[%s225_s0 + $0x16] sm:$0x3] }
   0x9   :  { %v135_v13 = vld [vmem:[%s225_s0 + $0x14] sm:$0x3]  ;;  %23 = vst [vmem:[#allocation0 + $0x60] sm:$0x3] %v133_v11  ;;  %28 = vst [vmem:[#allocation0 + $0x58] sm:$0x3] %v134_v12 }
   0xa   :  { %33 = vst [vmem:[#allocation0 + $0x50] sm:$0x3] %v135_v13  ;;  %v136_v14 = vld [vmem:[%s225_s0 + $0x12] sm:$0x3]  ;;  %v137_v15 = vld [vmem:[%s225_s0 + $0x10] sm:$0x3] }
   0xb   :  { %38 = vst [vmem:[#allocation0 + $0x48] sm:$0x3] %v136_v14  ;;  %43 = vst [vmem:[#allocation0 + $0x40] sm:$0x3] %v137_v15  ;;  %s148_s0 = smov 8  }
   0xc   :  { %v98_v16 = vld [vmem:[#allocation0 + $0x1] ss:$8 sm:$0xf0]   ;;  %v81_v17 = vld [vmem:[#allocation0] ss:$8 sm:$0xf0]  }
   0xd   :  { %v96_v18 = vld [vmem:[#allocation0 + $0x1] ss:$8 sm:$0xf]   ;;  %v80_v19 = vld [vmem:[#allocation0] ss:$8 sm:$0xf]  }
   0xe   :  { %v100_v20 = vsel %vm82_vm0, %v98_v16, %v96_v18  ;;  %v83_v21 = vsel %vm82_vm0, %v81_v17, %v80_v19 }
   0xf   :  { %101 = vrot.lane.b32.xlu0 %v100_v20, %s148_s0  ;;  %85 = vst.msk [vmem:[%s226_s1] sm:$0xff] %vm84_vm1, %v83_v21  }
  0x10   :  { %v108_v22 = vld [vmem:[#allocation0 + $0x41] ss:$8 sm:$0xf0]   ;;  %v89_v23 = vld [vmem:[#allocation0 + $0x40] ss:$8 sm:$0xf0]  }
  0x12   :  { %v106_v24 = vld [vmem:[#allocation0 + $0x41] ss:$8 sm:$0xf]   ;;  %v87_v25 = vld [vmem:[#allocation0 + $0x40] ss:$8 sm:$0xf]  }
  0x13   :  { %v110_v26 = vsel %vm82_vm0, %v108_v22, %v106_v24  ;;  %v91_v27 = vsel %vm82_vm0, %v89_v23, %v87_v25 }
  0x14   :  { %145 = vst.msk [vmem:[%s226_s1 + $0x8] sm:$0xff] %vm84_vm1, %v91_v27   ;;  %111 = vrot.lane.b32.xlu0 %v110_v26, %s148_s0 }
  0x81   :  { %v102_v28 = vpop.permute.xlu0 %101  }
  0x82   :  { %104 = vst.msk [vmem:[%s226_s1] sm:$0xff] %vm103_vm2, %v102_v28  }
  0x86   :  { %v112_v29 = vpop.permute.xlu0 %111  }
  0x87   :  { %146 = vst.msk [vmem:[%s226_s1 + $0x8] sm:$0xff] %vm103_vm2, %v112_v29  }

// kernel: tile.8
= control target key start
LH: loop header
LB: loop body
LE: loop exit
PB: predicated region body
PF: predicated region fallthrough
CT: control target
= control target key end

     0   :  { %s154_s0 = inlined_call_operand.vmem [shape: f32[8,8], index: 0, kind: input, shape index: {}]   ;;  %s155_s1 = inlined_call_operand.vmem [shape: f32[2,8,2,8], index: 1, kind: output, shape index: {}]  }
   0x1   :  { %v4_v0 = vld [vmem:[%s154_s0] ss:$0 sm:$0xff]  ;;  %v51_v1 = vld [vmem:[%s154_s0 + $0x1] ss:$0 sm:$0xff]  ;;  %v54_v2 = vld [vmem:[%s154_s0 + $0x2] ss:$0 sm:$0xff] }
   0x2   :  { %5 = vst [vmem:[%s155_s1] sm:$0x3] %v4_v0  ;;  %50 = vst [vmem:[%s155_s1 + $0x10] sm:$0x3] %v4_v0  ;;  %v57_v3 = vld [vmem:[%s154_s0 + $0x3] ss:$0 sm:$0xff] }
   0x3   :  { %52 = vst [vmem:[%s155_s1 + $0x2] sm:$0x3] %v51_v1  ;;  %53 = vst [vmem:[%s155_s1 + $0x12] sm:$0x3] %v51_v1  ;;  %v60_v4 = vld [vmem:[%s154_s0 + $0x4] ss:$0 sm:$0xff] }
   0x4   :  { %55 = vst [vmem:[%s155_s1 + $0x4] sm:$0x3] %v54_v2  ;;  %56 = vst [vmem:[%s155_s1 + $0x14] sm:$0x3] %v54_v2  ;;  %v63_v5 = vld [vmem:[%s154_s0 + $0x5] ss:$0 sm:$0xff] }
   0x5   :  { %58 = vst [vmem:[%s155_s1 + $0x6] sm:$0x3] %v57_v3  ;;  %59 = vst [vmem:[%s155_s1 + $0x16] sm:$0x3] %v57_v3  ;;  %v66_v6 = vld [vmem:[%s154_s0 + $0x6] ss:$0 sm:$0xff] }
   0x6   :  { %61 = vst [vmem:[%s155_s1 + $0x8] sm:$0x3] %v60_v4  ;;  %62 = vst [vmem:[%s155_s1 + $0x18] sm:$0x3] %v60_v4  ;;  %v69_v7 = vld [vmem:[%s154_s0 + $0x7] ss:$0 sm:$0xff] }
   0x7   :  { %64 = vst [vmem:[%s155_s1 + $0xa] sm:$0x3] %v63_v5  ;;  %65 = vst [vmem:[%s155_s1 + $0x1a] sm:$0x3] %v63_v5 }
   0x8   :  { %67 = vst [vmem:[%s155_s1 + $0xc] sm:$0x3] %v66_v6  ;;  %68 = vst [vmem:[%s155_s1 + $0x1c] sm:$0x3] %v66_v6 }
   0x9   :  { %70 = vst [vmem:[%s155_s1 + $0xe] sm:$0x3] %v69_v7  ;;  %71 = vst [vmem:[%s155_s1 + $0x1e] sm:$0x3] %v69_v7 }

// kernel: transformer_forward.1
= control target key start
LH: loop header
LB: loop body
LE: loop exit
PB: predicated region body
PF: predicated region fallthrough
CT: control target
= control target key end

     0   :  { %12 = vsyncpa [#allocation3], 0  ;;  %s5187_s0 = inlined_call_operand.vmem [shape: s32[16,1], index: 0, kind: input, shape index: {}]   ;;  %s5188_s1 = inlined_call_operand.vmem [shape: s32[16,1], index: 1, kind: input, shape index: {}]   ;;  %s5189_s2 = inlined_call_operand.vmem [shape: f32[16,16], index: 2, kind: input, shape index: {}]   ;;  %s5190_s3 = inlined_call_operand.vmem [shape: f32[56,64], index: 3, kind: input, shape index: {}]   ;;  %s5191_s4 = inlined_call_operand.vmem [shape: f32[16,64], index: 4, kind: input, shape index: {}]   ;;  %s5192_s5 = inlined_call_operand.hbm [shape: bf16[1152,256], index: 5, kind: input, shape index: {}]   ;;  %s5193_s6 = inlined_call_operand.vmem [shape: f32[24,256], index: 6, kind: input, shape index: {}]   ;;  %s5194_s7 = inlined_call_operand.hbm [shape: f32[16,128], index: 7, kind: output, shape index: {}]  }
   0x1   :  { %13 = vsyncpa [#allocation4], 0  ;;  %s4490_s24 = smov [#allocation2]   ;;  %s4442_s28 = scalar_lea.hbm %s5192_s5, 18432 }
   0x2   :  { %s29_s25 = sshll.u32 %s4490_s24, 4  ;;  %p4443_p0 = scmp.ne.s32.totalorder %s5192_s5, %s4442_s28  ;;  %s30_s25 = int_to_ptr.vmem [resolvable:$true] %s29_s25 }
   0x3   :  { %p4446_p1 = scmp.lt.u32.totalorder %s4442_s28, %s5192_s5 }
   0x5   :  { %p4448_p2 = pnand %p4446_p1, %p4443_p0 }
   0x7   :  { %4451 = shalt.err (!%p4448_p2)
}
   0x8   :  { %s4452_s10 = scalar_lea.vmem %s30_s25, 18432  ;;  %p4457_p4 = scmp.lt.s32.totalorder %s30_s25, %s30_s25 }
   0x9   :  { %p4453_p3 = scmp.ne.s32.totalorder %s30_s25, %s4452_s10  ;;  %p4458_p5 = scmp.lt.s32.totalorder %s4452_s10, %s4452_s10 }
   0xb   :  { %p4459_p6 = por %p4458_p5, %p4457_p4 }
   0xd   :  { %p4460_p7 = pnand %p4459_p6, %p4453_p3 }
   0xf   :  { %4463 = shalt.err (!%p4460_p7)
}
  0x10   :  { %s4491_s11 = smov 128   ;;  %s4492_s12 = smov 8  }
  0x11   :  { %35 = dma.hbm_to_vmem [thread:$0]  %s5192_s5, 18432, %s30_s25, [#allocation3], %s4491_s11, %s4491_s11, %s4492_s12  }
  0x12   :  { %4486 = dma.done.wait [#allocation3], 18432  }
  0x13   :  { %4487 = vsyncadd [#allocation3], 4294948864  ;;  %v4493_v0 = vmov 0   ;;  %v42_v1 = vld [vmem:[%s5187_s0] sm:$0xff]  ;;  %v43_v2 = vld [vmem:[%s5187_s0 + $0x8] sm:$0xff]  ;;  %v4494_v13 = vmov 0.0   ;;  %v44_v14 = vlaneseq }
  0x14   :  { %4219 = vset.pattern.permute.xlu0 %v4493_v0  ;;  %307 = vmatprep.mubr.bf16.mxu1 %v4493_v0  ;;  %v58_v3 = vld [vmem:[%s5190_s3] sm:$0xff]  ;;  %v59_v4 = vld [vmem:[%s5190_s3 + $0x8] sm:$0xff]  ;;  %v60_v5 = vld [vmem:[%s5190_s3 + $0x10] sm:$0xff]  ;;  %vm66_vm0 = vcmask 457728   ;;  %vm178_vm3 = vcmask 523264   ;;  %vm4495_vm4 = vmmov 0  }
  0x15   :  { %4220 = vset.pattern.permute.xlu1 %v4493_v0  ;;  %47 = vperm.xlu0 %4219, %v42_v1   ;;  %v61_v6 = vld [vmem:[%s5190_s3 + $0x18] sm:$0xff]  ;;  %v4581_v7 = vpack.c.bf16 %v59_v4, %v58_v3  ;;  %v62_v9 = vld [vmem:[%s5190_s3 + $0x20] sm:$0xff]  ;;  %v63_v10 = vld [vmem:[%s5190_s3 + $0x28] sm:$0xff]  ;;  %v4604_v15 = vand.u32 127, %v44_v14  ;;  %v149_v62 = vshrl.u32 %v44_v14, 7  ;;  %s4496_s17 = smov 64  }
  0x16   :  { %v4583_v8 = vpack.c.bf16 %v61_v6, %v60_v5  ;;  %v4594_v11 = vpack.c.bf16 %v63_v10, %v62_v9  ;;  %v64_v12 = vld [vmem:[%s5190_s3 + $0x30] sm:$0xff]  ;;  %v4615_v20 = vld [vmem:[%s5191_s4] sm:$0xff]  ;;  %s4497_s18 = smov 48   ;;  %s4498_s19 = smov 112   ;;  %vm326_vm5 = vcmask 130048  }
  0x17   :  { %4181 = vmatprep.subr.bf16.mxu0 %v4581_v7  ;;  %v4221_v37 = vld [vmem:[#allocation2 + $0x4] ss:$8 sps:$4 sm:$0xff]   ;;  %v4223_v38 = vld [vmem:[#allocation2] ss:$8 sps:$4 sm:$0xff]   ;;  %v4224_v39 = vld [vmem:[#allocation2 + $0x14] ss:$8 sps:$4 sm:$0xff]  }
  0x18   :  { %4183 = vmatpush3.bf16.msra.mxu0 %v4581_v7  ;;  %275 = vmatprep.subr.bf16.mxu1 %v4221_v37  ;;  %v4226_v40 = vld [vmem:[#allocation2 + $0x10] ss:$8 sps:$4 sm:$0xff]   ;;  %v4227_v41 = vld [vmem:[#allocation2 + $0x24] ss:$8 sps:$4 sm:$0xff]   ;;  %v4229_v42 = vld [vmem:[#allocation2 + $0x20] ss:$8 sps:$4 sm:$0xff]  }
  0x19   :  { %50 = vperm.xlu0 %4219, %v43_v2   ;;  %4185 = vmatprep.subr.bf16.mxu0 %v4583_v8  ;;  %v4230_v43 = vld [vmem:[#allocation2 + $0x34] ss:$8 sps:$4 sm:$0xff]   ;;  %v4232_v44 = vld [vmem:[#allocation2 + $0x30] ss:$8 sps:$4 sm:$0xff]   ;;  %v176_v53 = vld [vmem:[%s5193_s6] ss:$0 sm:$0xff] }
  0x1a   :  { %276 = vmatpush1.bf16.msra.mxu1 %v4223_v38  ;;  %v177_v57 = vld [vmem:[%s5193_s6 + $0x1] ss:$0 sm:$0xff]  ;;  %v4640_v63 = vsub.s32 0, %v149_v62  ;;  %v3606_v1 = vld [vmem:[%s5193_s6 + $0x2] ss:$8 sm:$0x3] }
  0x1b   :  { %277 = vmatprep.subr.bf16.mxu1 %v4224_v39  ;;  %v4645_v2 = vsub.s32 1, %v149_v62  ;;  %s4500_s20 = smov 32   ;;  %s4501_s5 = smov 96  }
  0x1c   :  { %4187 = vmatpush3.bf16.msra.mxu0 %v4583_v8  ;;  %v225_v3 = vrot.slane %v3606_v1, %v4640_v63  ;;  %s4502_s21 = smov 16   ;;  %s4503_s22 = smov 80  }
  0x1d   :  { %4189 = vmatprep.subr.bf16.mxu0 %v4594_v11  ;;  %v229_v5 = vrot.slane %v3606_v1, %v4645_v2  ;;  %s4504_s25 = smov [#allocation5]  }
  0x1e   :  { %278 = vmatpush1.bf16.msra.mxu1 %v4226_v40  ;;  %s3590_s0 = sshll.u32 %s4504_s25, 4  ;;  %s3591_s0 = int_to_ptr.vmem [resolvable:$true] %s3590_s0 }
  0x1f   :  { %279 = vmatprep.subr.bf16.mxu1 %v4227_v41  ;;  %s4464_s26 = scalar_lea.vmem %s3591_s0, 256  ;;  %p4469_p9 = scmp.lt.s32.totalorder %s3591_s0, %s3591_s0 }
  0x20   :  { %4191 = vmatpush3.bf16.msra.mxu0 %v4594_v11  ;;  %p4465_p8 = scmp.ne.s32.totalorder %s3591_s0, %s4464_s26  ;;  %p4470_p10 = scmp.lt.s32.totalorder %s4464_s26, %s4464_s26 }
  0x21   :  { %3906 = vmatprep.subr.mxu0 %v64_v12 }
  0x22   :  { %280 = vmatpush1.bf16.msra.mxu1 %v4229_v42  ;;  %p4471_p11 = por %p4470_p10, %p4469_p9 }
  0x23   :  { %281 = vmatprep.subr.bf16.mxu1 %v4230_v43 }
  0x24   :  { %3907 = vmatpush3.msra.mxu0 %v64_v12  ;;  %p4472_p12 = pnand %p4471_p11, %p4465_p8 }
  0x25   :  { %3911 = vmatprep.subr.bf16.mxu0 %v4494_v13 }
  0x26   :  { %282 = vmatpush1.bf16.msra.mxu1 %v4232_v44 }
  0x27   :  { %3917 = vmatprep.subr.bf16.mxu1 %v4494_v13 }
  0x94   :  { %v48_v16 = vpop.permute.xlu0 %47 }
  0x95   :  { %vm52_vm1 = vcmp.eq.s32.totalorder %v4604_v15, %v48_v16 }
  0x96   :  { %v3602_v17 = vsel %vm52_vm1, 1.0, %v4494_v13 }
  0x97   :  { %3908 = vmatprep.mubr.msk.f32.mxu0 %vm66_vm0, %v3602_v17 }
  0x98   :  { %v51_v18 = vpop.permute.xlu0 %50 }
  0x99   :  { %vm53_vm2 = vcmp.eq.s32.totalorder %v4604_v15, %v51_v18 }
  0x9a   :  { %v3603_v19 = vsel %vm53_vm2, 1.0, %v4494_v13 }
  0x9b   :  { %3909 = vmatmul.mubr.msk.f32.vlgmr.msra.gmra.mrb[0].mxu0 %vm66_vm0, %v3603_v19 }
  0x9c   :  { %3913 = vmatprep.mubr.msk.bf16.mxu0 %vm4495_vm4, %v4494_v13 }
 0x16e   :  { %v3910_v21 = vpop.f32.mrb[0].mxu0 }
 0x16f   :  { %v139_v22 = vpop.f32.mrb[1].mxu0  ;;  %v4621_v24 = vadd.f32 %v3910_v21, %v4615_v20 }
 0x170   :  { %v4618_v23 = vadd.f32 %v139_v22, %v4615_v20 }
 0x171   :  { %v182_v26 = vsel %vm178_vm3, %v4621_v24, 0.0 }
 0x172   :  { %v179_v25 = vsel %vm178_vm3, %v4618_v23, 0.0 }
 0x173   :  { %180 = vadd.xlane.f32.xlu1 %v179_v25 }
 0x177   :  { %183 = vadd.xlane.f32.xlu1 %v182_v26 }
 0x200   :  { %v181_v27 = vpop.xlane.xlu1 %180 }
 0x201   :  { %v186_v28 = vmul.f32 0.015625, %v181_v27 }
 0x203   :  { %v188_v29 = vsub.f32 %v4618_v23, %v186_v28 }
 0x204   :  { %v184_v30 = vpop.xlane.xlu1 %183 }
 0x205   :  { %v187_v31 = vmul.f32 0.015625, %v184_v30  ;;  %v190_v32 = vmul.f32 %v188_v29, %v188_v29 }
 0x207   :  { %v189_v33 = vsub.f32 %v4621_v24, %v187_v31  ;;  %v192_v34 = vsel %vm178_vm3, %v190_v32, 0.0  ;;  %v150_v31 = vadd.s32 8, %v149_v62  ;;  %v154_v32 = vshrl.u32 %v149_v62, 3 }
 0x208   :  { %193 = vadd.xlane.f32.xlu0 %v192_v34 }
 0x209   :  { %v191_v35 = vmul.f32 %v189_v33, %v189_v33  ;;  %v161_v34 = vshrl.u32 %v150_v31, 3 }
 0x20b   :  { %v195_v36 = vsel %vm178_vm3, %v191_v35, 0.0  ;;  %v4499_v35 = vmov -1e+09  }
 0x20c   :  { %196 = vadd.xlane.f32.xlu1 %v195_v36 }
 0x295   :  { %v194_v45 = vpop.xlane.xlu0 %193 }
 0x296   :  { %v198_v46 = vmul.f32 0.015625, %v194_v45 }
 0x298   :  { %v200_v47 = vadd.f32 1e-05, %v198_v46 }
 0x299   :  { %v197_v48 = vpop.xlane.xlu1 %196 }
 0x29a   :  { %4325 = vrsqrt.f32 %v200_v47  ;;  %v199_v49 = vmul.f32 0.015625, %v197_v48 }
 0x29c   :  { %v201_v50 = vadd.f32 1e-05, %v199_v49 }
 0x29e   :  { %4327 = vrsqrt.f32 %v201_v50 }
 0x2a4   :  { %v4326_v51 = vpop.eup %4325 }
 0x2a5   :  { %v204_v52 = vmul.f32 %v4326_v51, %v188_v29 }
 0x2a7   :  { %v206_v56 = vmul.f32 %v204_v52, %v176_v53 }
 0x2a8   :  { %v4328_v54 = vpop.eup %4327 }
 0x2a9   :  { %v205_v55 = vmul.f32 %v4328_v54, %v189_v33  ;;  %v208_v59 = vadd.f32 %v206_v56, %v177_v57  ;;  %v168_v33 = vshrl.u32 %v4604_v15, 3 }
 0x2ab   :  { %v207_v58 = vmul.f32 %v205_v55, %v176_v53  ;;  %vm172_vm6 = vcmp.eq.s32.totalorder %v154_v32, %v168_v33  ;;  %vm173_vm7 = vcmp.eq.s32.totalorder %v161_v34, %v168_v33 }
 0x2ac   :  { %v4679_v36 = vsel %vm172_vm6, 0.0, %v4499_v35  ;;  %v4681_v38 = vsel %vm173_vm7, 0.0, %v4499_v35 }
 0x2ad   :  { %v209_v60 = vadd.f32 %v207_v58, %v177_v57 }
 0x2af   :  { %v210_v61 = vpack.c.bf16 %v209_v60, %v208_v59 }
 0x2b1   :  { %3615 = vmatmul.mubr.msk.bf16.vlgmr.msra.gmra.mrb[0].mxu1 %vm178_vm3, %v210_v61 }
 0x2b2   :  { %3919 = vmatprep.mubr.msk.bf16.mxu1 %vm4495_vm4, %v4494_v13 }
 0x384   :  { %v309_v4 = vpop.f32.mrb[0].mxu1 }
 0x385   :  { %v310_v6 = vadd.f32 %v309_v4, %v225_v3  ;;  %v311_v9 = vpop.f32.mrb[1].mxu1 }
 0x386   :  { %v313_v10 = vpop.f32.mrb[2].mxu1  ;;  %v312_v16 = vadd.f32 %v311_v9, %v229_v5 }
 0x387   :  { %v314_v12 = vadd.f32 %v313_v10, %v225_v3  ;;  %v315_v14 = vpop.f32.mrb[3].mxu1  ;;  %v318_v18 = vmul.f32 0.25, %v310_v6 }
 0x388   :  { %v316_v17 = vadd.f32 %v315_v14, %v229_v5 }
 0x389   :  { %v319_v19 = vmul.f32 0.25, %v314_v12  ;;  %v4653_v21 = vpack.c.bf16 %v314_v12, %v310_v6 }
 0x38a   :  { %v4655_v22 = vpack.c.bf16 %v316_v17, %v312_v16 }
 0x38b   :  { %v4657_v25 = vpack.c.bf16 %v319_v19, %v318_v18  ;;  %324 = vrot.lane.b32.xlu1 %v4653_v21, %s4496_s17 }
 0x38c   :  { %3918 = vmatpush3.bf16.msra.mxu1 %v4655_v22 }
 0x38d   :  { %3929 = vmatprep.subr.bf16.mxu1 %v4494_v13 }
 0x38f   :  { %447 = vrot.lane.b32.xlu1 %v4653_v21, %s4497_s18 }
 0x393   :  { %445 = vrot.lane.b32.xlu1 %v4657_v25, %s4498_s19 }
 0x3fd   :  { %v325_v26 = vpop.permute.xlu1 %324 }
 0x3fe   :  { %v331_v27 = vsel %vm326_vm5, %v325_v26, 0 }
 0x3ff   :  { %3912 = vmatpush3.bf16.xpose.msra.mxu0 %v331_v27 }
 0x400   :  { %3923 = vmatprep.subr.bf16.mxu0 %v4494_v13 }
 0x401   :  { %v448_v28 = vpop.permute.xlu1 %447 }
 0x402   :  { %v453_v29 = vsel %vm326_vm5, %v448_v28, 0 }
 0x405   :  { %v446_v30 = vpop.permute.xlu1 %445 }
 0x406   :  { %3914 = vmatmul.mubr.msk.bf16.vlgmr.msra.gmra.mrb[4].mxu0 %vm326_vm5, %v4657_v25 }
 0x407   :  { %3924 = vmatpush3.bf16.xpose.msra.mxu0 %v453_v29  ;;  %3925 = vmatprep.mubr.msk.bf16.mxu0 %vm4495_vm4, %v4494_v13 }
 0x408   :  { %3935 = vmatprep.subr.bf16.mxu0 %v4494_v13 }
 0x40e   :  { %3926 = vmatmul.mubr.msk.bf16.vlgmr.msra.gmra.mrb[8].mxu0 %vm326_vm5, %v446_v30 }
 0x40f   :  { %3937 = vmatprep.mubr.msk.bf16.mxu0 %vm4495_vm4, %v4494_v13 }
 0x4d9   :  { %v367_v37 = vpop.f32.mrb[4].mxu0 }
 0x4da   :  { %v368_v39 = vadd.f32 %v367_v37, %v4679_v36  ;;  %v3915_v40 = vpop.f32.mrb[5].mxu0 }
 0x4db   :  { %v370_v41 = vpop.f32.mrb[6].mxu0 }
 0x4dc   :  { %v371_v42 = vadd.f32 %v370_v41, %v4681_v38  ;;  %v3916_v43 = vpop.f32.mrb[7].mxu0  ;;  %v374_v44 = vsel %vm326_vm5, %v368_v39, -inf  ;;  %v4233_v41 = vld [vmem:[#allocation2 + $0x40] ss:$8 sps:$4 sm:$0xff]  }
 0x4dd   :  { %375 = vmax.xlane.f32.xlu1 %v374_v44 }
 0x4de   :  { %v377_v45 = vsel %vm326_vm5, %v371_v42, -inf }
 0x4df   :  { %378 = vmax.xlane.f32.xlu0 %v377_v45 }
 0x4e1   :  { %v489_v46 = vpop.f32.mrb[8].mxu0 }
 0x4e2   :  { %v490_v47 = vadd.f32 %v489_v46, %v4679_v36  ;;  %v3927_v48 = vpop.f32.mrb[9].mxu0 }
 0x4e3   :  { %v492_v49 = vpop.f32.mrb[10].mxu0 }
 0x4e4   :  { %v493_v50 = vadd.f32 %v492_v49, %v4681_v38  ;;  %v3928_v51 = vpop.f32.mrb[11].mxu0  ;;  %v496_v52 = vsel %vm326_vm5, %v490_v47, -inf }
 0x4e5   :  { %497 = vmax.xlane.f32.xlu0 %v496_v52 }
 0x4e6   :  { %v499_v53 = vsel %vm326_vm5, %v493_v50, -inf }
 0x4e9   :  { %500 = vmax.xlane.f32.xlu0 %v499_v53 }
 0x4ee   :  { %672 = vrot.lane.b32.xlu1 %v4653_v21, %s4500_s20 }
 0x56a   :  { %v376_v54 = vpop.xlane.xlu1 %375 }
 0x56b   :  { %v380_v55 = vsub.f32 %v368_v39, %v376_v54 }
 0x56c   :  { %v379_v56 = vpop.xlane.xlu0 %378 }
 0x56d   :  { %v382_v57 = vmul.f32 1.442695, %v380_v55  ;;  %v381_v58 = vsub.f32 %v371_v42, %v379_v56  ;;  %v4234_v42 = vld [vmem:[#allocation2 + $0x50] ss:$8 sps:$4 sm:$0xff]  }
 0x56e   :  { %3936 = vmatpush3.bf16.msra.mxu0 %v4234_v42 }
 0x56f   :  { %4329 = vpow2.f32 %v382_v57  ;;  %v384_v59 = vmul.f32 1.442695, %v381_v58  ;;  %3947 = vmatprep.subr.bf16.mxu0 %v4494_v13 }
 0x571   :  { %4331 = vpow2.f32 %v384_v59 }
 0x572   :  { %v498_v60 = vpop.xlane.xlu0 %497 }
 0x573   :  { %v502_v61 = vsub.f32 %v490_v47, %v498_v60 }
 0x575   :  { %v504_v62 = vmul.f32 1.442695, %v502_v61 }
 0x576   :  { %v501_v1 = vpop.xlane.xlu0 %500 }
 0x577   :  { %4333 = vpow2.f32 %v504_v62  ;;  %v503_v3 = vsub.f32 %v493_v50, %v501_v1  ;;  %v673_v50 = vpop.permute.xlu1 %672 }
 0x578   :  { %v678_v54 = vsel %vm326_vm5, %v673_v50, 0 }
 0x579   :  { %v4330_v4 = vpop.eup %4329  ;;  %v506_v5 = vmul.f32 1.442695, %v503_v3 }
 0x57a   :  { %v386_v6 = vsel %vm326_vm5, %v4330_v4, 0.0 }
 0x57b   :  { %v4332_v9 = vpop.eup %4331  ;;  %4335 = vpow2.f32 %v506_v5  ;;  %387 = vadd.xlane.f32.xlu0 %v386_v6 }
 0x57c   :  { %v389_v10 = vsel %vm326_vm5, %v4332_v9, 0.0 }
 0x57f   :  { %390 = vadd.xlane.f32.xlu0 %v389_v10 }
 0x581   :  { %v4334_v12 = vpop.eup %4333 }
 0x582   :  { %v508_v14 = vsel %vm326_vm5, %v4334_v12, 0.0 }
 0x583   :  { %509 = vadd.xlane.f32.xlu0 %v508_v14 }
 0x585   :  { %v4336_v16 = vpop.eup %4335 }
 0x586   :  { %v511_v17 = vsel %vm326_vm5, %v4336_v16, 0.0 }
 0x587   :  { %512 = vadd.xlane.f32.xlu0 %v511_v17 }
 0x59d   :  { %520 = vrot.lane.b32.xlu0 %v4655_v22, %s4498_s19 }
 0x5a1   :  { %670 = vrot.lane.b32.xlu0 %v4657_v25, %s4501_s5 }
 0x608   :  { %v388_v18 = vpop.xlane.xlu0 %387 }
 0x609   :  { %4337 = vrcp.f32 %v388_v18 }
 0x60c   :  { %v391_v19 = vpop.xlane.xlu0 %390 }
 0x60d   :  { %4339 = vrcp.f32 %v391_v19 }
 0x610   :  { %v510_v26 = vpop.xlane.xlu0 %509 }
 0x611   :  { %4341 = vrcp.f32 %v510_v26 }
 0x613   :  { %v4338_v28 = vpop.eup %4337 }
 0x614   :  { %v513_v27 = vpop.xlane.xlu0 %512  ;;  %v393_v30 = vmul.f32 %v4338_v28, %v4330_v4 }
 0x615   :  { %4343 = vrcp.f32 %v513_v27 }
 0x617   :  { %v4340_v29 = vpop.eup %4339 }
 0x618   :  { %v395_v31 = vmul.f32 %v4340_v29, %v4332_v9  ;;  %v521_v33 = vpop.permute.xlu0 %520 }
 0x61a   :  { %v396_v32 = vpack.c.bf16 %v395_v31, %v393_v30 }
 0x61b   :  { %v4342_v34 = vpop.eup %4341 }
 0x61c   :  { %3920 = vmatmul.mubr.msk.bf16.vlgmr.msra.gmra.mrb[4].mxu1 %vm326_vm5, %v396_v32  ;;  %v515_v37 = vmul.f32 %v4342_v34, %v4334_v12  ;;  %v671_v55 = vpop.permute.xlu0 %670 }
 0x61d   :  { %3930 = vmatpush3.bf16.msra.mxu1 %v521_v33  ;;  %3931 = vmatprep.mubr.msk.bf16.mxu1 %vm4495_vm4, %v4494_v13 }
 0x61e   :  { %3941 = vmatprep.subr.bf16.mxu1 %v4494_v13 }
 0x61f   :  { %v4344_v35 = vpop.eup %4343 }
 0x620   :  { %v517_v39 = vmul.f32 %v4344_v35, %v4336_v16 }
 0x622   :  { %v518_v40 = vpack.c.bf16 %v517_v39, %v515_v37 }
 0x624   :  { %3932 = vmatmul.mubr.msk.bf16.vlgmr.msra.gmra.mrb[8].mxu1 %vm326_vm5, %v518_v40 }
 0x625   :  { %3943 = vmatprep.mubr.msk.bf16.mxu1 %vm4495_vm4, %v4494_v13  ;;  %3942 = vmatpush3.bf16.msra.mxu1 %v4233_v41 }
 0x626   :  { %3953 = vmatprep.subr.bf16.mxu1 %v4494_v13 }
 0x6ef   :  { %v434_v43 = vpop.f32.mrb[4].mxu1 }
 0x6f0   :  { %v3921_v44 = vpop.f32.mrb[5].mxu1 }
 0x6f1   :  { %v437_v45 = vpop.f32.mrb[6].mxu1 }
 0x6f2   :  { %v443_v46 = vpack.c.bf16 %v437_v45, %v434_v43  ;;  %v3922_v47 = vpop.f32.mrb[7].mxu1  ;;  %v4235_v45 = vld [vmem:[#allocation2 + $0x60] ss:$8 sps:$4 sm:$0xff]  }
 0x6f4   :  { %3944 = vmatmul.mubr.msk.bf16.vlgmr.msra.gmra.mrb[12].mxu1 %vm326_vm5, %v443_v46 }
 0x6f5   :  { %3955 = vmatprep.mubr.msk.bf16.mxu1 %vm4495_vm4, %v4494_v13 }
 0x6f7   :  { %v560_v48 = vpop.f32.mrb[8].mxu1 }
 0x6f8   :  { %v3933_v49 = vpop.f32.mrb[9].mxu1 }
 0x6f9   :  { %v563_v51 = vpop.f32.mrb[10].mxu1 }
 0x6fa   :  { %v569_v52 = vpack.c.bf16 %v563_v51, %v560_v48  ;;  %v3934_v53 = vpop.f32.mrb[11].mxu1 }
 0x6fc   :  { %3938 = vmatmul.mubr.msk.bf16.vlgmr.msra.gmra.mrb[12].mxu0 %vm326_vm5, %v569_v52 }
 0x6fd   :  { %3948 = vmatpush3.bf16.xpose.msra.mxu0 %v678_v54  ;;  %3949 = vmatprep.mubr.msk.bf16.mxu0 %vm4495_vm4, %v4494_v13 }
 0x6fe   :  { %3959 = vmatprep.subr.bf16.mxu0 %v4494_v13 }
 0x704   :  { %3950 = vmatmul.mubr.msk.bf16.vlgmr.msra.gmra.mrb[16].mxu0 %vm326_vm5, %v671_v55 }
 0x705   :  { %3961 = vmatprep.mubr.msk.bf16.mxu0 %vm4495_vm4, %v4494_v13  ;;  %3960 = vmatpush3.bf16.msra.mxu0 %v4235_v45 }
 0x706   :  { %3971 = vmatprep.subr.bf16.mxu0 %v4494_v13 }
 0x7c7   :  { %v663_v56 = vpop.f32.mrb[12].mxu1 }
 0x7c8   :  { %v3945_v57 = vpop.f32.mrb[13].mxu1 }
 0x7c9   :  { %v666_v58 = vpop.f32.mrb[14].mxu1 }
 0x7ca   :  { %v3946_v59 = vpop.f32.mrb[15].mxu1 }
 0x7cf   :  { %v613_v60 = vpop.f32.mrb[12].mxu0 }
 0x7d0   :  { %v4721_v61 = vadd.f32 %v663_v56, %v613_v60  ;;  %v3939_v62 = vpop.f32.mrb[13].mxu0 }
 0x7d1   :  { %v616_v1 = vpop.f32.mrb[14].mxu0 }
 0x7d2   :  { %v4723_v3 = vadd.f32 %v666_v58, %v616_v1  ;;  %v3940_v4 = vpop.f32.mrb[15].mxu0 }
 0x7d7   :  { %v714_v5 = vpop.f32.mrb[16].mxu0 }
 0x7d8   :  { %v715_v6 = vadd.f32 %v714_v5, %v4679_v36  ;;  %v3951_v9 = vpop.f32.mrb[17].mxu0 }
 0x7d9   :  { %v717_v10 = vpop.f32.mrb[18].mxu0 }
 0x7da   :  { %v718_v12 = vadd.f32 %v717_v10, %v4681_v38  ;;  %v3952_v14 = vpop.f32.mrb[19].mxu0  ;;  %v721_v16 = vsel %vm326_vm5, %v715_v6, -inf }
 0x7db   :  { %722 = vmax.xlane.f32.xlu1 %v721_v16  ;;  %v4236_v16 = vld [vmem:[#allocation2 + $0x70] ss:$8 sps:$4 sm:$0xff]  }
 0x7dc   :  { %v724_v17 = vsel %vm326_vm5, %v718_v12, -inf }
 0x7dd   :  { %725 = vmax.xlane.f32.xlu0 %v724_v17 }
 0x868   :  { %v723_v18 = vpop.xlane.xlu1 %722 }
 0x869   :  { %v727_v19 = vsub.f32 %v715_v6, %v723_v18 }
 0x86a   :  { %v726_v26 = vpop.xlane.xlu0 %725 }
 0x86b   :  { %v729_v27 = vmul.f32 1.442695, %v727_v19  ;;  %v728_v28 = vsub.f32 %v718_v12, %v726_v26 }
 0x86d   :  { %4345 = vpow2.f32 %v729_v27  ;;  %v731_v29 = vmul.f32 1.442695, %v728_v28 }
 0x86f   :  { %4347 = vpow2.f32 %v731_v29 }
 0x877   :  { %v4346_v30 = vpop.eup %4345 }
 0x878   :  { %v733_v31 = vsel %vm326_vm5, %v4346_v30, 0.0 }
 0x879   :  { %v4348_v32 = vpop.eup %4347  ;;  %734 = vadd.xlane.f32.xlu0 %v733_v31 }
 0x87a   :  { %v736_v33 = vsel %vm326_vm5, %v4348_v32, 0.0 }
 0x87b   :  { %737 = vadd.xlane.f32.xlu1 %v736_v33 }
 0x88c   :  { %848 = vrot.lane.b32.xlu1 %v4653_v21, %s4502_s21 }
 0x88f   :  { %744 = vrot.lane.b32.xlu0 %v4655_v22, %s4501_s5 }
 0x890   :  { %846 = vrot.lane.b32.xlu1 %v4657_v25, %s4503_s22 }
 0x906   :  { %v735_v34 = vpop.xlane.xlu0 %734 }
 0x907   :  { %4349 = vrcp.f32 %v735_v34 }
 0x908   :  { %v738_v35 = vpop.xlane.xlu1 %737 }
 0x909   :  { %4351 = vrcp.f32 %v738_v35 }
 0x90a   :  { %v745_v37 = vpop.permute.xlu0 %744 }
 0x90b   :  { %3954 = vmatpush3.bf16.msra.mxu1 %v745_v37 }
 0x90c   :  { %3965 = vmatprep.subr.bf16.mxu1 %v4494_v13  ;;  %v849_v21 = vpop.permute.xlu1 %848 }
 0x90d   :  { %v854_v44 = vsel %vm326_vm5, %v849_v21, 0 }
 0x910   :  { %v847_v25 = vpop.permute.xlu1 %846 }
 0x911   :  { %v4350_v39 = vpop.eup %4349 }
 0x912   :  { %v740_v41 = vmul.f32 %v4350_v39, %v4346_v30 }
 0x913   :  { %v4352_v40 = vpop.eup %4351 }
 0x914   :  { %v742_v42 = vmul.f32 %v4352_v40, %v4348_v32 }
 0x916   :  { %v743_v43 = vpack.c.bf16 %v742_v42, %v740_v41  ;;  %v1022_v41 = vld [vmem:[%s5193_s6 + $0x3] ss:$0 sm:$0xff] }
 0x918   :  { %3956 = vmatmul.mubr.msk.bf16.vlgmr.msra.gmra.mrb[16].mxu1 %vm326_vm5, %v743_v43 }
 0x919   :  { %3966 = vmatpush3.bf16.xpose.msra.mxu1 %v854_v44  ;;  %3967 = vmatprep.mubr.msk.bf16.mxu1 %vm4495_vm4, %v4494_v13 }
 0x91a   :  { %3977 = vmatprep.subr.bf16.mxu1 %v4494_v13 }
 0x920   :  { %3968 = vmatmul.mubr.msk.bf16.vlgmr.msra.gmra.mrb[20].mxu1 %vm326_vm5, %v847_v25 }
 0x921   :  { %3979 = vmatprep.mubr.msk.bf16.mxu1 %vm4495_vm4, %v4494_v13  ;;  %3978 = vmatpush3.bf16.msra.mxu1 %v4236_v16  ;;  %v4250_v16 = vld [vmem:[#allocation2 + $0xc0] ss:$8 sps:$4 sm:$0xff]  }
 0x9eb   :  { %v784_v46 = vpop.f32.mrb[16].mxu1 }
 0x9ec   :  { %v3957_v47 = vpop.f32.mrb[17].mxu1 }
 0x9ed   :  { %v787_v48 = vpop.f32.mrb[18].mxu1 }
 0x9ee   :  { %v793_v49 = vpack.c.bf16 %v787_v48, %v784_v46  ;;  %v3958_v50 = vpop.f32.mrb[19].mxu1 }
 0x9f0   :  { %3962 = vmatmul.mubr.msk.bf16.vlgmr.msra.gmra.mrb[20].mxu0 %vm326_vm5, %v793_v49 }
 0x9f1   :  { %3973 = vmatprep.mubr.msk.bf16.mxu0 %vm4495_vm4, %v4494_v13 }
 0x9f3   :  { %v890_v51 = vpop.f32.mrb[20].mxu1 }
 0x9f4   :  { %v891_v52 = vadd.f32 %v890_v51, %v4679_v36  ;;  %v3969_v53 = vpop.f32.mrb[21].mxu1  ;;  %v1345_v51 = vld [vmem:[%s5188_s1] sm:$0xff] }
 0x9f5   :  { %v893_v54 = vpop.f32.mrb[22].mxu1 }
 0x9f6   :  { %v894_v55 = vadd.f32 %v893_v54, %v4681_v38  ;;  %v3970_v56 = vpop.f32.mrb[23].mxu1  ;;  %v897_v57 = vsel %vm326_vm5, %v891_v52, -inf }
 0x9f7   :  { %898 = vmax.xlane.f32.xlu0 %v897_v57 }
 0x9f8   :  { %v900_v58 = vsel %vm326_vm5, %v894_v55, -inf }
 0x9f9   :  { %901 = vmax.xlane.f32.xlu1 %v900_v58 }
 0xa0a   :  { %920 = vrot.lane.b32.xlu1 %v4655_v22, %s4503_s22 }
 0xa0e   :  { %1348 = vperm.xlu1 %4220, %v1345_v51   ;;  %v4441_v51 = vld [vmem:[%s5190_s3 + $0x30] sm:$0xff] }
 0xa84   :  { %v899_v59 = vpop.xlane.xlu0 %898 }
 0xa85   :  { %v903_v60 = vsub.f32 %v891_v52, %v899_v59 }
 0xa86   :  { %v902_v62 = vpop.xlane.xlu1 %901 }
 0xa87   :  { %v905_v1 = vmul.f32 1.442695, %v903_v60  ;;  %v904_v4 = vsub.f32 %v894_v55, %v902_v62  ;;  %v1346_v60 = vld [vmem:[%s5188_s1 + $0x8] sm:$0xff] }
 0xa88   :  { %v4239_v62 = vld [vmem:[#allocation2 + $0x84] ss:$8 sps:$4 sm:$0xff]  }
 0xa89   :  { %4353 = vpow2.f32 %v905_v1  ;;  %v907_v5 = vmul.f32 1.442695, %v904_v4  ;;  %v4237_v1 = vld [vmem:[#allocation2 + $0x80] ss:$8 sps:$4 sm:$0xff]   ;;  %v4242_v4 = vld [vmem:[#allocation2 + $0x94] ss:$8 sps:$4 sm:$0xff]  }
 0xa8a   :  { %v921_v6 = vpop.permute.xlu1 %920 }
 0xa8b   :  { %4355 = vpow2.f32 %v907_v5  ;;  %3972 = vmatpush3.bf16.msra.mxu0 %v921_v6  ;;  %v4240_v5 = vld [vmem:[#allocation2 + $0x90] ss:$8 sps:$4 sm:$0xff]   ;;  %v4245_v6 = vld [vmem:[#allocation2 + $0xa4] ss:$8 sps:$4 sm:$0xff]  }
 0xa8c   :  { %1124 = vmatprep.subr.bf16.mxu0 %v4239_v62 }
 0xa93   :  { %v4354_v9 = vpop.eup %4353 }
 0xa94   :  { %v909_v10 = vsel %vm326_vm5, %v4354_v9, 0.0 }
 0xa95   :  { %v4356_v12 = vpop.eup %4355  ;;  %910 = vadd.xlane.f32.xlu0 %v909_v10  ;;  %v4246_v10 = vld [vmem:[#allocation2 + $0xb0] ss:$8 sps:$4 sm:$0xff]  }
 0xa96   :  { %v912_v14 = vsel %vm326_vm5, %v4356_v12, 0.0 }
 0xa99   :  { %913 = vadd.xlane.f32.xlu0 %v912_v14  ;;  %v4249_v14 = vld [vmem:[#allocation2 + $0x140] ss:$8 sps:$4 sm:$0xff]  }
 0xa9a   :  { %3778 = vmatprep.subr.bf16.mxu1 %v4249_v14 }
 0xac3   :  { %v837_v22 = vpop.f32.mrb[20].mxu0 }
 0xac4   :  { %v844_v17 = vadd.f32 %v837_v22, %v4721_v61  ;;  %v3963_v18 = vpop.f32.mrb[21].mxu0  ;;  %v4251_v22 = vld [vmem:[#allocation2 + $0x150] ss:$8 sps:$4 sm:$0xff]  }
 0xac5   :  { %v840_v19 = vpop.f32.mrb[22].mxu0  ;;  %v4253_v18 = vld [vmem:[#allocation2 + $0x160] ss:$8 sps:$4 sm:$0xff]  }
 0xac6   :  { %v845_v26 = vadd.f32 %v840_v19, %v4723_v3  ;;  %v3964_v27 = vpop.f32.mrb[23].mxu0  ;;  %v4254_v19 = vld [vmem:[#allocation2 + $0xe0] ss:$8 sps:$4 sm:$0xff]  }
 0xac7   :  { %v4256_v27 = vld [vmem:[#allocation2 + $0xf0] ss:$8 sps:$4 sm:$0xff]  }
 0xb22   :  { %v911_v28 = vpop.xlane.xlu0 %910 }
 0xb23   :  { %4357 = vrcp.f32 %v911_v28  ;;  %v4257_v28 = vld [vmem:[#allocation2 + $0x180] ss:$8 sps:$4 sm:$0xff]  }
 0xb26   :  { %v914_v29 = vpop.xlane.xlu0 %913 }
 0xb27   :  { %4359 = vrcp.f32 %v914_v29  ;;  %v4258_v29 = vld [vmem:[#allocation2 + $0x100] ss:$8 sps:$4 sm:$0xff]  }
 0xb2d   :  { %v4358_v30 = vpop.eup %4357 }
 0xb2e   :  { %v916_v32 = vmul.f32 %v4358_v30, %v4354_v9  ;;  %v4243_v9 = vld [vmem:[#allocation2 + $0xa0] ss:$8 sps:$4 sm:$0xff]   ;;  %v4259_v30 = vld [vmem:[#allocation2 + $0x190] ss:$8 sps:$4 sm:$0xff]  }
 0xb31   :  { %v4360_v31 = vpop.eup %4359 }
 0xb32   :  { %v918_v33 = vmul.f32 %v4360_v31, %v4356_v12  ;;  %v4248_v12 = vld [vmem:[#allocation2 + $0xb4] ss:$8 sps:$4 sm:$0xff]  }
 0xb34   :  { %v919_v34 = vpack.c.bf16 %v918_v33, %v916_v32 }
 0xb36   :  { %3974 = vmatmul.mubr.msk.bf16.vlgmr.msra.gmra.mrb[24].mxu0 %vm326_vm5, %v919_v34 }
 0xb37   :  { %1156 = vmatprep.mubr.bf16.mxu0 %v4493_v0  ;;  %1125 = vmatpush1.bf16.msra.mxu0 %v4237_v1 }
 0xb38   :  { %1126 = vmatprep.subr.bf16.mxu0 %v4242_v4 }
 0xb3b   :  { %1127 = vmatpush1.bf16.msra.mxu0 %v4240_v5 }
 0xb3c   :  { %1128 = vmatprep.subr.bf16.mxu0 %v4245_v6 }
 0xb3f   :  { %1129 = vmatpush1.bf16.msra.mxu0 %v4243_v9 }
 0xb40   :  { %1130 = vmatprep.subr.bf16.mxu0 %v4248_v12 }
 0xb43   :  { %1131 = vmatpush1.bf16.msra.mxu0 %v4246_v10 }
 0xb44   :  { %4193 = vmatprep.subr.bf16.mxu0 %v4581_v7 }
 0xc09   :  { %v960_v35 = vpop.f32.mrb[24].mxu0 }
 0xc0a   :  { %v3975_v61 = vpop.f32.mrb[25].mxu0 }
 0xc0b   :  { %v963_v37 = vpop.f32.mrb[26].mxu0 }
 0xc0c   :  { %v969_v39 = vpack.c.bf16 %v963_v37, %v960_v35  ;;  %v3976_v40 = vpop.f32.mrb[27].mxu0 }
 0xc0d   :  { %v1027_v40 = vld [vmem:[%s5193_s6 + $0x4] ss:$0 sm:$0xff] }
 0xc0e   :  { %3980 = vmatmul.mubr.msk.bf16.vlgmr.msra.gmra.mrb[24].mxu1 %vm326_vm5, %v969_v39 }
 0xc0f   :  { %3779 = vmatpush3.bf16.msra.mxu1 %v4250_v16 }
 0xc10   :  { %3780 = vmatprep.subr.bf16.mxu1 %v4251_v22 }
 0xce1   :  { %v1013_v3 = vpop.f32.mrb[24].mxu1 }
 0xce2   :  { %v1020_v42 = vadd.f32 %v1013_v3, %v844_v17  ;;  %v3981_v21 = vpop.f32.mrb[25].mxu1  ;;  %v4252_v17 = vld [vmem:[#allocation2 + $0xd0] ss:$8 sps:$4 sm:$0xff]  }
 0xce3   :  { %v1016_v43 = vpop.f32.mrb[26].mxu1  ;;  %3781 = vmatpush3.bf16.msra.mxu1 %v4252_v17  ;;  %v1349_v21 = vpop.permute.xlu1 %1348 }
 0xce4   :  { %v1023_v44 = vadd.f32 %v1022_v41, %v1020_v42  ;;  %v1021_v25 = vadd.f32 %v1016_v43, %v845_v26  ;;  %v3982_v45 = vpop.f32.mrb[27].mxu1  ;;  %3782 = vmatprep.subr.bf16.mxu1 %v4253_v18  ;;  %v4255_v26 = vld [vmem:[#allocation2 + $0x170] ss:$8 sps:$4 sm:$0xff]   ;;  %v1028_v43 = vld [vmem:[%s5193_s6 + $0x5] ss:$0 sm:$0xff]  ;;  %vm1353_vm8 = vcmp.eq.s32.totalorder %v4604_v15, %v1349_v21 }
 0xce6   :  { %v4767_v46 = vadd.f32 %v1023_v44, %v4618_v23  ;;  %v1024_v47 = vadd.f32 %v1022_v41, %v1021_v25 }
 0xce7   :  { %3783 = vmatpush3.bf16.msra.mxu1 %v4254_v19 }
 0xce8   :  { %v4770_v48 = vadd.f32 %v1024_v47, %v4621_v24  ;;  %v1029_v49 = vsel %vm178_vm3, %v4767_v46, 0.0  ;;  %3784 = vmatprep.subr.bf16.mxu1 %v4255_v26 }
 0xce9   :  { %1030 = vadd.xlane.f32.xlu0 %v1029_v49  ;;  %v3658_v49 = vsel %vm1353_vm8, 1.0, %v4494_v13 }
 0xcea   :  { %v1032_v50 = vsel %vm178_vm3, %v4770_v48, 0.0 }
 0xceb   :  { %3785 = vmatpush3.bf16.msra.mxu1 %v4256_v27 }
 0xcec   :  { %3786 = vmatprep.subr.bf16.mxu1 %v4257_v28 }
 0xced   :  { %1033 = vadd.xlane.f32.xlu0 %v1032_v50 }
 0xcef   :  { %3787 = vmatpush3.bf16.msra.mxu1 %v4258_v29 }
 0xcf0   :  { %3788 = vmatprep.subr.bf16.mxu1 %v4259_v30 }
 0xd76   :  { %v1031_v52 = vpop.xlane.xlu0 %1030 }
 0xd77   :  { %v1035_v23 = vmul.f32 0.015625, %v1031_v52  ;;  %v4261_v52 = vld [vmem:[#allocation2 + $0x1a0] ss:$8 sps:$4 sm:$0xff]  }
 0xd79   :  { %v1037_v53 = vsub.f32 %v4767_v46, %v1035_v23  ;;  %v4262_v23 = vld [vmem:[#allocation2 + $0x120] ss:$8 sps:$4 sm:$0xff]  }
 0xd7a   :  { %v1034_v54 = vpop.xlane.xlu0 %1033 }
 0xd7b   :  { %v1036_v24 = vmul.f32 0.015625, %v1034_v54  ;;  %v1039_v55 = vmul.f32 %v1037_v53, %v1037_v53 }
 0xd7d   :  { %v1038_v56 = vsub.f32 %v4770_v48, %v1036_v24  ;;  %v1041_v57 = vsel %vm178_vm3, %v1039_v55, 0.0 }
 0xd7e   :  { %1042 = vadd.xlane.f32.xlu0 %v1041_v57 }
 0xd7f   :  { %v1040_v58 = vmul.f32 %v1038_v56, %v1038_v56 }
 0xd81   :  { %v1044_v59 = vsel %vm178_vm3, %v1040_v58, 0.0 }
 0xd82   :  { %1045 = vadd.xlane.f32.xlu0 %v1044_v59 }
 0xd98   :  { %1351 = vperm.xlu0 %4219, %v1346_v60  }
 0xe0b   :  { %v1043_v31 = vpop.xlane.xlu0 %1042 }
 0xe0c   :  { %v1047_v32 = vmul.f32 0.015625, %v1043_v31 }
 0xe0e   :  { %v1049_v33 = vadd.f32 1e-05, %v1047_v32 }
 0xe0f   :  { %v1046_v34 = vpop.xlane.xlu0 %1045 }
 0xe10   :  { %4361 = vrsqrt.f32 %v1049_v33  ;;  %v1048_v35 = vmul.f32 0.015625, %v1046_v34 }
 0xe12   :  { %v1050_v61 = vadd.f32 1e-05, %v1048_v35  ;;  %v4267_v35 = vld [vmem:[#allocation2 + $0x1c4] ss:$8 sps:$4 sm:$0xff]  }
 0xe14   :  { %4363 = vrsqrt.f32 %v1050_v61  ;;  %v4265_v61 = vld [vmem:[#allocation2 + $0x1c0] ss:$8 sps:$4 sm:$0xff]  }
 0xe17   :  { %v1352_v50 = vpop.permute.xlu0 %1351 }
 0xe18   :  { %vm1354_vm9 = vcmp.eq.s32.totalorder %v4604_v15, %v1352_v50  ;;  %v4264_v15 = vld [vmem:[#allocation2 + $0x130] ss:$8 sps:$4 sm:$0xff]  }
 0xe1a   :  { %v4362_v37 = vpop.eup %4361 }
 0xe1b   :  { %v1053_v39 = vmul.f32 %v4362_v37, %v1037_v53  ;;  %v3632_v53 = vld [vmem:[%s5193_s6 + $0x6] ss:$8 sm:$0x3]  ;;  %v4270_v37 = vld [vmem:[#allocation2 + $0x1d4] ss:$8 sps:$4 sm:$0xff]  }
 0xe1c   :  { %v1074_v54 = vrot.slane %v3632_v53, %v4640_v63  ;;  %v1078_v24 = vrot.slane %v3632_v53, %v4645_v2 }
 0xe1d   :  { %v1055_v41 = vmul.f32 %v1053_v39, %v1027_v40  ;;  %v4268_v39 = vld [vmem:[#allocation2 + $0x1d0] ss:$8 sps:$4 sm:$0xff]  }
 0xe1e   :  { %v4364_v3 = vpop.eup %4363 }
 0xe1f   :  { %v1054_v42 = vmul.f32 %v4364_v3, %v1038_v56  ;;  %v1057_v25 = vadd.f32 %v1055_v41, %v1028_v43  ;;  %v4271_v3 = vld [vmem:[#allocation2 + $0x1e0] ss:$8 sps:$4 sm:$0xff]   ;;  %v4274_v41 = vld [vmem:[#allocation2 + $0x1f0] ss:$8 sps:$4 sm:$0xff]  }
 0xe21   :  { %v1056_v44 = vmul.f32 %v1054_v42, %v1027_v40  ;;  %v4273_v40 = vld [vmem:[#allocation2 + $0x1e4] ss:$8 sps:$4 sm:$0xff]   ;;  %v4276_v42 = vld [vmem:[#allocation2 + $0x1f4] ss:$8 sps:$4 sm:$0xff]  }
 0xe23   :  { %v1058_v45 = vadd.f32 %v1056_v44, %v1028_v43  ;;  %v1205_v43 = vld [vmem:[%s5193_s6 + $0x7] ss:$0 sm:$0xff] }
 0xe25   :  { %v1059_v47 = vpack.c.bf16 %v1058_v45, %v1057_v25 }
 0xe27   :  { %3641 = vmatmul.mubr.msk.bf16.vlgmr.msra.gmra.mrb[28].mxu0 %vm178_vm3, %v1059_v47 }
 0xe28   :  { %4195 = vmatpush3.bf16.msra.mxu0 %v4581_v7  ;;  %3997 = vmatprep.mubr.msk.f32.mxu0 %vm66_vm0, %v3658_v49  ;;  %v3659_v7 = vsel %vm1354_vm9, 1.0, %v4494_v13 }
 0xe29   :  { %4197 = vmatprep.subr.bf16.mxu0 %v4583_v8 }
 0xe2c   :  { %4199 = vmatpush3.bf16.msra.mxu0 %v4583_v8  ;;  %v4260_v8 = vld [vmem:[#allocation2 + $0x110] ss:$8 sps:$4 sm:$0xff]  }
 0xe2d   :  { %4201 = vmatprep.subr.bf16.mxu0 %v4594_v11  ;;  %3789 = vmatpush3.bf16.msra.mxu1 %v4260_v8 }
 0xe2e   :  { %3790 = vmatprep.subr.bf16.mxu1 %v4261_v52 }
 0xe30   :  { %4203 = vmatpush3.bf16.msra.mxu0 %v4594_v11  ;;  %v4263_v11 = vld [vmem:[#allocation2 + $0x1b0] ss:$8 sps:$4 sm:$0xff]  }
 0xe31   :  { %3995 = vmatprep.subr.mxu0 %v4441_v51  ;;  %3791 = vmatpush3.bf16.msra.mxu1 %v4262_v23 }
 0xe32   :  { %3792 = vmatprep.subr.bf16.mxu1 %v4263_v11 }
 0xe34   :  { %3996 = vmatpush3.msra.mxu0 %v4441_v51 }
 0xe35   :  { %3998 = vmatmul.mubr.msk.f32.vlgmr.msra.gmra.mrb[2].mxu0 %vm66_vm0, %v3659_v7  ;;  %3793 = vmatpush3.bf16.msra.mxu1 %v4264_v15 }
 0xe36   :  { %1573 = vmatprep.mubr.bf16.mxu0 %v4493_v0  ;;  %4000 = vmatprep.subr.bf16.mxu1 %v4494_v13 }
 0xe37   :  { %1541 = vmatprep.subr.bf16.mxu0 %v4267_v35 }
 0xe38   :  { %1542 = vmatpush1.bf16.msra.mxu0 %v4265_v61 }
 0xe39   :  { %1543 = vmatprep.subr.bf16.mxu0 %v4270_v37  ;;  %v1440_v37 = vld [vmem:[%s5189_s2] sm:$0xff] }
 0xe3c   :  { %1544 = vmatpush1.bf16.msra.mxu0 %v4268_v39  ;;  %v1441_v39 = vld [vmem:[%s5189_s2 + $0x8] sm:$0xff] }
 0xe3d   :  { %1545 = vmatprep.subr.bf16.mxu0 %v4273_v40  ;;  %v4889_v40 = vadd.f32 %v1440_v37, %v4679_v36 }
 0xe40   :  { %1546 = vmatpush1.bf16.msra.mxu0 %v4271_v3  ;;  %v4892_v3 = vadd.f32 %v1441_v39, %v4681_v38 }
 0xe41   :  { %1547 = vmatprep.subr.bf16.mxu0 %v4276_v42 }
 0xe44   :  { %1548 = vmatpush1.bf16.msra.mxu0 %v4274_v41 }
 0xe45   :  { %4012 = vmatprep.subr.bf16.mxu0 %v4494_v13 }
 0xefa   :  { %v1158_v55 = vpop.f32.mrb[28].mxu0 }
 0xefb   :  { %v1159_v56 = vadd.f32 %v1158_v55, %v1074_v54  ;;  %v1160_v57 = vpop.f32.mrb[29].mxu0 }
 0xefc   :  { %v1161_v58 = vadd.f32 %v1160_v57, %v1078_v24  ;;  %v1162_v59 = vpop.f32.mrb[30].mxu0 }
 0xefd   :  { %v1163_v60 = vadd.f32 %v1162_v59, %v1074_v54  ;;  %v1164_v62 = vpop.f32.mrb[31].mxu0  ;;  %v1167_v4 = vmax.f32 %v1159_v56, 0.0  ;;  %v1445_v59 = vld [vmem:[%s5193_s6 + $0x11] ss:$0 sm:$0xff] }
 0xefe   :  { %v1165_v1 = vadd.f32 %v1164_v62, %v1078_v24  ;;  %v1168_v6 = vmax.f32 %v1161_v58, 0.0 }
 0xeff   :  { %v1169_v5 = vmax.f32 %v1163_v60, 0.0 }
 0xf00   :  { %v1170_v9 = vmax.f32 %v1165_v1, 0.0 }
 0xf01   :  { %v1171_v10 = vpack.c.bf16 %v1169_v5, %v1167_v4  ;;  %v3662_v5 = vld [vmem:[%s5193_s6 + $0x12] ss:$8 sm:$0x3] }
 0xf02   :  { %v1172_v12 = vpack.c.bf16 %v1170_v9, %v1168_v6  ;;  %v1491_v6 = vrot.slane %v3662_v5, %v4640_v63 }
 0xf04   :  { %1334 = vmatprep.mubr.bf16.mxu1 %v1172_v12 }
 0xf05   :  { %1335 = vmatmul.mubr.bf16.vlgmr.msra.gmra.mrb[28].mxu1 %v1171_v10  ;;  %v1495_v10 = vrot.slane %v3662_v5, %v4645_v2 }
 0xf06   :  { %4002 = vmatprep.mubr.msk.bf16.mxu1 %vm4495_vm4, %v4494_v13 }
 0xf08   :  { %v3999_v14 = vpop.f32.mrb[2].mxu0 }
 0xf09   :  { %v4818_v16 = vadd.f32 %v3999_v14, %v4615_v20  ;;  %v1431_v22 = vpop.f32.mrb[3].mxu0 }
 0xf0a   :  { %v4821_v17 = vadd.f32 %v1431_v22, %v4615_v20 }
 0xf0b   :  { %v1449_v18 = vsel %vm178_vm3, %v4818_v16, 0.0 }
 0xf0c   :  { %1450 = vadd.xlane.f32.xlu0 %v1449_v18  ;;  %v1446_v19 = vsel %vm178_vm3, %v4821_v17, 0.0 }
 0xf0d   :  { %1447 = vadd.xlane.f32.xlu1 %v1446_v19 }
 0xf99   :  { %v1451_v26 = vpop.xlane.xlu0 %1450 }
 0xf9a   :  { %v1453_v27 = vmul.f32 0.015625, %v1451_v26  ;;  %v1448_v28 = vpop.xlane.xlu1 %1447 }
 0xf9b   :  { %v1452_v29 = vmul.f32 0.015625, %v1448_v28 }
 0xf9c   :  { %v1455_v30 = vsub.f32 %v4818_v16, %v1453_v27 }
 0xf9d   :  { %v1454_v31 = vsub.f32 %v4821_v17, %v1452_v29 }
 0xf9e   :  { %v1457_v33 = vmul.f32 %v1455_v30, %v1455_v30 }
 0xf9f   :  { %v1456_v32 = vmul.f32 %v1454_v31, %v1454_v31 }
 0xfa0   :  { %v1461_v34 = vsel %vm178_vm3, %v1457_v33, 0.0 }
 0xfa1   :  { %v1458_v20 = vsel %vm178_vm3, %v1456_v32, 0.0 }
 0xfa2   :  { %1459 = vadd.xlane.f32.xlu1 %v1458_v20 }
 0xfa6   :  { %1462 = vadd.xlane.f32.xlu1 %v1461_v34 }
 0xfd8   :  { %v3794_v21 = vpop.f32.mrb[28].mxu1 }
 0xfd9   :  { %v3795_v44 = vpop.f32.mrb[29].mxu1 }
 0xfda   :  { %v3796_v25 = vadd.f32 %v3795_v44, %v3794_v21  ;;  %v3797_v45 = vpop.f32.mrb[30].mxu1 }
 0xfdb   :  { %v3798_v47 = vpop.f32.mrb[31].mxu1 }
 0xfdc   :  { %v1337_v49 = vadd.f32 %v3796_v25, %v1205_v43  ;;  %v3799_v50 = vadd.f32 %v3798_v47, %v3797_v45 }
 0xfde   :  { %v1340_v51 = vadd.f32 %v3799_v50, %v1205_v43  ;;  %v4836_v7 = vadd.f32 %v1337_v49, %v4767_v46  ;;  %v1444_v46 = vld [vmem:[%s5193_s6 + $0x10] ss:$0 sm:$0xff] }
 0xfe0   :  { %v4839_v8 = vadd.f32 %v1340_v51, %v4770_v48 }
 0xfe2   :  { %v2402_v52 = vpack.c.bf16 %v4839_v8, %v4836_v7 }
0x102f   :  { %v1460_v23 = vpop.xlane.xlu1 %1459 }
0x1030   :  { %v1464_v11 = vmul.f32 0.015625, %v1460_v23 }
0x1032   :  { %v1466_v15 = vadd.f32 1e-05, %v1464_v11 }
0x1033   :  { %v1463_v53 = vpop.xlane.xlu1 %1462 }
0x1034   :  { %4365 = vrsqrt.f32 %v1466_v15  ;;  %v1465_v54 = vmul.f32 0.015625, %v1463_v53 }
0x1036   :  { %v1467_v24 = vadd.f32 1e-05, %v1465_v54 }
0x1038   :  { %4367 = vrsqrt.f32 %v1467_v24 }
0x103e   :  { %v4366_v55 = vpop.eup %4365 }
0x103f   :  { %v1470_v56 = vmul.f32 %v4366_v55, %v1454_v31 }
0x1041   :  { %v1472_v48 = vmul.f32 %v1470_v56, %v1444_v46 }
0x1042   :  { %v4368_v57 = vpop.eup %4367 }
0x1043   :  { %v1471_v58 = vmul.f32 %v4368_v57, %v1455_v30  ;;  %v1474_v62 = vadd.f32 %v1472_v48, %v1445_v59 }
0x1045   :  { %v1473_v60 = vmul.f32 %v1471_v58, %v1444_v46 }
0x1047   :  { %v1475_v1 = vadd.f32 %v1473_v60, %v1445_v59 }
0x1049   :  { %v1476_v4 = vpack.c.bf16 %v1475_v1, %v1474_v62 }
0x104b   :  { %3671 = vmatmul.mubr.msk.bf16.vlgmr.msra.gmra.mrb[32].mxu0 %vm178_vm3, %v1476_v4 }
0x104c   :  { %4014 = vmatprep.mubr.msk.bf16.mxu0 %vm4495_vm4, %v4494_v13 }
0x111e   :  { %v1575_v9 = vpop.f32.mrb[32].mxu0 }
0x111f   :  { %v1576_v12 = vadd.f32 %v1575_v9, %v1491_v6  ;;  %v1577_v14 = vpop.f32.mrb[33].mxu0 }
0x1120   :  { %v1579_v22 = vpop.f32.mrb[34].mxu0  ;;  %v1578_v26 = vadd.f32 %v1577_v14, %v1495_v10 }
0x1121   :  { %v1580_v18 = vadd.f32 %v1579_v22, %v1491_v6  ;;  %v1581_v19 = vpop.f32.mrb[35].mxu0  ;;  %v1584_v28 = vmul.f32 0.25, %v1576_v12 }
0x1122   :  { %v1582_v27 = vadd.f32 %v1581_v19, %v1495_v10 }
0x1123   :  { %v1585_v29 = vmul.f32 0.25, %v1580_v18  ;;  %v4857_v30 = vpack.c.bf16 %v1580_v18, %v1576_v12 }
0x1124   :  { %v4859_v31 = vpack.c.bf16 %v1582_v27, %v1578_v26 }
0x1125   :  { %v4861_v32 = vpack.c.bf16 %v1585_v29, %v1584_v28  ;;  %1712 = vrot.lane.b32.xlu0 %v4857_v30, %s4497_s18  ;;  %1590 = vrot.lane.b32.xlu1 %v4857_v30, %s4496_s17 }
0x1129   :  { %1710 = vrot.lane.b32.xlu1 %v4861_v32, %s4498_s19 }
0x1197   :  { %v1713_v20 = vpop.permute.xlu0 %1712  ;;  %v1591_v33 = vpop.permute.xlu1 %1590 }
0x1198   :  { %v1718_v34 = vsel %vm326_vm5, %v1713_v20, 0  ;;  %v1596_v35 = vsel %vm326_vm5, %v1591_v33, 0 }
0x1199   :  { %4001 = vmatpush3.bf16.xpose.msra.mxu1 %v1596_v35  ;;  %4013 = vmatpush3.bf16.xpose.msra.mxu0 %v1718_v34 }
0x119a   :  { %4006 = vmatprep.subr.bf16.mxu1 %v4494_v13  ;;  %4024 = vmatprep.subr.bf16.mxu0 %v4494_v13 }
0x119b   :  { %v1711_v61 = vpop.permute.xlu1 %1710 }
0x11a0   :  { %4003 = vmatmul.mubr.msk.bf16.vlgmr.msra.gmra.mrb[32].mxu1 %vm326_vm5, %v4861_v32  ;;  %4015 = vmatmul.mubr.msk.bf16.vlgmr.msra.gmra.mrb[36].mxu0 %vm326_vm5, %v1711_v61 }
0x11a1   :  { %4007 = vmatpush3.bf16.msra.mxu1 %v4859_v31  ;;  %4008 = vmatprep.mubr.msk.bf16.mxu1 %vm4495_vm4, %v4494_v13 }
0x11a2   :  { %4018 = vmatprep.subr.bf16.mxu1 %v4494_v13  ;;  %4026 = vmatprep.mubr.msk.bf16.mxu0 %vm4495_vm4, %v4494_v13 }
0x1273   :  { %v1632_v41 = vpop.f32.mrb[32].mxu1  ;;  %v1754_v42 = vpop.f32.mrb[36].mxu0 }
0x1274   :  { %v1633_v21 = vadd.f32 %v1632_v41, %v4889_v40  ;;  %v4004_v43 = vpop.f32.mrb[33].mxu1  ;;  %v4016_v44 = vpop.f32.mrb[37].mxu0  ;;  %v1755_v47 = vadd.f32 %v1754_v42, %v4889_v40 }
0x1275   :  { %v1635_v25 = vpop.f32.mrb[34].mxu1  ;;  %v1757_v45 = vpop.f32.mrb[38].mxu0  ;;  %v4277_v43 = vld [vmem:[#allocation2 + $0x200] ss:$8 sps:$4 sm:$0xff]   ;;  %v4278_v44 = vld [vmem:[#allocation2 + $0x210] ss:$8 sps:$4 sm:$0xff]  }
0x1276   :  { %v1636_v49 = vadd.f32 %v1635_v25, %v4892_v3  ;;  %v4005_v50 = vpop.f32.mrb[35].mxu1  ;;  %v4017_v51 = vpop.f32.mrb[39].mxu0  ;;  %v1639_v23 = vsel %vm326_vm5, %v1633_v21, -inf  ;;  %v1758_v11 = vadd.f32 %v1757_v45, %v4892_v3  ;;  %v1761_v53 = vsel %vm326_vm5, %v1755_v47, -inf  ;;  %4025 = vmatpush3.bf16.msra.mxu0 %v4278_v44 }
0x1277   :  { %1640 = vmax.xlane.f32.xlu1 %v1639_v23  ;;  %4036 = vmatprep.subr.bf16.mxu0 %v4494_v13 }
0x1278   :  { %v1642_v15 = vsel %vm326_vm5, %v1636_v49, -inf  ;;  %v1764_v54 = vsel %vm326_vm5, %v1758_v11, -inf }
0x1279   :  { %1643 = vmax.xlane.f32.xlu0 %v1642_v15 }
0x127b   :  { %1762 = vmax.xlane.f32.xlu1 %v1761_v53 }
0x127d   :  { %1765 = vmax.xlane.f32.xlu0 %v1764_v54 }
0x1304   :  { %v1641_v24 = vpop.xlane.xlu1 %1640 }
0x1305   :  { %v1645_v55 = vsub.f32 %v1633_v21, %v1641_v24 }
0x1306   :  { %v1644_v56 = vpop.xlane.xlu0 %1643 }
0x1307   :  { %v1647_v46 = vmul.f32 1.442695, %v1645_v55  ;;  %v1646_v57 = vsub.f32 %v1636_v49, %v1644_v56 }
0x1308   :  { %v1763_v48 = vpop.xlane.xlu1 %1762 }
0x1309   :  { %4369 = vpow2.f32 %v1647_v46  ;;  %v1649_v58 = vmul.f32 1.442695, %v1646_v57  ;;  %v1767_v59 = vsub.f32 %v1755_v47, %v1763_v48 }
0x130a   :  { %v1766_v60 = vpop.xlane.xlu0 %1765 }
0x130b   :  { %4371 = vpow2.f32 %v1649_v58  ;;  %v1769_v62 = vmul.f32 1.442695, %v1767_v59  ;;  %v1768_v1 = vsub.f32 %v1758_v11, %v1766_v60 }
0x130d   :  { %4373 = vpow2.f32 %v1769_v62  ;;  %v1771_v4 = vmul.f32 1.442695, %v1768_v1 }
0x130f   :  { %4375 = vpow2.f32 %v1771_v4 }
0x1313   :  { %v4370_v5 = vpop.eup %4369 }
0x1314   :  { %v1651_v6 = vsel %vm326_vm5, %v4370_v5, 0.0 }
0x1315   :  { %v4372_v9 = vpop.eup %4371  ;;  %1652 = vadd.xlane.f32.xlu1 %v1651_v6 }
0x1316   :  { %v1654_v10 = vsel %vm326_vm5, %v4372_v9, 0.0 }
0x1317   :  { %v4374_v12 = vpop.eup %4373  ;;  %1655 = vadd.xlane.f32.xlu0 %v1654_v10 }
0x1318   :  { %v1773_v14 = vsel %vm326_vm5, %v4374_v12, 0.0 }
0x1319   :  { %v4376_v22 = vpop.eup %4375  ;;  %1774 = vadd.xlane.f32.xlu1 %v1773_v14 }
0x131a   :  { %v1776_v18 = vsel %vm326_vm5, %v4376_v22, 0.0 }
0x131b   :  { %1777 = vadd.xlane.f32.xlu0 %v1776_v18 }
0x132a   :  { %1785 = vrot.lane.b32.xlu1 %v4859_v31, %s4498_s19 }
0x132e   :  { %1935 = vrot.lane.b32.xlu1 %v4861_v32, %s4501_s5 }
0x1331   :  { %1937 = vrot.lane.b32.xlu0 %v4857_v30, %s4500_s20 }
0x13a2   :  { %v1653_v19 = vpop.xlane.xlu1 %1652 }
0x13a3   :  { %4377 = vrcp.f32 %v1653_v19 }
0x13a4   :  { %v1656_v26 = vpop.xlane.xlu0 %1655 }
0x13a5   :  { %4379 = vrcp.f32 %v1656_v26 }
0x13a6   :  { %v1775_v27 = vpop.xlane.xlu1 %1774 }
0x13a8   :  { %v1778_v28 = vpop.xlane.xlu0 %1777 }
0x13a9   :  { %4381 = vrcp.f32 %v1778_v28 }
0x13aa   :  { %4383 = vrcp.f32 %v1775_v27  ;;  %v1786_v37 = vpop.permute.xlu1 %1785 }
0x13ac   :  { %v1938_v11 = vpop.permute.xlu0 %1937 }
0x13ad   :  { %v4378_v29 = vpop.eup %4377  ;;  %v1943_v24 = vsel %vm326_vm5, %v1938_v11, 0 }
0x13ae   :  { %v1658_v33 = vmul.f32 %v4378_v29, %v4370_v5  ;;  %v1936_v55 = vpop.permute.xlu1 %1935 }
0x13af   :  { %v4380_v20 = vpop.eup %4379 }
0x13b0   :  { %v1660_v34 = vmul.f32 %v4380_v20, %v4372_v9 }
0x13b2   :  { %v1661_v35 = vpack.c.bf16 %v1660_v34, %v1658_v33 }
0x13b3   :  { %v4382_v61 = vpop.eup %4381 }
0x13b4   :  { %4009 = vmatmul.mubr.msk.bf16.vlgmr.msra.gmra.mrb[36].mxu1 %vm326_vm5, %v1661_v35  ;;  %v4384_v39 = vpop.eup %4383  ;;  %v1782_v41 = vmul.f32 %v4382_v61, %v4376_v22 }
0x13b5   :  { %4019 = vmatpush3.bf16.msra.mxu1 %v1786_v37  ;;  %4020 = vmatprep.mubr.msk.bf16.mxu1 %vm4495_vm4, %v4494_v13  ;;  %v1780_v42 = vmul.f32 %v4384_v39, %v4374_v12 }
0x13b6   :  { %4030 = vmatprep.subr.bf16.mxu1 %v4494_v13 }
0x13b7   :  { %v1783_v21 = vpack.c.bf16 %v1782_v41, %v1780_v42 }
0x13bc   :  { %4021 = vmatmul.mubr.msk.bf16.vlgmr.msra.gmra.mrb[40].mxu1 %vm326_vm5, %v1783_v21 }
0x13bd   :  { %4032 = vmatprep.mubr.msk.bf16.mxu1 %vm4495_vm4, %v4494_v13  ;;  %4031 = vmatpush3.bf16.msra.mxu1 %v4277_v43 }
0x13be   :  { %4042 = vmatprep.subr.bf16.mxu1 %v4494_v13 }
0x1487   :  { %v1699_v25 = vpop.f32.mrb[36].mxu1 }
0x1488   :  { %v4010_v45 = vpop.f32.mrb[37].mxu1 }
0x1489   :  { %v1702_v47 = vpop.f32.mrb[38].mxu1 }
0x148a   :  { %v1708_v49 = vpack.c.bf16 %v1702_v47, %v1699_v25  ;;  %v4011_v50 = vpop.f32.mrb[39].mxu1  ;;  %v4279_v47 = vld [vmem:[#allocation2 + $0x220] ss:$8 sps:$4 sm:$0xff]  }
0x148c   :  { %4033 = vmatmul.mubr.msk.bf16.vlgmr.msra.gmra.mrb[44].mxu1 %vm326_vm5, %v1708_v49 }
0x148d   :  { %4044 = vmatprep.mubr.msk.bf16.mxu1 %vm4495_vm4, %v4494_v13 }
0x148f   :  { %v1825_v51 = vpop.f32.mrb[40].mxu1 }
0x1490   :  { %v4022_v23 = vpop.f32.mrb[41].mxu1 }
0x1491   :  { %v1828_v15 = vpop.f32.mrb[42].mxu1 }
0x1492   :  { %v1834_v53 = vpack.c.bf16 %v1828_v15, %v1825_v51  ;;  %v4023_v54 = vpop.f32.mrb[43].mxu1 }
0x1494   :  { %4027 = vmatmul.mubr.msk.bf16.vlgmr.msra.gmra.mrb[40].mxu0 %vm326_vm5, %v1834_v53 }
0x1495   :  { %4037 = vmatpush3.bf16.xpose.msra.mxu0 %v1943_v24  ;;  %4038 = vmatprep.mubr.msk.bf16.mxu0 %vm4495_vm4, %v4494_v13 }
0x1496   :  { %4048 = vmatprep.subr.bf16.mxu0 %v4494_v13 }
0x149c   :  { %4039 = vmatmul.mubr.msk.bf16.vlgmr.msra.gmra.mrb[44].mxu0 %vm326_vm5, %v1936_v55 }
0x149d   :  { %4050 = vmatprep.mubr.msk.bf16.mxu0 %vm4495_vm4, %v4494_v13  ;;  %4049 = vmatpush3.bf16.msra.mxu0 %v4279_v47 }
0x149e   :  { %4060 = vmatprep.subr.bf16.mxu0 %v4494_v13 }
0x155f   :  { %v1928_v56 = vpop.f32.mrb[44].mxu1 }
0x1560   :  { %v4034_v46 = vpop.f32.mrb[45].mxu1 }
0x1561   :  { %v1931_v57 = vpop.f32.mrb[46].mxu1 }
0x1562   :  { %v4035_v48 = vpop.f32.mrb[47].mxu1 }
0x1567   :  { %v1878_v58 = vpop.f32.mrb[40].mxu0 }
0x1568   :  { %v4932_v59 = vadd.f32 %v1928_v56, %v1878_v58  ;;  %v4028_v60 = vpop.f32.mrb[41].mxu0 }
0x1569   :  { %v1881_v62 = vpop.f32.mrb[42].mxu0 }
0x156a   :  { %v4934_v1 = vadd.f32 %v1931_v57, %v1881_v62  ;;  %v4029_v4 = vpop.f32.mrb[43].mxu0 }
0x156f   :  { %v1979_v5 = vpop.f32.mrb[44].mxu0 }
0x1570   :  { %v1980_v6 = vadd.f32 %v1979_v5, %v4889_v40  ;;  %v4040_v9 = vpop.f32.mrb[45].mxu0 }
0x1571   :  { %v1982_v10 = vpop.f32.mrb[46].mxu0 }
0x1572   :  { %v1983_v12 = vadd.f32 %v1982_v10, %v4892_v3  ;;  %v4041_v14 = vpop.f32.mrb[47].mxu0  ;;  %v1986_v22 = vsel %vm326_vm5, %v1980_v6, -inf }
0x1573   :  { %1987 = vmax.xlane.f32.xlu1 %v1986_v22 }
0x1574   :  { %v1989_v18 = vsel %vm326_vm5, %v1983_v12, -inf }
0x1575   :  { %1990 = vmax.xlane.f32.xlu0 %v1989_v18 }
0x1600   :  { %v1988_v19 = vpop.xlane.xlu1 %1987 }
0x1601   :  { %v1992_v26 = vsub.f32 %v1980_v6, %v1988_v19 }
0x1602   :  { %v1991_v27 = vpop.xlane.xlu0 %1990 }
0x1603   :  { %v1994_v28 = vmul.f32 1.442695, %v1992_v26  ;;  %v1993_v29 = vsub.f32 %v1983_v12, %v1991_v27 }
0x1605   :  { %4385 = vpow2.f32 %v1994_v28  ;;  %v1996_v20 = vmul.f32 1.442695, %v1993_v29 }
0x1607   :  { %4387 = vpow2.f32 %v1996_v20 }
0x160f   :  { %v4386_v33 = vpop.eup %4385 }
0x1610   :  { %v1998_v34 = vsel %vm326_vm5, %v4386_v33, 0.0 }
0x1611   :  { %v4388_v35 = vpop.eup %4387  ;;  %1999 = vadd.xlane.f32.xlu0 %v1998_v34 }
0x1612   :  { %v2001_v61 = vsel %vm326_vm5, %v4388_v35, 0.0 }
0x1613   :  { %2002 = vadd.xlane.f32.xlu1 %v2001_v61 }
0x1624   :  { %2113 = vrot.lane.b32.xlu1 %v4857_v30, %s4502_s21 }
0x1627   :  { %2009 = vrot.lane.b32.xlu0 %v4859_v31, %s4501_s5 }
0x1628   :  { %2111 = vrot.lane.b32.xlu1 %v4861_v32, %s4503_s22 }
0x169e   :  { %v2000_v37 = vpop.xlane.xlu0 %1999 }
0x169f   :  { %4389 = vrcp.f32 %v2000_v37 }
0x16a0   :  { %v2003_v39 = vpop.xlane.xlu1 %2002 }
0x16a1   :  { %4391 = vrcp.f32 %v2003_v39  ;;  %v4281_v39 = vld [vmem:[#allocation2 + $0x280] ss:$8 sps:$4 sm:$0xff]  }
0x16a2   :  { %v2010_v41 = vpop.permute.xlu0 %2009 }
0x16a3   :  { %4043 = vmatpush3.bf16.msra.mxu1 %v2010_v41 }
0x16a4   :  { %4054 = vmatprep.subr.bf16.mxu1 %v4494_v13  ;;  %v2114_v25 = vpop.permute.xlu1 %2113 }
0x16a5   :  { %v2119_v45 = vsel %vm326_vm5, %v2114_v25, 0  ;;  %v2287_v25 = vld [vmem:[%s5193_s6 + $0x13] ss:$0 sm:$0xff] }
0x16a8   :  { %v2112_v32 = vpop.permute.xlu1 %2111 }
0x16a9   :  { %v4390_v42 = vpop.eup %4389 }
0x16aa   :  { %v2005_v43 = vmul.f32 %v4390_v42, %v4386_v33  ;;  %v4282_v42 = vld [vmem:[#allocation2 + $0x290] ss:$8 sps:$4 sm:$0xff]  }
0x16ab   :  { %v4392_v21 = vpop.eup %4391 }
0x16ac   :  { %v2007_v44 = vmul.f32 %v4392_v21, %v4388_v35  ;;  %v4283_v21 = vld [vmem:[#allocation2 + $0x2a0] ss:$8 sps:$4 sm:$0xff]  }
0x16ae   :  { %v2008_v30 = vpack.c.bf16 %v2007_v44, %v2005_v43  ;;  %v4284_v43 = vld [vmem:[#allocation2 + $0x2b0] ss:$8 sps:$4 sm:$0xff]  }
0x16b0   :  { %4045 = vmatmul.mubr.msk.bf16.vlgmr.msra.gmra.mrb[48].mxu1 %vm326_vm5, %v2008_v30 }
0x16b1   :  { %4055 = vmatpush3.bf16.xpose.msra.mxu1 %v2119_v45  ;;  %4056 = vmatprep.mubr.msk.bf16.mxu1 %vm4495_vm4, %v4494_v13 }
0x16b2   :  { %4066 = vmatprep.subr.bf16.mxu1 %v4494_v13 }
0x16b8   :  { %4057 = vmatmul.mubr.msk.bf16.vlgmr.msra.gmra.mrb[52].mxu1 %vm326_vm5, %v2112_v32 }
0x16b9   :  { %4068 = vmatprep.mubr.msk.bf16.mxu1 %vm4495_vm4, %v4494_v13 }
0x1783   :  { %v2049_v49 = vpop.f32.mrb[48].mxu1 }
0x1784   :  { %v4046_v50 = vpop.f32.mrb[49].mxu1 }
0x1785   :  { %v2052_v51 = vpop.f32.mrb[50].mxu1 }
0x1786   :  { %v2058_v23 = vpack.c.bf16 %v2052_v51, %v2049_v49  ;;  %v4047_v11 = vpop.f32.mrb[51].mxu1 }
0x1787   :  { %v2411_v11 = vld [vmem:[%s5193_s6 + $0x17] ss:$0 sm:$0xff] }
0x1788   :  { %4051 = vmatmul.mubr.msk.bf16.vlgmr.msra.gmra.mrb[48].mxu0 %vm326_vm5, %v2058_v23 }
0x1789   :  { %4062 = vmatprep.mubr.msk.bf16.mxu0 %vm4495_vm4, %v4494_v13 }
0x178b   :  { %v2155_v15 = vpop.f32.mrb[52].mxu1 }
0x178c   :  { %v2156_v53 = vadd.f32 %v2155_v15, %v4889_v40  ;;  %v4058_v54 = vpop.f32.mrb[53].mxu1 }
0x178d   :  { %v2158_v24 = vpop.f32.mrb[54].mxu1 }
0x178e   :  { %v2159_v55 = vadd.f32 %v2158_v24, %v4892_v3  ;;  %v4059_v56 = vpop.f32.mrb[55].mxu1  ;;  %v2162_v46 = vsel %vm326_vm5, %v2156_v53, -inf }
0x178f   :  { %2163 = vmax.xlane.f32.xlu0 %v2162_v46 }
0x1790   :  { %v2165_v57 = vsel %vm326_vm5, %v2159_v55, -inf }
0x1791   :  { %2166 = vmax.xlane.f32.xlu1 %v2165_v57 }
0x17a2   :  { %2185 = vrot.lane.b32.xlu1 %v4859_v31, %s4503_s22  ;;  %v4280_v31 = vld [vmem:[#allocation2 + $0x230] ss:$8 sps:$4 sm:$0xff]  }
0x17a3   :  { %4067 = vmatpush3.bf16.msra.mxu1 %v4280_v31 }
0x17a4   :  { %4084 = vmatprep.subr.bf16.mxu1 %v4494_v13 }
0x181c   :  { %v2164_v48 = vpop.xlane.xlu0 %2163 }
0x181d   :  { %v2168_v58 = vsub.f32 %v2156_v53, %v2164_v48 }
0x181e   :  { %v2167_v60 = vpop.xlane.xlu1 %2166 }
0x181f   :  { %v2170_v62 = vmul.f32 1.442695, %v2168_v58  ;;  %v2169_v4 = vsub.f32 %v2159_v55, %v2167_v60 }
0x1821   :  { %4393 = vpow2.f32 %v2170_v62  ;;  %v2172_v40 = vmul.f32 1.442695, %v2169_v4 }
0x1822   :  { %v2186_v5 = vpop.permute.xlu1 %2185 }
0x1823   :  { %4395 = vpow2.f32 %v2172_v40  ;;  %4061 = vmatpush3.bf16.msra.mxu0 %v2186_v5 }
0x1824   :  { %4072 = vmatprep.subr.bf16.mxu0 %v4494_v13 }
0x182b   :  { %v4394_v3 = vpop.eup %4393 }
0x182c   :  { %v2174_v6 = vsel %vm326_vm5, %v4394_v3, 0.0 }
0x182d   :  { %v4396_v9 = vpop.eup %4395  ;;  %2175 = vadd.xlane.f32.xlu0 %v2174_v6  ;;  %v4286_v6 = vld [vmem:[#allocation2 + $0x250] ss:$8 sps:$4 sm:$0xff]  }
0x182e   :  { %v2177_v10 = vsel %vm326_vm5, %v4396_v9, 0.0 }
0x1831   :  { %2178 = vadd.xlane.f32.xlu0 %v2177_v10  ;;  %v4288_v10 = vld [vmem:[#allocation2 + $0x270] ss:$8 sps:$4 sm:$0xff]  }
0x185b   :  { %v2102_v12 = vpop.f32.mrb[48].mxu0 }
0x185c   :  { %v2109_v14 = vadd.f32 %v2102_v12, %v4932_v59  ;;  %v4052_v22 = vpop.f32.mrb[49].mxu0 }
0x185d   :  { %v2105_v18 = vpop.f32.mrb[50].mxu0 }
0x185e   :  { %v2110_v19 = vadd.f32 %v2105_v18, %v4934_v1  ;;  %v4053_v26 = vpop.f32.mrb[51].mxu0 }
0x18ba   :  { %v2176_v27 = vpop.xlane.xlu0 %2175 }
0x18bb   :  { %4397 = vrcp.f32 %v2176_v27 }
0x18be   :  { %v2179_v28 = vpop.xlane.xlu0 %2178 }
0x18bf   :  { %4399 = vrcp.f32 %v2179_v28  ;;  %v2292_v28 = vld [vmem:[%s5193_s6 + $0x14] ss:$0 sm:$0xff] }
0x18c5   :  { %v4398_v29 = vpop.eup %4397 }
0x18c6   :  { %v2181_v33 = vmul.f32 %v4398_v29, %v4394_v3  ;;  %v4285_v3 = vld [vmem:[#allocation2 + $0x240] ss:$8 sps:$4 sm:$0xff]  }
0x18c9   :  { %v4400_v20 = vpop.eup %4399 }
0x18ca   :  { %v2183_v34 = vmul.f32 %v4400_v20, %v4396_v9  ;;  %v4287_v9 = vld [vmem:[#allocation2 + $0x260] ss:$8 sps:$4 sm:$0xff]  }
0x18cc   :  { %v2184_v35 = vpack.c.bf16 %v2183_v34, %v2181_v33  ;;  %v2293_v34 = vld [vmem:[%s5193_s6 + $0x15] ss:$0 sm:$0xff] }
0x18ce   :  { %4063 = vmatmul.mubr.msk.bf16.vlgmr.msra.gmra.mrb[52].mxu0 %vm326_vm5, %v2184_v35 }
0x18cf   :  { %4080 = vmatprep.mubr.msk.bf16.mxu0 %vm4495_vm4, %v4494_v13  ;;  %4073 = vmatpush3.bf16.msra.mxu0 %v4285_v3 }
0x18d0   :  { %4074 = vmatprep.subr.bf16.mxu0 %v4494_v13 }
0x18d3   :  { %4075 = vmatpush3.bf16.msra.mxu0 %v4286_v6 }
0x18d4   :  { %4076 = vmatprep.subr.bf16.mxu0 %v4494_v13 }
0x18d7   :  { %4077 = vmatpush3.bf16.msra.mxu0 %v4287_v9 }
0x18d8   :  { %4078 = vmatprep.subr.bf16.mxu0 %v4494_v13 }
0x18db   :  { %4079 = vmatpush3.bf16.msra.mxu0 %v4288_v10 }
0x18dc   :  { %4096 = vmatprep.subr.bf16.mxu0 %v4494_v13 }
0x19a1   :  { %v2225_v59 = vpop.f32.mrb[52].mxu0 }
0x19a2   :  { %v4064_v61 = vpop.f32.mrb[53].mxu0 }
0x19a3   :  { %v2228_v37 = vpop.f32.mrb[54].mxu0 }
0x19a4   :  { %v2234_v1 = vpack.c.bf16 %v2228_v37, %v2225_v59  ;;  %v4065_v41 = vpop.f32.mrb[55].mxu0 }
0x19a6   :  { %4069 = vmatmul.mubr.msk.bf16.vlgmr.msra.gmra.mrb[56].mxu1 %vm326_vm5, %v2234_v1  ;;  %v2333_v1 = vld [vmem:[%s5193_s6 + $0x16] ss:$0 sm:$0xff] }
0x19a7   :  { %4085 = vmatpush3.bf16.msra.mxu1 %v4281_v39  ;;  %4092 = vmatprep.mubr.msk.bf16.mxu1 %vm4495_vm4, %v4494_v13 }
0x19a8   :  { %4086 = vmatprep.subr.bf16.mxu1 %v4494_v13 }
0x19ab   :  { %4087 = vmatpush3.bf16.msra.mxu1 %v4282_v42 }
0x19ac   :  { %4088 = vmatprep.subr.bf16.mxu1 %v4494_v13 }
0x19af   :  { %4089 = vmatpush3.bf16.msra.mxu1 %v4283_v21 }
0x19b0   :  { %4090 = vmatprep.subr.bf16.mxu1 %v4494_v13 }
0x19b3   :  { %4091 = vmatpush3.bf16.msra.mxu1 %v4284_v43 }
0x19b4   :  { %4102 = vmatprep.subr.bf16.mxu1 %v4494_v13 }
0x19b6   :  { %4093 = vmatmul.mubr.msk.bf16.vlgmr.msra.gmra.mrb[60].mxu1 %vm178_vm3, %v2402_v52 }
0x19b7   :  { %4104 = vmatprep.mubr.msk.bf16.mxu1 %vm4495_vm4, %v4494_v13 }
0x1a79   :  { %v2278_v44 = vpop.f32.mrb[56].mxu1 }
0x1a7a   :  { %v2285_v30 = vadd.f32 %v2278_v44, %v2109_v14  ;;  %v4070_v45 = vpop.f32.mrb[57].mxu1 }
0x1a7b   :  { %v2281_v32 = vpop.f32.mrb[58].mxu1 }
0x1a7c   :  { %v2288_v47 = vadd.f32 %v2287_v25, %v2285_v30  ;;  %v2286_v49 = vadd.f32 %v2281_v32, %v2110_v19  ;;  %v4071_v50 = vpop.f32.mrb[59].mxu1 }
0x1a7e   :  { %v4993_v51 = vadd.f32 %v2288_v47, %v4821_v17  ;;  %v2289_v7 = vadd.f32 %v2287_v25, %v2286_v49 }
0x1a80   :  { %v4996_v8 = vadd.f32 %v2289_v7, %v4818_v16  ;;  %v2294_v52 = vsel %vm178_vm3, %v4993_v51, 0.0 }
0x1a81   :  { %2295 = vadd.xlane.f32.xlu0 %v2294_v52 }
0x1a82   :  { %v2297_v23 = vsel %vm178_vm3, %v4996_v8, 0.0 }
0x1a85   :  { %2298 = vadd.xlane.f32.xlu0 %v2297_v23 }
0x1a89   :  { %v2473_v15 = vpop.f32.mrb[60].mxu1 }
0x1a8a   :  { %v4094_v53 = vpop.f32.mrb[61].mxu1  ;;  %v2474_v54 = vadd.f32 %v2473_v15, %v2411_v11 }
0x1a8b   :  { %v2476_v17 = vpop.f32.mrb[62].mxu1 }
0x1a8c   :  { %v2477_v24 = vadd.f32 %v2476_v17, %v2411_v11  ;;  %v4095_v55 = vpop.f32.mrb[63].mxu1 }
0x1a8e   :  { %v5005_v16 = vpack.c.bf16 %v2477_v24, %v2474_v54 }
0x1a90   :  { %2608 = vrot.lane.b32.xlu1 %v5005_v16, %s4498_s19  ;;  %v2488_v39 = vsel %vm326_vm5, %v5005_v16, 0 }
0x1b02   :  { %v2609_v32 = vpop.permute.xlu1 %2608 }
0x1b03   :  { %v2614_v49 = vsel %vm326_vm5, %v2609_v32, 0 }
0x1b0e   :  { %v2296_v56 = vpop.xlane.xlu0 %2295 }
0x1b0f   :  { %v2300_v46 = vmul.f32 0.015625, %v2296_v56 }
0x1b11   :  { %v2302_v57 = vsub.f32 %v4993_v51, %v2300_v46 }
0x1b12   :  { %v2299_v48 = vpop.xlane.xlu0 %2298 }
0x1b13   :  { %v2301_v58 = vmul.f32 0.015625, %v2299_v48  ;;  %v2304_v60 = vmul.f32 %v2302_v57, %v2302_v57 }
0x1b15   :  { %v2303_v62 = vsub.f32 %v4996_v8, %v2301_v58  ;;  %v2306_v4 = vsel %vm178_vm3, %v2304_v60, 0.0 }
0x1b16   :  { %2307 = vadd.xlane.f32.xlu0 %v2306_v4 }
0x1b17   :  { %v2305_v40 = vmul.f32 %v2303_v62, %v2303_v62 }
0x1b19   :  { %v2309_v5 = vsel %vm178_vm3, %v2305_v40, 0.0 }
0x1b1a   :  { %2310 = vadd.xlane.f32.xlu0 %v2309_v5 }
0x1ba3   :  { %v2308_v31 = vpop.xlane.xlu0 %2307 }
0x1ba4   :  { %v2312_v12 = vmul.f32 0.015625, %v2308_v31 }
0x1ba6   :  { %v2314_v14 = vadd.f32 1e-05, %v2312_v12 }
0x1ba7   :  { %v2311_v22 = vpop.xlane.xlu0 %2310 }
0x1ba8   :  { %4401 = vrsqrt.f32 %v2314_v14  ;;  %v2313_v18 = vmul.f32 0.015625, %v2311_v22 }
0x1baa   :  { %v2315_v19 = vadd.f32 1e-05, %v2313_v18 }
0x1bac   :  { %4403 = vrsqrt.f32 %v2315_v19 }
0x1bb2   :  { %v4402_v26 = vpop.eup %4401 }
0x1bb3   :  { %v2318_v27 = vmul.f32 %v4402_v26, %v2302_v57 }
0x1bb5   :  { %v2320_v20 = vmul.f32 %v2318_v27, %v2292_v28 }
0x1bb6   :  { %v4404_v29 = vpop.eup %4403 }
0x1bb7   :  { %v2319_v33 = vmul.f32 %v4404_v29, %v2303_v62  ;;  %v2322_v59 = vadd.f32 %v2320_v20, %v2293_v34 }
0x1bb9   :  { %v2321_v35 = vmul.f32 %v2319_v33, %v2292_v28 }
0x1bbb   :  { %v2323_v61 = vadd.f32 %v2321_v35, %v2293_v34 }
0x1bbd   :  { %v2324_v37 = vpack.c.bf16 %v2323_v61, %v2322_v59 }
0x1bbf   :  { %4081 = vmatmul.mubr.msk.bf16.vlgmr.msra.gmra.mrb[56].mxu0 %vm178_vm3, %v2324_v37 }
0x1bc0   :  { %4097 = vmatpush3.bf16.xpose.msra.mxu0 %v2488_v39  ;;  %4098 = vmatprep.mubr.msk.bf16.mxu0 %vm4495_vm4, %v4494_v13 }
0x1bc1   :  { %4108 = vmatprep.subr.bf16.mxu0 %v4494_v13 }
0x1c92   :  { %v2395_v41 = vpop.f32.mrb[56].mxu0 }
0x1c93   :  { %v2396_v42 = vadd.f32 %v2395_v41, %v2333_v1  ;;  %v4082_v21 = vpop.f32.mrb[57].mxu0 }
0x1c94   :  { %v2398_v43 = vpop.f32.mrb[58].mxu0 }
0x1c95   :  { %v2399_v44 = vadd.f32 %v2398_v43, %v2333_v1  ;;  %v4083_v25 = vpop.f32.mrb[59].mxu0  ;;  %v2480_v30 = vmul.f32 0.25, %v2396_v42 }
0x1c97   :  { %v2481_v45 = vmul.f32 0.25, %v2399_v44 }
0x1c99   :  { %v5032_v47 = vpack.c.bf16 %v2481_v45, %v2480_v30 }
0x1c9b   :  { %2606 = vrot.lane.b32.xlu0 %v5032_v47, %s4498_s19  ;;  %4099 = vmatmul.mubr.msk.bf16.vlgmr.msra.gmra.mrb[60].mxu0 %vm326_vm5, %v5032_v47 }
0x1c9c   :  { %4109 = vmatpush3.bf16.xpose.msra.mxu0 %v2614_v49  ;;  %4110 = vmatprep.mubr.msk.bf16.mxu0 %vm4495_vm4, %v4494_v13  ;;  %v4289_v49 = vld [vmem:[#allocation2 + $0x2c0] ss:$8 sps:$4 sm:$0xff]  }
0x1c9d   :  { %4120 = vmatprep.subr.bf16.mxu0 %v4494_v13 }
0x1d0d   :  { %v2607_v50 = vpop.permute.xlu0 %2606 }
0x1d0e   :  { %4111 = vmatmul.mubr.msk.bf16.vlgmr.msra.gmra.mrb[64].mxu0 %vm326_vm5, %v2607_v50  ;;  %v4290_v50 = vld [vmem:[#allocation2 + $0x2d0] ss:$8 sps:$4 sm:$0xff]  }
0x1d0f   :  { %4122 = vmatprep.mubr.msk.bf16.mxu0 %vm4495_vm4, %v4494_v13  ;;  %4121 = vmatpush3.bf16.msra.mxu0 %v4290_v50 }
0x1d10   :  { %4132 = vmatprep.subr.bf16.mxu0 %v4494_v13 }
0x1d6e   :  { %v2524_v7 = vpop.f32.mrb[60].mxu0 }
0x1d6f   :  { %v2525_v52 = vadd.f32 %v2524_v7, %v4679_v36  ;;  %v4100_v23 = vpop.f32.mrb[61].mxu0 }
0x1d70   :  { %v2527_v11 = vpop.f32.mrb[62].mxu0 }
0x1d71   :  { %v2528_v15 = vadd.f32 %v2527_v11, %v4681_v38  ;;  %v4101_v53 = vpop.f32.mrb[63].mxu0  ;;  %v2531_v17 = vsel %vm326_vm5, %v2525_v52, -inf }
0x1d72   :  { %2532 = vmax.xlane.f32.xlu1 %v2531_v17 }
0x1d73   :  { %v2534_v54 = vsel %vm326_vm5, %v2528_v15, -inf }
0x1d74   :  { %2535 = vmax.xlane.f32.xlu0 %v2534_v54 }
0x1de1   :  { %v2650_v24 = vpop.f32.mrb[64].mxu0 }
0x1de2   :  { %v2651_v55 = vadd.f32 %v2650_v24, %v4679_v36  ;;  %v4112_v56 = vpop.f32.mrb[65].mxu0 }
0x1de3   :  { %v2653_v46 = vpop.f32.mrb[66].mxu0 }
0x1de4   :  { %v2654_v57 = vadd.f32 %v2653_v46, %v4681_v38  ;;  %v4113_v48 = vpop.f32.mrb[67].mxu0  ;;  %v2657_v58 = vsel %vm326_vm5, %v2651_v55, -inf }
0x1de5   :  { %2658 = vmax.xlane.f32.xlu1 %v2657_v58 }
0x1de6   :  { %v2660_v60 = vsel %vm326_vm5, %v2654_v57, -inf }
0x1de9   :  { %2661 = vmax.xlane.f32.xlu1 %v2660_v60 }
0x1dff   :  { %v2533_v62 = vpop.xlane.xlu1 %2532 }
0x1e00   :  { %v2537_v4 = vsub.f32 %v2525_v52, %v2533_v62 }
0x1e01   :  { %v2536_v40 = vpop.xlane.xlu0 %2535 }
0x1e02   :  { %v2539_v5 = vmul.f32 1.442695, %v2537_v4  ;;  %v2538_v3 = vsub.f32 %v2528_v15, %v2536_v40 }
0x1e04   :  { %4405 = vpow2.f32 %v2539_v5  ;;  %v2541_v6 = vmul.f32 1.442695, %v2538_v3 }
0x1e06   :  { %4407 = vpow2.f32 %v2541_v6 }
0x1e0e   :  { %v4406_v9 = vpop.eup %4405 }
0x1e0f   :  { %v2543_v10 = vsel %vm326_vm5, %v4406_v9, 0.0 }
0x1e10   :  { %v4408_v31 = vpop.eup %4407  ;;  %2544 = vadd.xlane.f32.xlu1 %v2543_v10 }
0x1e11   :  { %v2546_v12 = vsel %vm326_vm5, %v4408_v31, 0.0 }
0x1e14   :  { %2547 = vadd.xlane.f32.xlu1 %v2546_v12 }
0x1e72   :  { %v2659_v14 = vpop.xlane.xlu1 %2658 }
0x1e73   :  { %v2663_v22 = vsub.f32 %v2651_v55, %v2659_v14 }
0x1e75   :  { %v2665_v18 = vmul.f32 1.442695, %v2663_v22 }
0x1e76   :  { %v2662_v19 = vpop.xlane.xlu1 %2661 }
0x1e77   :  { %4409 = vpow2.f32 %v2665_v18  ;;  %v2664_v26 = vsub.f32 %v2654_v57, %v2662_v19 }
0x1e79   :  { %v2667_v27 = vmul.f32 1.442695, %v2664_v26 }
0x1e7b   :  { %4411 = vpow2.f32 %v2667_v27 }
0x1e81   :  { %v4410_v28 = vpop.eup %4409 }
0x1e82   :  { %v2669_v29 = vsel %vm326_vm5, %v4410_v28, 0.0 }
0x1e83   :  { %2670 = vadd.xlane.f32.xlu0 %v2669_v29 }
0x1e85   :  { %v4412_v20 = vpop.eup %4411 }
0x1e86   :  { %v2672_v33 = vsel %vm326_vm5, %v4412_v20, 0.0 }
0x1e87   :  { %2673 = vadd.xlane.f32.xlu1 %v2672_v33 }
0x1e98   :  { %2680 = vrot.lane.b32.xlu1 %v5005_v16, %s4497_s18 }
0x1e99   :  { %2555 = vrot.lane.b32.xlu0 %v5005_v16, %s4496_s17 }
0x1e9c   :  { %2832 = vrot.lane.b32.xlu1 %v5005_v16, %s4501_s5 }
0x1e9d   :  { %2830 = vrot.lane.b32.xlu0 %v5032_v47, %s4501_s5  ;;  %v2545_v34 = vpop.xlane.xlu1 %2544 }
0x1ea1   :  { %v2548_v35 = vpop.xlane.xlu1 %2547 }
0x1ea2   :  { %4413 = vrcp.f32 %v2548_v35 }
0x1ea3   :  { %4415 = vrcp.f32 %v2545_v34 }
0x1eac   :  { %v4414_v59 = vpop.eup %4413 }
0x1ead   :  { %v4416_v37 = vpop.eup %4415  ;;  %v2552_v39 = vmul.f32 %v4414_v59, %v4408_v31 }
0x1eae   :  { %v2550_v1 = vmul.f32 %v4416_v37, %v4406_v9 }
0x1eb0   :  { %v2553_v21 = vpack.c.bf16 %v2552_v39, %v2550_v1 }
0x1f10   :  { %v2671_v61 = vpop.xlane.xlu0 %2670 }
0x1f11   :  { %4417 = vrcp.f32 %v2671_v61 }
0x1f14   :  { %v2556_v41 = vpop.permute.xlu0 %2555  ;;  %v2674_v42 = vpop.xlane.xlu1 %2673 }
0x1f15   :  { %4419 = vrcp.f32 %v2674_v42  ;;  %4103 = vmatpush3.bf16.msra.mxu1 %v2556_v41 }
0x1f16   :  { %4114 = vmatprep.subr.bf16.mxu1 %v4494_v13 }
0x1f18   :  { %4105 = vmatmul.mubr.msk.bf16.vlgmr.msra.gmra.mrb[64].mxu1 %vm326_vm5, %v2553_v21  ;;  %v2681_v43 = vpop.permute.xlu1 %2680  ;;  %v2831_v57 = vpop.permute.xlu0 %2830 }
0x1f19   :  { %4115 = vmatpush3.bf16.msra.mxu1 %v2681_v43  ;;  %4116 = vmatprep.mubr.msk.bf16.mxu1 %vm4495_vm4, %v4494_v13 }
0x1f1a   :  { %4126 = vmatprep.subr.bf16.mxu1 %v4494_v13 }
0x1f1b   :  { %v4418_v44 = vpop.eup %4417 }
0x1f1c   :  { %v2676_v30 = vmul.f32 %v4418_v44, %v4410_v28  ;;  %v2833_v54 = vpop.permute.xlu1 %2832 }
0x1f1d   :  { %v2838_v46 = vsel %vm326_vm5, %v2833_v54, 0 }
0x1f1f   :  { %v4420_v25 = vpop.eup %4419 }
0x1f20   :  { %v2678_v45 = vmul.f32 %v4420_v25, %v4412_v20 }
0x1f22   :  { %v2679_v32 = vpack.c.bf16 %v2678_v45, %v2676_v30 }
0x1f24   :  { %4117 = vmatmul.mubr.msk.bf16.vlgmr.msra.gmra.mrb[68].mxu1 %vm326_vm5, %v2679_v32  ;;  %v4291_v32 = vld [vmem:[#allocation2 + $0x2e0] ss:$8 sps:$4 sm:$0xff]  }
0x1f25   :  { %4128 = vmatprep.mubr.msk.bf16.mxu1 %vm4495_vm4, %v4494_v13  ;;  %4127 = vmatpush3.bf16.msra.mxu1 %v4289_v49 }
0x1f26   :  { %4138 = vmatprep.subr.bf16.mxu1 %v4494_v13 }
0x1feb   :  { %v2595_v7 = vpop.f32.mrb[64].mxu1 }
0x1fec   :  { %v4106_v52 = vpop.f32.mrb[65].mxu1 }
0x1fed   :  { %v2598_v23 = vpop.f32.mrb[66].mxu1 }
0x1fee   :  { %v2604_v11 = vpack.c.bf16 %v2598_v23, %v2595_v7  ;;  %v4107_v15 = vpop.f32.mrb[67].mxu1 }
0x1ff0   :  { %4129 = vmatmul.mubr.msk.bf16.vlgmr.msra.gmra.mrb[72].mxu1 %vm326_vm5, %v2604_v11 }
0x1ff1   :  { %4140 = vmatprep.mubr.msk.bf16.mxu1 %vm4495_vm4, %v4494_v13 }
0x1ff7   :  { %v2720_v53 = vpop.f32.mrb[68].mxu1 }
0x1ff8   :  { %v4118_v17 = vpop.f32.mrb[69].mxu1 }
0x1ff9   :  { %v2723_v24 = vpop.f32.mrb[70].mxu1 }
0x1ffa   :  { %v2729_v55 = vpack.c.bf16 %v2723_v24, %v2720_v53  ;;  %v4119_v56 = vpop.f32.mrb[71].mxu1 }
0x1ffc   :  { %4123 = vmatmul.mubr.msk.bf16.vlgmr.msra.gmra.mrb[68].mxu0 %vm326_vm5, %v2729_v55 }
0x1ffd   :  { %4133 = vmatpush3.bf16.xpose.msra.mxu0 %v2838_v46  ;;  %4134 = vmatprep.mubr.msk.bf16.mxu0 %vm4495_vm4, %v4494_v13 }
0x1ffe   :  { %4144 = vmatprep.subr.bf16.mxu0 %v4494_v13 }
0x2004   :  { %4135 = vmatmul.mubr.msk.bf16.vlgmr.msra.gmra.mrb[72].mxu0 %vm326_vm5, %v2831_v57 }
0x2005   :  { %4146 = vmatprep.mubr.msk.bf16.mxu0 %vm4495_vm4, %v4494_v13  ;;  %4145 = vmatpush3.bf16.msra.mxu0 %v4291_v32 }
0x2006   :  { %4156 = vmatprep.subr.bf16.mxu0 %v4494_v13 }
0x20c3   :  { %v2823_v48 = vpop.f32.mrb[72].mxu1 }
0x20c4   :  { %v4130_v58 = vpop.f32.mrb[73].mxu1 }
0x20c5   :  { %v2826_v60 = vpop.f32.mrb[74].mxu1 }
0x20c6   :  { %v4131_v62 = vpop.f32.mrb[75].mxu1 }
0x20cf   :  { %v2773_v4 = vpop.f32.mrb[68].mxu0 }
0x20d0   :  { %v5086_v40 = vadd.f32 %v2823_v48, %v2773_v4  ;;  %v4124_v5 = vpop.f32.mrb[69].mxu0 }
0x20d1   :  { %v2776_v3 = vpop.f32.mrb[70].mxu0 }
0x20d2   :  { %v5088_v6 = vadd.f32 %v2826_v60, %v2776_v3  ;;  %v4125_v9 = vpop.f32.mrb[71].mxu0 }
0x20d3   :  { %v4292_v9 = vld [vmem:[#allocation2 + $0x2f0] ss:$8 sps:$4 sm:$0xff]  }
0x20d7   :  { %v2874_v10 = vpop.f32.mrb[72].mxu0 }
0x20d8   :  { %v2875_v31 = vadd.f32 %v2874_v10, %v4679_v36  ;;  %v4136_v12 = vpop.f32.mrb[73].mxu0 }
0x20d9   :  { %v2877_v14 = vpop.f32.mrb[74].mxu0 }
0x20da   :  { %v2878_v22 = vadd.f32 %v2877_v14, %v4681_v38  ;;  %v4137_v18 = vpop.f32.mrb[75].mxu0  ;;  %v2881_v19 = vsel %vm326_vm5, %v2875_v31, -inf }
0x20db   :  { %2882 = vmax.xlane.f32.xlu1 %v2881_v19 }
0x20dc   :  { %v2884_v26 = vsel %vm326_vm5, %v2878_v22, -inf }
0x20dd   :  { %2885 = vmax.xlane.f32.xlu0 %v2884_v26 }
0x2168   :  { %v2883_v27 = vpop.xlane.xlu1 %2882 }
0x2169   :  { %v2887_v28 = vsub.f32 %v2875_v31, %v2883_v27 }
0x216a   :  { %v2886_v29 = vpop.xlane.xlu0 %2885 }
0x216b   :  { %v2889_v20 = vmul.f32 1.442695, %v2887_v28  ;;  %v2888_v33 = vsub.f32 %v2878_v22, %v2886_v29 }
0x216d   :  { %4421 = vpow2.f32 %v2889_v20  ;;  %v2891_v34 = vmul.f32 1.442695, %v2888_v33 }
0x216f   :  { %4423 = vpow2.f32 %v2891_v34 }
0x2177   :  { %v4422_v35 = vpop.eup %4421 }
0x2178   :  { %v2893_v59 = vsel %vm326_vm5, %v4422_v35, 0.0 }
0x2179   :  { %v4424_v61 = vpop.eup %4423  ;;  %2894 = vadd.xlane.f32.xlu0 %v2893_v59 }
0x217a   :  { %v2896_v37 = vsel %vm326_vm5, %v4424_v61, 0.0 }
0x217b   :  { %2897 = vadd.xlane.f32.xlu1 %v2896_v37 }
0x218c   :  { %3008 = vrot.lane.b32.xlu1 %v5005_v16, %s4503_s22 }
0x218f   :  { %2904 = vrot.lane.b32.xlu0 %v5005_v16, %s4500_s20 }
0x2190   :  { %3006 = vrot.lane.b32.xlu1 %v5032_v47, %s4503_s22 }
0x2206   :  { %v2895_v39 = vpop.xlane.xlu0 %2894 }
0x2207   :  { %4425 = vrcp.f32 %v2895_v39 }
0x2208   :  { %v2898_v1 = vpop.xlane.xlu1 %2897 }
0x2209   :  { %4427 = vrcp.f32 %v2898_v1 }
0x220a   :  { %v2905_v41 = vpop.permute.xlu0 %2904 }
0x220b   :  { %4139 = vmatpush3.bf16.msra.mxu1 %v2905_v41 }
0x220c   :  { %4150 = vmatprep.subr.bf16.mxu1 %v4494_v13  ;;  %v3009_v25 = vpop.permute.xlu1 %3008 }
0x220d   :  { %v3014_v45 = vsel %vm326_vm5, %v3009_v25, 0 }
0x2210   :  { %v3007_v47 = vpop.permute.xlu1 %3006 }
0x2211   :  { %v4426_v42 = vpop.eup %4425 }
0x2212   :  { %v2900_v43 = vmul.f32 %v4426_v42, %v4422_v35 }
0x2213   :  { %v4428_v21 = vpop.eup %4427 }
0x2214   :  { %v2902_v44 = vmul.f32 %v4428_v21, %v4424_v61  ;;  %v3182_v61 = vld [vmem:[%s5193_s6 + $0x20] ss:$0 sm:$0xff] }
0x2216   :  { %v2903_v30 = vpack.c.bf16 %v2902_v44, %v2900_v43 }
0x2218   :  { %4141 = vmatmul.mubr.msk.bf16.vlgmr.msra.gmra.mrb[76].mxu1 %vm326_vm5, %v2903_v30 }
0x2219   :  { %4151 = vmatpush3.bf16.xpose.msra.mxu1 %v3014_v45  ;;  %4152 = vmatprep.mubr.msk.bf16.mxu1 %vm4495_vm4, %v4494_v13 }
0x221a   :  { %4162 = vmatprep.subr.bf16.mxu1 %v4494_v13 }
0x2220   :  { %4153 = vmatmul.mubr.msk.bf16.vlgmr.msra.gmra.mrb[80].mxu1 %vm326_vm5, %v3007_v47 }
0x2221   :  { %4164 = vmatprep.mubr.msk.bf16.mxu1 %vm4495_vm4, %v4494_v13  ;;  %4163 = vmatpush3.bf16.msra.mxu1 %v4292_v9 }
0x22eb   :  { %v2944_v49 = vpop.f32.mrb[76].mxu1 }
0x22ec   :  { %v4142_v50 = vpop.f32.mrb[77].mxu1 }
0x22ed   :  { %v2947_v7 = vpop.f32.mrb[78].mxu1 }
0x22ee   :  { %v2953_v52 = vpack.c.bf16 %v2947_v7, %v2944_v49  ;;  %v4143_v23 = vpop.f32.mrb[79].mxu1 }
0x22f0   :  { %4147 = vmatmul.mubr.msk.bf16.vlgmr.msra.gmra.mrb[76].mxu0 %vm326_vm5, %v2953_v52 }
0x22f1   :  { %4158 = vmatprep.mubr.msk.bf16.mxu0 %vm4495_vm4, %v4494_v13 }
0x22f3   :  { %v3050_v11 = vpop.f32.mrb[80].mxu1 }
0x22f4   :  { %v3051_v15 = vadd.f32 %v3050_v11, %v4679_v36  ;;  %v4154_v53 = vpop.f32.mrb[81].mxu1  ;;  %v4295_v11 = vld [vmem:[#allocation2 + $0x304] ss:$8 sps:$4 sm:$0xff]  }
0x22f5   :  { %v3053_v17 = vpop.f32.mrb[82].mxu1  ;;  %v4298_v53 = vld [vmem:[#allocation2 + $0x314] ss:$8 sps:$4 sm:$0xff]  }
0x22f6   :  { %v3054_v54 = vadd.f32 %v3053_v17, %v4681_v38  ;;  %v4155_v24 = vpop.f32.mrb[83].mxu1  ;;  %v3057_v55 = vsel %vm326_vm5, %v3051_v15, -inf  ;;  %v4296_v17 = vld [vmem:[#allocation2 + $0x310] ss:$8 sps:$4 sm:$0xff]  }
0x22f7   :  { %3058 = vmax.xlane.f32.xlu0 %v3057_v55  ;;  %v4299_v24 = vld [vmem:[#allocation2 + $0x320] ss:$8 sps:$4 sm:$0xff]   ;;  %v4302_v55 = vld [vmem:[#allocation2 + $0x330] ss:$8 sps:$4 sm:$0xff]  }
0x22f8   :  { %v3060_v56 = vsel %vm326_vm5, %v3054_v54, -inf }
0x22f9   :  { %3061 = vmax.xlane.f32.xlu1 %v3060_v56  ;;  %v4304_v56 = vld [vmem:[#allocation2 + $0x334] ss:$8 sps:$4 sm:$0xff]  }
0x230a   :  { %3080 = vrot.lane.b32.xlu1 %v5005_v16, %s4502_s21 }
0x2384   :  { %v3059_v46 = vpop.xlane.xlu0 %3058 }
0x2385   :  { %v3063_v57 = vsub.f32 %v3051_v15, %v3059_v46  ;;  %v4293_v15 = vld [vmem:[#allocation2 + $0x300] ss:$8 sps:$4 sm:$0xff]  }
0x2386   :  { %v3062_v48 = vpop.xlane.xlu1 %3061  ;;  %v4305_v46 = vld [vmem:[#allocation2 + $0x3c0] ss:$8 sps:$4 sm:$0xff]  }
0x2387   :  { %v3065_v58 = vmul.f32 1.442695, %v3063_v57  ;;  %v3064_v60 = vsub.f32 %v3054_v54, %v3062_v48  ;;  %v4301_v54 = vld [vmem:[#allocation2 + $0x324] ss:$8 sps:$4 sm:$0xff]   ;;  %v4306_v57 = vld [vmem:[#allocation2 + $0x340] ss:$8 sps:$4 sm:$0xff]   ;;  %3867 = vmatprep.subr.bf16.mxu1 %v4305_v46 }
0x2388   :  { %v4307_v48 = vld [vmem:[#allocation2 + $0x3d0] ss:$8 sps:$4 sm:$0xff]  }
0x2389   :  { %4429 = vpow2.f32 %v3065_v58  ;;  %v3067_v36 = vmul.f32 1.442695, %v3064_v60  ;;  %v4308_v58 = vld [vmem:[#allocation2 + $0x350] ss:$8 sps:$4 sm:$0xff]   ;;  %v4309_v60 = vld [vmem:[#allocation2 + $0x3e0] ss:$8 sps:$4 sm:$0xff]  }
0x238a   :  { %v3081_v62 = vpop.permute.xlu1 %3080 }
0x238b   :  { %4431 = vpow2.f32 %v3067_v36  ;;  %4157 = vmatpush3.bf16.msra.mxu0 %v3081_v62  ;;  %v4310_v36 = vld [vmem:[#allocation2 + $0x360] ss:$8 sps:$4 sm:$0xff]   ;;  %v4311_v62 = vld [vmem:[#allocation2 + $0x3f0] ss:$8 sps:$4 sm:$0xff]  }
0x238c   :  { %3284 = vmatprep.subr.bf16.mxu0 %v4295_v11  ;;  %v4322_v11 = vld [vmem:[#allocation2 + $0x450] ss:$8 sps:$4 sm:$0xff]  }
0x2393   :  { %v4430_v38 = vpop.eup %4429 }
0x2394   :  { %v3069_v4 = vsel %vm326_vm5, %v4430_v38, 0.0 }
0x2395   :  { %v4432_v5 = vpop.eup %4431  ;;  %3070 = vadd.xlane.f32.xlu0 %v3069_v4  ;;  %v4313_v4 = vld [vmem:[#allocation2 + $0x400] ss:$8 sps:$4 sm:$0xff]  }
0x2396   :  { %v3072_v3 = vsel %vm326_vm5, %v4432_v5, 0.0 }
0x2399   :  { %3073 = vadd.xlane.f32.xlu0 %v3072_v3  ;;  %v4315_v3 = vld [vmem:[#allocation2 + $0x410] ss:$8 sps:$4 sm:$0xff]  }
0x23c3   :  { %v2997_v16 = vpop.f32.mrb[76].mxu0 }
0x23c4   :  { %v3004_v10 = vadd.f32 %v2997_v16, %v5086_v40  ;;  %v4148_v31 = vpop.f32.mrb[77].mxu0 }
0x23c5   :  { %v3000_v12 = vpop.f32.mrb[78].mxu0 }
0x23c6   :  { %v3005_v14 = vadd.f32 %v3000_v12, %v5088_v6  ;;  %v4149_v22 = vpop.f32.mrb[79].mxu0 }
0x2422   :  { %v3071_v18 = vpop.xlane.xlu0 %3070 }
0x2423   :  { %4433 = vrcp.f32 %v3071_v18 }
0x2426   :  { %v3074_v19 = vpop.xlane.xlu0 %3073 }
0x2427   :  { %4435 = vrcp.f32 %v3074_v19  ;;  %v3187_v19 = vld [vmem:[%s5193_s6 + $0x21] ss:$0 sm:$0xff] }
0x242d   :  { %v4434_v26 = vpop.eup %4433 }
0x242e   :  { %v3076_v28 = vmul.f32 %v4434_v26, %v4430_v38  ;;  %v4312_v38 = vld [vmem:[#allocation2 + $0x370] ss:$8 sps:$4 sm:$0xff]  }
0x2431   :  { %v4436_v27 = vpop.eup %4435 }
0x2432   :  { %v3078_v29 = vmul.f32 %v4436_v27, %v4432_v5  ;;  %v4314_v5 = vld [vmem:[#allocation2 + $0x380] ss:$8 sps:$4 sm:$0xff]  }
0x2434   :  { %v3079_v20 = vpack.c.bf16 %v3078_v29, %v3076_v28  ;;  %v3188_v29 = vld [vmem:[%s5193_s6 + $0x22] ss:$0 sm:$0xff] }
0x2436   :  { %4159 = vmatmul.mubr.msk.bf16.vlgmr.msra.gmra.mrb[80].mxu0 %vm326_vm5, %v3079_v20 }
0x2437   :  { %3316 = vmatprep.mubr.bf16.mxu0 %v4493_v0  ;;  %3285 = vmatpush1.bf16.msra.mxu0 %v4293_v15 }
0x2438   :  { %3286 = vmatprep.subr.bf16.mxu0 %v4298_v53  ;;  %v3365_v53 = vld [vmem:[%s5193_s6 + $0x24] ss:$0 sm:$0xff] }
0x243b   :  { %3287 = vmatpush1.bf16.msra.mxu0 %v4296_v17 }
0x243c   :  { %3288 = vmatprep.subr.bf16.mxu0 %v4301_v54 }
0x243f   :  { %3289 = vmatpush1.bf16.msra.mxu0 %v4299_v24 }
0x2440   :  { %3290 = vmatprep.subr.bf16.mxu0 %v4304_v56 }
0x2443   :  { %3291 = vmatpush1.bf16.msra.mxu0 %v4302_v55 }
0x2444   :  { %4168 = vmatprep.subr.bf16.mxu0 %v4494_v13 }
0x2509   :  { %v3120_v33 = vpop.f32.mrb[80].mxu0 }
0x250a   :  { %v4160_v40 = vpop.f32.mrb[81].mxu0 }
0x250b   :  { %v3123_v34 = vpop.f32.mrb[82].mxu0 }
0x250c   :  { %v3129_v35 = vpack.c.bf16 %v3123_v34, %v3120_v33  ;;  %v4161_v59 = vpop.f32.mrb[83].mxu0 }
0x250d   :  { %v4317_v59 = vld [vmem:[#allocation2 + $0x420] ss:$8 sps:$4 sm:$0xff]  }
0x250e   :  { %4165 = vmatmul.mubr.msk.bf16.vlgmr.msra.gmra.mrb[84].mxu1 %vm326_vm5, %v3129_v35  ;;  %v4316_v35 = vld [vmem:[#allocation2 + $0x390] ss:$8 sps:$4 sm:$0xff]  }
0x250f   :  { %3868 = vmatpush3.bf16.msra.mxu1 %v4306_v57 }
0x2510   :  { %3869 = vmatprep.subr.bf16.mxu1 %v4307_v48 }
0x2513   :  { %3870 = vmatpush3.bf16.msra.mxu1 %v4308_v58 }
0x2514   :  { %3871 = vmatprep.subr.bf16.mxu1 %v4309_v60 }
0x2517   :  { %3872 = vmatpush3.bf16.msra.mxu1 %v4310_v36 }
0x2518   :  { %3873 = vmatprep.subr.bf16.mxu1 %v4311_v62 }
0x251b   :  { %3874 = vmatpush3.bf16.msra.mxu1 %v4312_v38 }
0x251c   :  { %3875 = vmatprep.subr.bf16.mxu1 %v4313_v4 }
0x251f   :  { %3876 = vmatpush3.bf16.msra.mxu1 %v4314_v5 }
0x2520   :  { %3877 = vmatprep.subr.bf16.mxu1 %v4315_v3 }
0x2523   :  { %3878 = vmatpush3.bf16.msra.mxu1 %v4316_v35 }
0x2524   :  { %3879 = vmatprep.subr.bf16.mxu1 %v4317_v59 }
0x25e1   :  { %v3173_v6 = vpop.f32.mrb[84].mxu1 }
0x25e2   :  { %v3180_v37 = vadd.f32 %v3173_v6, %v3004_v10  ;;  %v4166_v39 = vpop.f32.mrb[85].mxu1  ;;  %v4318_v6 = vld [vmem:[#allocation2 + $0x3a0] ss:$8 sps:$4 sm:$0xff]  }
0x25e3   :  { %v3176_v1 = vpop.f32.mrb[86].mxu1  ;;  %3880 = vmatpush3.bf16.msra.mxu1 %v4318_v6  ;;  %v4321_v39 = vld [vmem:[#allocation2 + $0x440] ss:$8 sps:$4 sm:$0xff]  }
0x25e4   :  { %v3183_v41 = vadd.f32 %v3182_v61, %v3180_v37  ;;  %v3181_v42 = vadd.f32 %v3176_v1, %v3005_v14  ;;  %v4167_v21 = vpop.f32.mrb[87].mxu1  ;;  %v4320_v37 = vld [vmem:[#allocation2 + $0x3b0] ss:$8 sps:$4 sm:$0xff]   ;;  %v3714_v1 = vld [vmem:[%s5193_s6 + $0x23] ss:$8 sm:$0x3] }
0x25e6   :  { %v5132_v0 = vadd.f32 %v3183_v41, %v4993_v51  ;;  %v3184_v43 = vadd.f32 %v3182_v61, %v3181_v42  ;;  %v4319_v61 = vld [vmem:[#allocation2 + $0x430] ss:$8 sps:$4 sm:$0xff]   ;;  %v3234_v41 = vrot.slane %v3714_v1, %v4640_v63  ;;  %v3238_v42 = vrot.slane %v3714_v1, %v4645_v2  ;;  %v4323_v63 = vld [vmem:[#allocation2 + $0x460] ss:$8 sps:$4 sm:$0xff]  }
0x25e7   :  { %3881 = vmatprep.subr.bf16.mxu1 %v4319_v61  ;;  %v4324_v2 = vld [vmem:[#allocation2 + $0x470] ss:$8 sps:$4 sm:$0xff]  }
0x25e8   :  { %v5135_v44 = vadd.f32 %v3184_v43, %v4996_v8  ;;  %v3189_v25 = vsel %vm178_vm3, %v5132_v0, 0.0  ;;  %3882 = vmatpush3.bf16.msra.mxu1 %v4320_v37 }
0x25e9   :  { %3190 = vadd.xlane.f32.xlu0 %v3189_v25 }
0x25ea   :  { %v3192_v30 = vsel %vm178_vm3, %v5135_v44, 0.0 }
0x25ed   :  { %3193 = vadd.xlane.f32.xlu0 %v3192_v30 }
0x2676   :  { %v3191_v45 = vpop.xlane.xlu0 %3190 }
0x2677   :  { %v3195_v47 = vmul.f32 0.015625, %v3191_v45 }
0x2679   :  { %v3197_v32 = vsub.f32 %v5132_v0, %v3195_v47 }
0x267a   :  { %v3194_v49 = vpop.xlane.xlu0 %3193 }
0x267b   :  { %v3196_v50 = vmul.f32 0.015625, %v3194_v49  ;;  %v3199_v51 = vmul.f32 %v3197_v32, %v3197_v32 }
0x267d   :  { %v3198_v7 = vsub.f32 %v5135_v44, %v3196_v50  ;;  %v3201_v8 = vsel %vm178_vm3, %v3199_v51, 0.0 }
0x267e   :  { %3202 = vadd.xlane.f32.xlu0 %v3201_v8 }
0x267f   :  { %v3200_v52 = vmul.f32 %v3198_v7, %v3198_v7 }
0x2681   :  { %v3204_v23 = vsel %vm178_vm3, %v3200_v52, 0.0 }
0x2682   :  { %3205 = vadd.xlane.f32.xlu0 %v3204_v23 }
0x270b   :  { %v3203_v9 = vpop.xlane.xlu0 %3202 }
0x270c   :  { %v3207_v16 = vmul.f32 0.015625, %v3203_v9 }
0x270e   :  { %v3209_v10 = vadd.f32 1e-05, %v3207_v16 }
0x270f   :  { %v3206_v31 = vpop.xlane.xlu0 %3205 }
0x2710   :  { %4437 = vrsqrt.f32 %v3209_v10  ;;  %v3208_v12 = vmul.f32 0.015625, %v3206_v31 }
0x2712   :  { %v3210_v14 = vadd.f32 1e-05, %v3208_v12 }
0x2714   :  { %4439 = vrsqrt.f32 %v3210_v14 }
0x271a   :  { %v4438_v22 = vpop.eup %4437 }
0x271b   :  { %v3213_v18 = vmul.f32 %v4438_v22, %v3197_v32 }
0x271d   :  { %v3215_v27 = vmul.f32 %v3213_v18, %v3187_v19 }
0x271e   :  { %v4440_v26 = vpop.eup %4439 }
0x271f   :  { %v3214_v28 = vmul.f32 %v4440_v26, %v3198_v7  ;;  %v3217_v33 = vadd.f32 %v3215_v27, %v3188_v29 }
0x2721   :  { %v3216_v20 = vmul.f32 %v3214_v28, %v3187_v19 }
0x2723   :  { %v3218_v40 = vadd.f32 %v3216_v20, %v3188_v29 }
0x2725   :  { %v3219_v34 = vpack.c.bf16 %v3218_v40, %v3217_v33 }
0x2727   :  { %3723 = vmatmul.mubr.msk.bf16.vlgmr.msra.gmra.mrb[84].mxu0 %vm178_vm3, %v3219_v34 }
0x2728   :  { %4176 = vmatprep.mubr.msk.bf16.mxu0 %vm4495_vm4, %v4494_v13  ;;  %4169 = vmatpush3.bf16.msra.mxu0 %v4321_v39 }
0x2729   :  { %4170 = vmatprep.subr.bf16.mxu0 %v4494_v13 }
0x272c   :  { %4171 = vmatpush3.bf16.msra.mxu0 %v4322_v11 }
0x272d   :  { %4172 = vmatprep.subr.bf16.mxu0 %v4494_v13 }
0x2730   :  { %4173 = vmatpush3.bf16.msra.mxu0 %v4323_v63 }
0x2731   :  { %4174 = vmatprep.subr.bf16.mxu0 %v4494_v13  ;;  %v3514_v13 = vld [vmem:[%s5193_s6 + $0x25] ss:$0 sm:$0xff] }
0x2734   :  { %4175 = vmatpush3.bf16.msra.mxu0 %v4324_v2 }
0x27fa   :  { %v3318_v21 = vpop.f32.mrb[84].mxu0 }
0x27fb   :  { %v3319_v43 = vadd.f32 %v3318_v21, %v3234_v41  ;;  %v3320_v25 = vpop.f32.mrb[85].mxu0 }
0x27fc   :  { %v3321_v30 = vadd.f32 %v3320_v25, %v3238_v42  ;;  %v3322_v45 = vpop.f32.mrb[86].mxu0 }
0x27fd   :  { %v3323_v47 = vadd.f32 %v3322_v45, %v3234_v41  ;;  %v3324_v32 = vpop.f32.mrb[87].mxu0  ;;  %v3327_v50 = vmax.f32 %v3319_v43, 0.0 }
0x27fe   :  { %v3325_v49 = vadd.f32 %v3324_v32, %v3238_v42  ;;  %v3328_v7 = vmax.f32 %v3321_v30, 0.0 }
0x27ff   :  { %v3329_v51 = vmax.f32 %v3323_v47, 0.0 }
0x2800   :  { %v3330_v8 = vmax.f32 %v3325_v49, 0.0 }
0x2801   :  { %v3331_v52 = vpack.c.bf16 %v3329_v51, %v3327_v50 }
0x2802   :  { %v3332_v23 = vpack.c.bf16 %v3330_v8, %v3328_v7 }
0x2804   :  { %3494 = vmatprep.mubr.bf16.mxu1 %v3332_v23 }
0x2805   :  { %3495 = vmatmul.mubr.bf16.vlgmr.msra.gmra.mrb[88].mxu1 %v3331_v52 }
0x28d8   :  { %v3883_v15 = vpop.f32.mrb[88].mxu1 }
0x28d9   :  { %v3884_v17 = vpop.f32.mrb[89].mxu1 }
0x28da   :  { %v3885_v54 = vadd.f32 %v3884_v17, %v3883_v15  ;;  %v3886_v24 = vpop.f32.mrb[90].mxu1 }
0x28db   :  { %v3887_v55 = vpop.f32.mrb[91].mxu1 }
0x28dc   :  { %v3497_v56 = vadd.f32 %v3885_v54, %v3365_v53  ;;  %v3888_v46 = vadd.f32 %v3887_v55, %v3886_v24 }
0x28de   :  { %v3500_v57 = vadd.f32 %v3888_v46, %v3365_v53  ;;  %v3503_v48 = vadd.f32 %v3497_v56, %v5132_v0 }
0x28e0   :  { %v3504_v58 = vadd.f32 %v3500_v57, %v5135_v44 }
0x28e2   :  { %v3505_v60 = vpack.c.bf16 %v3504_v58, %v3503_v48 }
0x28e4   :  { %4177 = vmatmul.mubr.msk.bf16.vlgmr.msra.gmra.mrb[88].mxu0 %vm178_vm3, %v3505_v60 }
0x29b7   :  { %v3576_v36 = vpop.f32.mrb[88].mxu0 }
0x29b8   :  { %v3577_v62 = vadd.f32 %v3576_v36, %v3514_v13  ;;  %v4178_v38 = vpop.f32.mrb[89].mxu0 }
0x29b9   :  { %v3579_v4 = vpop.f32.mrb[90].mxu0 }
0x29ba   :  { %3583 = vst [vmem:[#allocation5] sm:$0xff] %v3577_v62  ;;  %v3580_v5 = vadd.f32 %v3579_v4, %v3514_v13  ;;  %v4179_v3 = vpop.f32.mrb[91].mxu0 }
0x29bc   :  { %3584 = vst [vmem:[#allocation5 + $0x8] sm:$0xff] %v3580_v5 }
0x29bd   :  { %4475 = shalt.err (!%p4472_p12)
}
0x29be   :  { %s4476_s1 = scalar_lea.hbm %s5194_s7, 256 }
0x29bf   :  { %p4477_p13 = scmp.ne.s32.totalorder %s5194_s7, %s4476_s1  ;;  %p4480_p0 = scmp.lt.u32.totalorder %s4476_s1, %s5194_s7 }
0x29c1   :  { %p4482_p1 = pnand %p4480_p0, %p4477_p13 }
0x29c3   :  { %4485 = shalt.err (!%p4482_p1)
}
0x29c4   :  { %3596 = dma.vmem_to_hbm [thread:$0]  %s3591_s0, 256, %s5194_s7, [#allocation4], %s4491_s11, %s4491_s11, %s4492_s12  }
0x29c5   :  { %4488 = dma.done.wait [#allocation4], 256  }
0x29c6   :  { %4489 = vsyncadd [#allocation4], 4294967040 }
0x29c7   :  { %3600 = vsyncpa [#allocation3], 1 }
0x29c8   :  { %3601 = vsyncpa [#allocation4], 1 }

</bundles_post_ra>
